<compile_context>
chip_gen: v6e
topology: v6e:2x2x1
jax: 0.10.0
libtpu: 0.0.40
codegen_flags: <defaults>
</compile_context>

<pallas_src>
import functools

import jax
import jax.numpy as jnp
from jax.experimental import pallas as pl
from jax.experimental.pallas import tpu as pltpu


# ----------------------------------------------------------------------------
# helpers
# ----------------------------------------------------------------------------
def _round_up(x, m):
    return ((x + m - 1) // m) * m


def _pair(v):
    # PyTorch Conv2d accepts ints or 2-tuples for stride / padding.
    return (v, v) if isinstance(v, int) else (int(v[0]), int(v[1]))


def _pick_row_tile(hout, wout, *, target_rows=512, max_rows=1024):
    """Output rows (of Hout) per grid step.

    Chosen so the per-step output tile (tr*Wout, 128) is:
      * sublane-aligned ((tr*Wout) % 8 == 0) -> unmasked lane/sublane-dense
        stores (the single biggest measured lever),
      * big (targets 256-512 rows: per-step overhead ~0.35us, and large LHS
        tiles keep the 256-wide MXUs on v6e/v7x busy),
      * bounded (<= max_rows) so the f32 accumulator stays a few hundred KiB.
    Falls back to tr = Hout (one step per batch item): that block then covers
    the full Hout*Wout dim, which is always a legal BlockSpec.
    """
    cands = [d for d in range(1, hout + 1)
             if hout % d == 0 and (d * wout) % 8 == 0 and d * wout <= max_rows]
    if not cands:
        return hout
    under = [d for d in cands if d * wout <= target_rows]
    return max(under) if under else min(cands)


# ----------------------------------------------------------------------------
# Pallas kernel: tap-accumulation conv + bias + ReLU
# ----------------------------------------------------------------------------
def _conv_bias_relu_kernel(x_ref, w_ref, b_ref, o_ref, *, kh, kw, sh, sw, tr, wout):
    # x_ref: (1, Hp, Wp, Cin)        bf16 padded NHWC input (full batch item).
    #                                Block index depends only on the batch grid
    #                                axis, so it is DMA'd once per batch item.
    # w_ref: (kh*kw, Cin, Cout_pad)  bf16, grid-resident (one matmul RHS per tap)
    # b_ref: (1, Cout_pad)           f32,  grid-resident
    # o_ref: (1, tr*wout, Cout_pad)  f32
    r = pl.program_id(1)
    base = r * (tr * sh)                    # first padded-input row for this block
    rows = tr * wout
    cout_pad = o_ref.shape[-1]

    acc = jnp.zeros((rows, cout_pad), jnp.float32)
    for i in range(kh):                     # short static unroll: kh*kw taps total
        if sh == 1:
            x_rows = x_ref[0, pl.ds(base + i, tr)]              # (tr, Wp, Cin)
        else:
            # TODO(synk): strided row gather lowers to relayout copies; pre-split
            # the input into sh row phases in the wrapper if stride>1 gets hot.
            x_rows = x_ref[0, pl.ds(base + i, tr, stride=sh)]
        for j in range(kw):
            # Unit-stride column window for sw==1; static slice either way.
            x_tap = x_rows[:, j:j + (wout - 1) * sw + 1:sw, :]  # (tr, wout, Cin)
            x2 = x_tap.reshape(rows, x_tap.shape[-1])           # merge leading dims
            acc += jnp.dot(x2, w_ref[i * kw + j],
                           preferred_element_type=jnp.float32)

    acc = acc + b_ref[...]                  # f32 bias broadcast (hoisted, done once)
    o_ref[0] = jnp.maximum(acc, 0.0).astype(o_ref.dtype)


# ----------------------------------------------------------------------------
# VanillaConv forward (conv + bias + ReLU); batch_norm=False path.
# ----------------------------------------------------------------------------
# TODO(synk): batch_norm=True path (training-mode BatchNorm2d over N,H,W) is
# not implemented; the instantiated module uses batch_norm=False.
def vanilla_conv_forward(x_nchw, weight, bias, *, stride, padding):
    """x_nchw: (N, Cin, H, W); weight: (Cout, Cin, kh, kw); bias: (Cout,)."""
    N, Cin, H, W = x_nchw.shape
    Cout, _, kh, kw = weight.shape
    sh, sw = _pair(stride)
    ph, pw = _pair(padding)

    Hout = (H + 2 * ph - kh) // sh + 1
    Wout = (W + 2 * pw - kw) // sw + 1
    Hp, Wp = H + 2 * ph, W + 2 * pw
    # Lane-dense output / weight columns (pad to 256 if Cout ever grows past
    # 128 on v6e/v7x; 128 is right for Cout=8 here).
    cout_pad = _round_up(Cout, 128)

    # NCHW -> NHWC, zero-pad spatial dims, cast to bf16 for native MXU rate.
    x = jnp.transpose(x_nchw, (0, 2, 3, 1))
    x = jnp.pad(x, ((0, 0), (ph, ph), (pw, pw), (0, 0))).astype(jnp.bfloat16)

    # (Cout, Cin, kh, kw) -> (kh, kw, Cin, Cout) -> (kh*kw, Cin, Cout_pad), bf16.
    w_taps = jnp.transpose(weight, (2, 3, 1, 0)).reshape(kh * kw, Cin, Cout)
    w_taps = jnp.pad(w_taps, ((0, 0), (0, 0), (0, cout_pad - Cout))).astype(jnp.bfloat16)
    b_row = jnp.pad(bias.astype(jnp.float32), (0, cout_pad - Cout)).reshape(1, cout_pad)

    tr = _pick_row_tile(Hout, Wout)         # output rows of Hout per grid step
    rb = Hout // tr

    kernel = functools.partial(_conv_bias_relu_kernel,
                               kh=kh, kw=kw, sh=sh, sw=sw, tr=tr, wout=Wout)

    out = pl.pallas_call(
        kernel,
        out_shape=jax.ShapeDtypeStruct((N, Hout * Wout, cout_pad), jnp.float32),
        grid_spec=pltpu.PrefetchScalarGridSpec(
            num_scalar_prefetch=0,
            grid=(N, rb),
            in_specs=[
                # Full padded input of one batch item; its block index only
                # changes with n, so Pallas DMAs it once per batch item.
                # TODO(synk): for very large images switch to halo'd H-blocks
                # via manual make_async_copy to bound VMEM (esp. v7x 64 MiB).
                pl.BlockSpec((1, Hp, Wp, Cin), lambda n, r: (n, 0, 0, 0)),
                pl.BlockSpec((kh * kw, Cin, cout_pad), lambda n, r: (0, 0, 0)),
                pl.BlockSpec((1, cout_pad), lambda n, r: (0, 0)),
            ],
            out_specs=pl.BlockSpec((1, tr * Wout, cout_pad),
                                   lambda n, r: (n, r, 0)),
        ),
        compiler_params=pltpu.CompilerParams(
            dimension_semantics=("parallel", "parallel"),
            vmem_limit_bytes=32 * 1024 * 1024),
    )(x, w_taps, b_row)

    # Slice off the Cout padding, reshape to NHWC, then NCHW to match PyTorch.
    out = out[:, :, :Cout].reshape(N, Hout, Wout, Cout)
    return jnp.transpose(out, (0, 3, 1, 2))


# ----------------------------------------------------------------------------
# Pure-JAX references (for correctness check)
# ----------------------------------------------------------------------------
def reference_forward(x_nchw, weight, bias, *, stride, padding, cast_bf16):
    x = x_nchw
    w = weight
    if cast_bf16:
        # Mirror the kernel's bf16 matmul inputs (f32 accumulation).
        x = x.astype(jnp.bfloat16).astype(jnp.float32)
        w = w.astype(jnp.bfloat16).astype(jnp.float32)
    y = jax.lax.conv_general_dilated(
        x.astype(jnp.float32), w.astype(jnp.float32),
        window_strides=(stride, stride),
        padding=[(padding, padding), (padding, padding)],
        dimension_numbers=("NCHW", "OIHW", "NCHW"),
        precision=jax.lax.Precision.HIGHEST)
    y = y + bias.astype(jnp.float32).reshape(1, -1, 1, 1)
    return jnp.maximum(y, 0.0)


if __name__ == "__main__":
    # Module config: VanillaConv(in_channels=4, out_channels=8, kernel_size=3,
    #                            stride=1, padding=1, batch_norm=False)
    in_channels, out_channels = 4, 8
    kernel_size, stride, padding = 3, 1, 1
    batch, spatial = 2, 16

    key = jax.random.PRNGKey(0)
    kx, kw_, kb = jax.random.split(key, 3)

    x = jax.random.normal(kx, (batch, in_channels, spatial, spatial), jnp.float32)

    # Deterministic Conv2d-shaped parameters (PyTorch kaiming-uniform-ish range).
    fan_in = in_channels * kernel_size * kernel_size
    bound = 1.0 / (fan_in ** 0.5)
    weight = jax.random.uniform(
        kw_, (out_channels, in_channels, kernel_size, kernel_size),
        jnp.float32, -bound, bound)
    bias = jax.random.uniform(kb, (out_channels,), jnp.float32, -bound, bound)

    fwd = jax.jit(functools.partial(
        vanilla_conv_forward, stride=stride, padding=padding))
    y = jax.block_until_ready(fwd(x, weight, bias))

    assert y.shape == (batch, out_channels, spatial, spatial), y.shape

    # Tight check vs. a reference that also uses bf16 matmul inputs.
    y_ref_bf16 = reference_forward(x, weight, bias, stride=stride,
                                   padding=padding, cast_bf16=True)
    err_bf16 = float(jnp.max(jnp.abs(y - y_ref_bf16)))
    assert jnp.allclose(y, y_ref_bf16, atol=2e-3, rtol=2e-3), err_bf16

    # Loose sanity check vs. the full-f32 reference (bf16 input rounding).
    y_ref_f32 = reference_forward(x, weight, bias, stride=stride,
                                  padding=padding, cast_bf16=False)
    err_f32 = float(jnp.max(jnp.abs(y - y_ref_f32)))
    assert jnp.allclose(y, y_ref_f32, atol=5e-2, rtol=5e-2), err_f32

    print("KERNEL_OK")
</pallas_src>

<mosaic_0001>
module attributes {stable_mosaic.version = 11 : i64} {
  func.func @_conv_bias_relu_kernel(%arg0: i32, %arg1: i32, %arg2: memref<1x18x18x4xbf16, #tpu.memory_space<vmem>>, %arg3: memref<9x4x128xbf16, #tpu.memory_space<vmem>>, %arg4: memref<1x128xf32, #tpu.memory_space<vmem>>, %arg5: memref<1x256x128xf32, #tpu.memory_space<vmem>>) attributes {dimension_semantics = [#tpu.dimension_semantics<parallel>, #tpu.dimension_semantics<parallel>], iteration_bounds = array<i64: 2, 1>, scalar_prefetch = 0 : i64, scratch_operands = 0 : i64, tpu.core_type = #tpu.core_type<tc>, window_params = [{transform_indices = @transform_0, window_bounds = array<i64: 1, 18, 18, 4>}, {pipeline_mode = #tpu.pipeline_mode<synchronous>, transform_indices = @transform_1, window_bounds = array<i64: 9, 4, 128>}, {pipeline_mode = #tpu.pipeline_mode<synchronous>, transform_indices = @transform_2, window_bounds = array<i64: 1, 128>}, {transform_indices = @transform_3, window_bounds = array<i64: 1, 256, 128>}]} {
    %c16_i32 = arith.constant 16 : i32
    %0 = arith.muli %arg1, %c16_i32 : i32
    %cst = arith.constant 0.000000e+00 : f32
    %1 = vector.broadcast %cst : f32 to vector<256x128xf32>
    %c0_i32 = arith.constant 0 : i32
    %2 = arith.addi %0, %c0_i32 : i32
    %c0 = arith.constant 0 : index
    %3 = arith.index_cast %2 : i32 to index
    %c0_0 = arith.constant 0 : index
    %c0_1 = arith.constant 0 : index
    %4 = vector.load %arg2[%c0, %3, %c0_0, %c0_1] : memref<1x18x18x4xbf16, #tpu.memory_space<vmem>>, vector<1x16x18x4xbf16>
    %5 = vector.shape_cast %4 : vector<1x16x18x4xbf16> to vector<16x18x4xbf16>
    %6 = vector.extract_strided_slice %5 {offsets = [0, 0, 0], sizes = [16, 16, 4], strides = [1, 1, 1]} : vector<16x18x4xbf16> to vector<16x16x4xbf16>
    %7 = vector.shape_cast %6 : vector<16x16x4xbf16> to vector<256x4xbf16>
    %c0_2 = arith.constant 0 : index
    %c0_3 = arith.constant 0 : index
    %c0_4 = arith.constant 0 : index
    %8 = vector.load %arg3[%c0_2, %c0_3, %c0_4] : memref<9x4x128xbf16, #tpu.memory_space<vmem>>, vector<1x4x128xbf16>
    %9 = vector.shape_cast %8 : vector<1x4x128xbf16> to vector<4x128xbf16>
    %cst_5 = arith.constant dense<0.000000e+00> : vector<256x128xf32>
    %10 = tpu.matmul %7, %9, %cst_5 {dimension_numbers = #tpu.dot_dimension_numbers<[1], [0], [0], [1], [0, 0, 1, 1], [], []>} : vector<256x4xbf16>, vector<4x128xbf16>, vector<256x128xf32> -> vector<256x128xf32>
    %11 = arith.addf %1, %10 : vector<256x128xf32>
    %12 = vector.extract_strided_slice %5 {offsets = [0, 1, 0], sizes = [16, 16, 4], strides = [1, 1, 1]} : vector<16x18x4xbf16> to vector<16x16x4xbf16>
    %13 = vector.shape_cast %12 : vector<16x16x4xbf16> to vector<256x4xbf16>
    %c1 = arith.constant 1 : index
    %c0_6 = arith.constant 0 : index
    %c0_7 = arith.constant 0 : index
    %14 = vector.load %arg3[%c1, %c0_6, %c0_7] : memref<9x4x128xbf16, #tpu.memory_space<vmem>>, vector<1x4x128xbf16>
    %15 = vector.shape_cast %14 : vector<1x4x128xbf16> to vector<4x128xbf16>
    %cst_8 = arith.constant dense<0.000000e+00> : vector<256x128xf32>
    %16 = tpu.matmul %13, %15, %cst_8 {dimension_numbers = #tpu.dot_dimension_numbers<[1], [0], [0], [1], [0, 0, 1, 1], [], []>} : vector<256x4xbf16>, vector<4x128xbf16>, vector<256x128xf32> -> vector<256x128xf32>
    %17 = arith.addf %11, %16 : vector<256x128xf32>
    %18 = vector.extract_strided_slice %5 {offsets = [0, 2, 0], sizes = [16, 16, 4], strides = [1, 1, 1]} : vector<16x18x4xbf16> to vector<16x16x4xbf16>
    %19 = vector.shape_cast %18 : vector<16x16x4xbf16> to vector<256x4xbf16>
    %c2 = arith.constant 2 : index
    %c0_9 = arith.constant 0 : index
    %c0_10 = arith.constant 0 : index
    %20 = vector.load %arg3[%c2, %c0_9, %c0_10] : memref<9x4x128xbf16, #tpu.memory_space<vmem>>, vector<1x4x128xbf16>
    %21 = vector.shape_cast %20 : vector<1x4x128xbf16> to vector<4x128xbf16>
    %cst_11 = arith.constant dense<0.000000e+00> : vector<256x128xf32>
    %22 = tpu.matmul %19, %21, %cst_11 {dimension_numbers = #tpu.dot_dimension_numbers<[1], [0], [0], [1], [0, 0, 1, 1], [], []>} : vector<256x4xbf16>, vector<4x128xbf16>, vector<256x128xf32> -> vector<256x128xf32>
    %23 = arith.addf %17, %22 : vector<256x128xf32>
    %c1_i32 = arith.constant 1 : i32
    %24 = arith.addi %0, %c1_i32 : i32
    %c0_12 = arith.constant 0 : index
    %25 = arith.index_cast %24 : i32 to index
    %c0_13 = arith.constant 0 : index
    %c0_14 = arith.constant 0 : index
    %26 = vector.load %arg2[%c0_12, %25, %c0_13, %c0_14] : memref<1x18x18x4xbf16, #tpu.memory_space<vmem>>, vector<1x16x18x4xbf16>
    %27 = vector.shape_cast %26 : vector<1x16x18x4xbf16> to vector<16x18x4xbf16>
    %28 = vector.extract_strided_slice %27 {offsets = [0, 0, 0], sizes = [16, 16, 4], strides = [1, 1, 1]} : vector<16x18x4xbf16> to vector<16x16x4xbf16>
    %29 = vector.shape_cast %28 : vector<16x16x4xbf16> to vector<256x4xbf16>
    %c3 = arith.constant 3 : index
    %c0_15 = arith.constant 0 : index
    %c0_16 = arith.constant 0 : index
    %30 = vector.load %arg3[%c3, %c0_15, %c0_16] : memref<9x4x128xbf16, #tpu.memory_space<vmem>>, vector<1x4x128xbf16>
    %31 = vector.shape_cast %30 : vector<1x4x128xbf16> to vector<4x128xbf16>
    %cst_17 = arith.constant dense<0.000000e+00> : vector<256x128xf32>
    %32 = tpu.matmul %29, %31, %cst_17 {dimension_numbers = #tpu.dot_dimension_numbers<[1], [0], [0], [1], [0, 0, 1, 1], [], []>} : vector<256x4xbf16>, vector<4x128xbf16>, vector<256x128xf32> -> vector<256x128xf32>
    %33 = arith.addf %23, %32 : vector<256x128xf32>
    %34 = vector.extract_strided_slice %27 {offsets = [0, 1, 0], sizes = [16, 16, 4], strides = [1, 1, 1]} : vector<16x18x4xbf16> to vector<16x16x4xbf16>
    %35 = vector.shape_cast %34 : vector<16x16x4xbf16> to vector<256x4xbf16>
    %c4 = arith.constant 4 : index
    %c0_18 = arith.constant 0 : index
    %c0_19 = arith.constant 0 : index
    %36 = vector.load %arg3[%c4, %c0_18, %c0_19] : memref<9x4x128xbf16, #tpu.memory_space<vmem>>, vector<1x4x128xbf16>
    %37 = vector.shape_cast %36 : vector<1x4x128xbf16> to vector<4x128xbf16>
    %cst_20 = arith.constant dense<0.000000e+00> : vector<256x128xf32>
    %38 = tpu.matmul %35, %37, %cst_20 {dimension_numbers = #tpu.dot_dimension_numbers<[1], [0], [0], [1], [0, 0, 1, 1], [], []>} : vector<256x4xbf16>, vector<4x128xbf16>, vector<256x128xf32> -> vector<256x128xf32>
    %39 = arith.addf %33, %38 : vector<256x128xf32>
    %40 = vector.extract_strided_slice %27 {offsets = [0, 2, 0], sizes = [16, 16, 4], strides = [1, 1, 1]} : vector<16x18x4xbf16> to vector<16x16x4xbf16>
    %41 = vector.shape_cast %40 : vector<16x16x4xbf16> to vector<256x4xbf16>
    %c5 = arith.constant 5 : index
    %c0_21 = arith.constant 0 : index
    %c0_22 = arith.constant 0 : index
    %42 = vector.load %arg3[%c5, %c0_21, %c0_22] : memref<9x4x128xbf16, #tpu.memory_space<vmem>>, vector<1x4x128xbf16>
    %43 = vector.shape_cast %42 : vector<1x4x128xbf16> to vector<4x128xbf16>
    %cst_23 = arith.constant dense<0.000000e+00> : vector<256x128xf32>
    %44 = tpu.matmul %41, %43, %cst_23 {dimension_numbers = #tpu.dot_dimension_numbers<[1], [0], [0], [1], [0, 0, 1, 1], [], []>} : vector<256x4xbf16>, vector<4x128xbf16>, vector<256x128xf32> -> vector<256x128xf32>
    %45 = arith.addf %39, %44 : vector<256x128xf32>
    %c2_i32 = arith.constant 2 : i32
    %46 = arith.addi %0, %c2_i32 : i32
    %c0_24 = arith.constant 0 : index
    %47 = arith.index_cast %46 : i32 to index
    %c0_25 = arith.constant 0 : index
    %c0_26 = arith.constant 0 : index
    %48 = vector.load %arg2[%c0_24, %47, %c0_25, %c0_26] : memref<1x18x18x4xbf16, #tpu.memory_space<vmem>>, vector<1x16x18x4xbf16>
    %49 = vector.shape_cast %48 : vector<1x16x18x4xbf16> to vector<16x18x4xbf16>
    %50 = vector.extract_strided_slice %49 {offsets = [0, 0, 0], sizes = [16, 16, 4], strides = [1, 1, 1]} : vector<16x18x4xbf16> to vector<16x16x4xbf16>
    %51 = vector.shape_cast %50 : vector<16x16x4xbf16> to vector<256x4xbf16>
    %c6 = arith.constant 6 : index
    %c0_27 = arith.constant 0 : index
    %c0_28 = arith.constant 0 : index
    %52 = vector.load %arg3[%c6, %c0_27, %c0_28] : memref<9x4x128xbf16, #tpu.memory_space<vmem>>, vector<1x4x128xbf16>
    %53 = vector.shape_cast %52 : vector<1x4x128xbf16> to vector<4x128xbf16>
    %cst_29 = arith.constant dense<0.000000e+00> : vector<256x128xf32>
    %54 = tpu.matmul %51, %53, %cst_29 {dimension_numbers = #tpu.dot_dimension_numbers<[1], [0], [0], [1], [0, 0, 1, 1], [], []>} : vector<256x4xbf16>, vector<4x128xbf16>, vector<256x128xf32> -> vector<256x128xf32>
    %55 = arith.addf %45, %54 : vector<256x128xf32>
    %56 = vector.extract_strided_slice %49 {offsets = [0, 1, 0], sizes = [16, 16, 4], strides = [1, 1, 1]} : vector<16x18x4xbf16> to vector<16x16x4xbf16>
    %57 = vector.shape_cast %56 : vector<16x16x4xbf16> to vector<256x4xbf16>
    %c7 = arith.constant 7 : index
    %c0_30 = arith.constant 0 : index
    %c0_31 = arith.constant 0 : index
    %58 = vector.load %arg3[%c7, %c0_30, %c0_31] : memref<9x4x128xbf16, #tpu.memory_space<vmem>>, vector<1x4x128xbf16>
    %59 = vector.shape_cast %58 : vector<1x4x128xbf16> to vector<4x128xbf16>
    %cst_32 = arith.constant dense<0.000000e+00> : vector<256x128xf32>
    %60 = tpu.matmul %57, %59, %cst_32 {dimension_numbers = #tpu.dot_dimension_numbers<[1], [0], [0], [1], [0, 0, 1, 1], [], []>} : vector<256x4xbf16>, vector<4x128xbf16>, vector<256x128xf32> -> vector<256x128xf32>
    %61 = arith.addf %55, %60 : vector<256x128xf32>
    %62 = vector.extract_strided_slice %49 {offsets = [0, 2, 0], sizes = [16, 16, 4], strides = [1, 1, 1]} : vector<16x18x4xbf16> to vector<16x16x4xbf16>
    %63 = vector.shape_cast %62 : vector<16x16x4xbf16> to vector<256x4xbf16>
    %c8 = arith.constant 8 : index
    %c0_33 = arith.constant 0 : index
    %c0_34 = arith.constant 0 : index
    %64 = vector.load %arg3[%c8, %c0_33, %c0_34] : memref<9x4x128xbf16, #tpu.memory_space<vmem>>, vector<1x4x128xbf16>
    %65 = vector.shape_cast %64 : vector<1x4x128xbf16> to vector<4x128xbf16>
    %cst_35 = arith.constant dense<0.000000e+00> : vector<256x128xf32>
    %66 = tpu.matmul %63, %65, %cst_35 {dimension_numbers = #tpu.dot_dimension_numbers<[1], [0], [0], [1], [0, 0, 1, 1], [], []>} : vector<256x4xbf16>, vector<4x128xbf16>, vector<256x128xf32> -> vector<256x128xf32>
    %67 = arith.addf %61, %66 : vector<256x128xf32>
    %c0_36 = arith.constant 0 : index
    %c0_37 = arith.constant 0 : index
    %68 = vector.load %arg4[%c0_36, %c0_37] : memref<1x128xf32, #tpu.memory_space<vmem>>, vector<1x128xf32>
    %69 = vector.broadcast %68 : vector<1x128xf32> to vector<256x128xf32>
    %70 = arith.addf %67, %69 : vector<256x128xf32>
    %cst_38 = arith.constant 0.000000e+00 : f32
    %71 = vector.broadcast %cst_38 : f32 to vector<256x128xf32>
    %72 = arith.maximumf %70, %71 : vector<256x128xf32>
    %c0_39 = arith.constant 0 : index
    %c0_40 = arith.constant 0 : index
    %c0_41 = arith.constant 0 : index
    %73 = vector.load %arg5[%c0_39, %c0_40, %c0_41] : memref<1x256x128xf32, #tpu.memory_space<vmem>>, vector<1x256x128xf32>
    %74 = vector.shape_cast %73 : vector<1x256x128xf32> to vector<256x128xf32>
    %75 = vector.shape_cast %72 : vector<256x128xf32> to vector<1x256x128xf32>
    tpu.vector_store %arg5[%c0_39, %c0_40, %c0_41], %75 {strides = array<i32>} : memref<1x256x128xf32, #tpu.memory_space<vmem>>, vector<1x256x128xf32>,
    return
  }
  func.func @transform_0(%arg0: i32, %arg1: i32) -> (i32, i32, i32, i32) {
    %c0_i32 = arith.constant 0 : i32
    %c0_i32_0 = arith.constant 0 : i32
    %c0_i32_1 = arith.constant 0 : i32
    %c0_i32_2 = arith.constant 0 : i32
    return %arg0, %c0_i32, %c0_i32_0, %c0_i32_1 : i32, i32, i32, i32
  }
  func.func @transform_1(%arg0: i32, %arg1: i32) -> (i32, i32, i32) {
    %c0_i32 = arith.constant 0 : i32
    %c0_i32_0 = arith.constant 0 : i32
    %c0_i32_1 = arith.constant 0 : i32
    %c0_i32_2 = arith.constant 0 : i32
    return %c0_i32, %c0_i32_0, %c0_i32_1 : i32, i32, i32
  }
  func.func @transform_2(%arg0: i32, %arg1: i32) -> (i32, i32) {
    %c0_i32 = arith.constant 0 : i32
    %c0_i32_0 = arith.constant 0 : i32
    %c0_i32_1 = arith.constant 0 : i32
    return %c0_i32, %c0_i32_0 : i32, i32
  }
  func.func @transform_3(%arg0: i32, %arg1: i32) -> (i32, i32, i32) {
    %c0_i32 = arith.constant 0 : i32
    %c0_i32_0 = arith.constant 0 : i32
    return %arg0, %arg1, %c0_i32 : i32, i32, i32
  }
}

</mosaic_0001>

<bundles_post_ra>
// kernel: vanilla_conv_forward.1
= control target key start
LH: loop header
LB: loop body
LE: loop exit
PB: predicated region body
PF: predicated region fallthrough
CT: control target
= control target key end

     0   :  { %s5806_s12 = smov 0   ;;  %s5808_s13 = smov 0   ;;  %s8658_s0 = inlined_call_operand.vmem [shape: bf16[2,18,18,4], index: 0, kind: input, shape index: {}]   ;;  %s8659_s1 = inlined_call_operand.vmem [shape: bf16[9,4,128], index: 1, kind: input, shape index: {}]   ;;  %s8660_s2 = inlined_call_operand.vmem [shape: f32[1,128], index: 2, kind: input, shape index: {}]   ;;  %s8661_s3 = inlined_call_operand.vmem [shape: f32[2,256,128], index: 3, kind: output, shape index: {}]  }
   0x1   :  { %s5810_s14 = smov 0  }
   0x2 LB: > { %s25_s15 = sadd.s32 1, %s5780_s13  ;;  %p4770_p0 = scmp.ge.s32.totalorder %s5784_s14, 1  ;;  %s5784_s14 = sphi %s5810_s14, %s13_s14   ;;  %s5780_s13 = sphi %s5808_s13, %s9134_s13   ;;  %s5776_s12 = sphi %s5806_s12, %s9133_s12  }
   0x3   : > { %p27_p1 = scmp.ge.s32.totalorder %s25_s15, 2  ;;  %p151_p2 = scmp.lt.s32.totalorder %s5784_s14, 3 }
   0x5   : > { %s9136_s15 = smov (%p27_p1, %s25_s15), 0  ;;  %p152_p3 = pnand %p4770_p0, %p151_p2 }
   0x7   : > { %155 = sbr.rel (%p152_p3) target bundleno = 564 (0x234), region = 32 }
   0xc   : > { %v4774_v0 = vld [vmem:[%s8659_s1 + $0x2] sm:$0x3]  ;;  %vm734_vm0 = vcmask 1041408   ;;  %p179_p4 = scmp.lt.s32.totalorder %s5776_s12, 1  ;;  %v247_v2 = vld [vmem:[%s8659_s1] sm:$0x3] }
   0xd   : > { %5680 = vmatprep.subr.msk.bf16.mxu1 %vm734_vm0, %v4774_v0  ;;  %5679 = vmatprep.subr.msk.bf16.mxu0 %vm734_vm0, %v4774_v0  ;;  %v736_v1 = vsel %vm734_vm0, %v4774_v0, 0  ;;  %v4855_v3 = vld [vmem:[%s8659_s1 + $0x4] sm:$0x3]  ;;  %vm248_vm1 = vsmask.f32 3328  ;;  %v5847_v4 = vsel %vm734_vm0, %v247_v2, 0 }
   0xe   : > { %5678 = vmatpush3.bf16.msra.mxu1 %v736_v1  ;;  %5372 = vmatpush3.bf16.msra.mxu0 %v736_v1  ;;  %s9138_s12 = smov (!%p179_p4, %s5776_s12), 1  ;;  %vm249_vm2 = vsmask.f32 7440  ;;  %v5850_v5 = vsel %vm734_vm0, %v4855_v3, 0  ;;  %vm685_vm3 = vcmask 31744   ;;  %v8730_v32 = vmov 0 }
   0xf   : > { %5681 = vmatprep.subr.msk.bf16.mxu1 %vm734_vm0, %v247_v2  ;;  %5682 = vmatprep.subr.msk.bf16.mxu0 %vm734_vm0, %v4855_v3  ;;  %s5689_s22 = smul.u32 216, %s9138_s12  ;;  %vm5889_vm4 = vmor %vm248_vm1, %vm249_vm2  ;;  %vm1207_vm5 = vcmask 1042432   ;;  %vm1208_vm6 = vcmask 1046532   ;;  %s5217_s17 = sshll.u32 %s9138_s12, 8 }
  0x10   : > { %v8731_v32 = vsel %vm5889_vm4, 4294967295, %v8730_v32  ;;  %vm6174_vm7 = vmor %vm1207_vm5, %vm1208_vm6  ;;  %s8507_s19 = scalar_lea.vmem %s8661_s3, %s5217_s17 }
  0x11   : > { %s5844_s25 = scalar_lea.vmem %s8658_s0, %s5689_s22  ;;  %8732 = vst [vmem:[#allocation2_spill] sm:$0xff] %v8731_v32 }
  0x12   : > { %v5853_v6 = vld [vmem:[%s5844_s25] sm:$0xf]  ;;  %v5856_v7 = vld [vmem:[%s5844_s25 + $0x4] sm:$0xf]  ;;  %v5859_v8 = vld [vmem:[%s5844_s25 + $0x8] sm:$0x1] }
  0x13   : > { %v252_v9 = vshrl.u32 %v5853_v6, 16  ;;  %v255_v10 = vshll.u32 %v5853_v6, 16  ;;  %v261_v11 = vshll.u32 %v5856_v7, 16  ;;  %v265_v12 = vshrl.u32 %v5856_v7, 16  ;;  %v5866_v13 = vld [vmem:[%s5844_s25 + $0x60] sm:$0xf] }
  0x14   : > { %v271_v14 = vshll.u32 %v5859_v8, 16  ;;  %v5871_v16 = vld [vmem:[%s5844_s25 + $0x64] sm:$0xf]  ;;  %v5874_v17 = vld [vmem:[%s5844_s25 + $0x68] sm:$0x1]  ;;  %v444_v23 = vshrl.u32 %v5866_v13, 16 }
  0x15   : > { %v254_v18 = vrot.slane %v252_v9, 4  ;;  %v257_v19 = vrot.slane %v255_v10, 5  ;;  %v263_v20 = vrot.slane %v261_v11, 5  ;;  %v267_v21 = vrot.slane %v265_v12, 4  ;;  %v5882_v30 = vld [vmem:[%s5844_s25 + $0xc] sm:$0xf] }
  0x16   : > { %v273_v22 = vrot.slane %v271_v14, 5  ;;  %v447_v24 = vshll.u32 %v5866_v13, 16  ;;  %v453_v25 = vshll.u32 %v5871_v16, 16  ;;  %v457_v28 = vshrl.u32 %v5871_v16, 16  ;;  %v5885_v31 = vld [vmem:[%s5844_s25 + $0x10] sm:$0xf] }
  0x17   : > { %v258_v26 = vor.u32 %v257_v19, %v254_v18  ;;  %v268_v27 = vor.u32 %v267_v21, %v263_v20  ;;  %v463_v29 = vshll.u32 %v5874_v17, 16  ;;  %v446_v33 = vrot.slane %v444_v23, 4  ;;  %v5896_v42 = vld [vmem:[%s5844_s25 + $0x14] sm:$0x1]  ;;  %v5907_v54 = vld [vmem:[%s5844_s25 + $0x6c] sm:$0xf] }
  0x18   : > { %v449_v34 = vrot.slane %v447_v24, 5  ;;  %v455_v35 = vrot.slane %v453_v25, 5  ;;  %v459_v39 = vrot.slane %v457_v28, 4  ;;  %v276_v43 = vshrl.u32 %v5882_v30, 16  ;;  %8733 = vst [vmem:[#allocation3_spill] sm:$0xff] %v5907_v54 }
  0x19   : > { %v259_v37 = vrot.slane %v258_v26, 4  ;;  %v269_v38 = vrot.slane %v268_v27, 4  ;;  %v465_v40 = vrot.slane %v463_v29, 5  ;;  %v279_v44 = vshll.u32 %v5882_v30, 16  ;;  %v5911_v59 = vld [vmem:[%s5844_s25 + $0x70] sm:$0xf] }
  0x1a   : > { %v450_v41 = vor.u32 %v449_v34, %v446_v33  ;;  %v285_v45 = vshll.u32 %v5885_v31, 16  ;;  %v460_v48 = vor.u32 %v459_v39, %v455_v35  ;;  %v289_v49 = vshrl.u32 %v5885_v31, 16  ;;  %v5919_v0 = vld [vmem:[%s5844_s25 + $0x74] sm:$0x1]  ;;  %v5925_v10 = vld [vmem:[%s5844_s25 + $0x18] sm:$0xf] }
  0x1b   : > { %v264_v46 = vsel %vm5889_vm4, %v259_v37, %v263_v20  ;;  %v274_v47 = vsel %vm5889_vm4, %v269_v38, %v273_v22  ;;  %v278_v52 = vrot.slane %v276_v43, 4  ;;  %v281_v53 = vrot.slane %v279_v44, 5  ;;  %8734 = vst [vmem:[#allocation4_spill] sm:$0xff] %v5919_v0  ;;  %v5932_v23 = vld [vmem:[%s5844_s25 + $0x1c] sm:$0xf] }
  0x1c   : > { %v4775_v50 = vcombine.low %v264_v46, %v274_v47  ;;  %v451_v51 = vrot.slane %v450_v41, 4  ;;  %v461_v55 = vrot.slane %v460_v48, 4  ;;  %v287_v56 = vrot.slane %v285_v45, 5  ;;  %v5938_v27 = vld [vmem:[%s5844_s25 + $0x20] sm:$0x1] }
  0x1d   : > { %v291_v57 = vrot.slane %v289_v49, 4  ;;  %v295_v58 = vshll.u32 %v5896_v42, 16  ;;  %v282_v61 = vor.u32 %v281_v53, %v278_v52  ;;  %v468_v9 = vshrl.u32 %v5907_v54, 16  ;;  %v5945_v37 = vld [vmem:[%s5844_s25 + $0x78] sm:$0xf] }
  0x1e   : > { %5373 = vmatprep.mubr.msk.bf16.mxu0 %vm685_vm3, %v4775_v50  ;;  %v456_v60 = vsel %vm5889_vm4, %v451_v51, %v455_v35  ;;  %v466_v1 = vsel %vm5889_vm4, %v461_v55, %v465_v40  ;;  %v471_v14 = vshll.u32 %v5907_v54, 16  ;;  %v477_v18 = vshll.u32 %v5911_v59, 16  ;;  %8735 = vst [vmem:[#allocation5_spill] sm:$0xff] %v5945_v37  ;;  %v5951_v43 = vld [vmem:[%s8659_s1 + $0x8] sm:$0x3] }
  0x1f   : > { %v292_v2 = vor.u32 %v291_v57, %v287_v56  ;;  %v297_v3 = vrot.slane %v295_v58, 5  ;;  %v4783_v11 = vcombine.low %v456_v60, %v466_v1  ;;  %v283_v12 = vrot.slane %v282_v61, 4  ;;  %v5956_v48 = vld [vmem:[%s5844_s25 + $0x7c] sm:$0xf]  ;;  %v5963_v58 = vld [vmem:[%s5844_s25 + $0x80] sm:$0x1] }
  0x20   : > { %v470_v20 = vrot.slane %v468_v9, 4  ;;  %v481_v21 = vshrl.u32 %v5911_v59, 16  ;;  %v487_v22 = vshll.u32 %v5919_v0, 16  ;;  %v473_v25 = vrot.slane %v471_v14, 5  ;;  %8736 = vst [vmem:[#allocation6_spill] sm:$0xff] %v5956_v48  ;;  %8737 = vst [vmem:[#allocation7_spill] sm:$0xff] %v5963_v58 }
  0x21   : > { %v293_v19 = vrot.slane %v292_v2, 4  ;;  %5389 = vmatprep.mubr.msk.bf16.mxu1 %vm685_vm3, %v4783_v11  ;;  %v288_v24 = vsel %vm5889_vm4, %v283_v12, %v287_v56  ;;  %v479_v26 = vrot.slane %v477_v18, 5  ;;  %v300_v28 = vshrl.u32 %v5925_v10, 16  ;;  %v5977_v14 = vld [vmem:[%s5844_s25 + $0x28] sm:$0xf] }
  0x22   : > { %v483_v33 = vrot.slane %v481_v21, 4  ;;  %v489_v34 = vrot.slane %v487_v22, 5  ;;  %v303_v35 = vshll.u32 %v5925_v10, 16  ;;  %v474_v39 = vor.u32 %v473_v25, %v470_v20  ;;  %v5983_v22 = vld [vmem:[%s8659_s1 + $0x6] sm:$0x3] }
  0x23   : > { %v298_v29 = vsel %vm5889_vm4, %v293_v19, %v297_v3  ;;  %v302_v40 = vrot.slane %v300_v28, 4  ;;  %v309_v41 = vshll.u32 %v5932_v23, 16  ;;  %v313_v46 = vshrl.u32 %v5932_v23, 16  ;;  %v5969_v3 = vld [vmem:[%s5844_s25 + $0x24] sm:$0xf] }
  0x24   : > { %v4776_v38 = vcombine.low %v288_v24, %v298_v29  ;;  %v484_v44 = vor.u32 %v483_v33, %v479_v26  ;;  %v305_v45 = vrot.slane %v303_v35, 5  ;;  %v319_v47 = vshll.u32 %v5938_v27, 16  ;;  %v5988_v28 = vld [vmem:[%s5844_s25 + $0x2c] sm:$0x1] }
  0x25   : > { %v475_v49 = vrot.slane %v474_v39, 4  ;;  %v311_v50 = vrot.slane %v309_v41, 5  ;;  %v492_v51 = vshrl.u32 %v5945_v37, 16  ;;  %v495_v52 = vshll.u32 %v5945_v37, 16  ;;  %v5995_v39 = vld [vmem:[%s5844_s25 + $0x84] sm:$0xf] }
  0x26   : > { %5374 = vmatmul.mubr.msk.bf16.vlgmr.msra.gmra.mxu0 %vm685_vm3, %v4776_v38  ;;  %v485_v53 = vrot.slane %v484_v44, 4  ;;  %v306_v55 = vor.u32 %v305_v45, %v302_v40  ;;  %v315_v56 = vrot.slane %v313_v46, 4  ;;  %v321_v57 = vrot.slane %v319_v47, 5  ;;  %v6002_v46 = vld [vmem:[%s5844_s25 + $0x88] sm:$0xf] }
  0x27   : > { %5440 = vmatpush3.bf16.msra.mxu0 %v5850_v5  ;;  %v480_v60 = vsel %vm5889_vm4, %v475_v49, %v479_v26  ;;  %v494_v61 = vrot.slane %v492_v51, 4  ;;  %v497_v1 = vrot.slane %v495_v52, 5  ;;  %v501_v2 = vshll.u32 %v5956_v48, 16 }
  0x28   : > { %5684 = vmatprep.subr.msk.bf16.mxu0 %vm734_vm0, %v5951_v43  ;;  %v490_v5 = vsel %vm5889_vm4, %v485_v53, %v489_v34  ;;  %v307_v9 = vrot.slane %v306_v55, 4  ;;  %v316_v11 = vor.u32 %v315_v56, %v311_v50  ;;  %v505_v12 = vshrl.u32 %v5956_v48, 16  ;;  %v6010_v55 = vld [vmem:[%s5844_s25 + $0x8c] sm:$0x1]  ;;  %v6141_v48 = vld [vmem:[%s5844_s25 + $0x5c] sm:$0x1] }
  0x29   : > { %v4784_v18 = vcombine.low %v480_v60, %v490_v5  ;;  %v498_v19 = vor.u32 %v497_v1, %v494_v61  ;;  %v503_v20 = vrot.slane %v501_v2, 5  ;;  %v511_v21 = vshll.u32 %v5963_v58, 16  ;;  %v6018_v2 = vld [vmem:[%s5844_s25 + $0x30] sm:$0xf] }
  0x2a   : > { %v312_v24 = vsel %vm5889_vm4, %v307_v9, %v311_v50  ;;  %v317_v25 = vrot.slane %v316_v11, 4  ;;  %v507_v26 = vrot.slane %v505_v12, 4  ;;  %v324_v29 = vshrl.u32 %v5969_v3, 16 }
  0x2b   : > { %5390 = vmatmul.mubr.msk.bf16.vlgmr.msra.gmra.mxu1 %vm685_vm3, %v4784_v18  ;;  %v499_v33 = vrot.slane %v498_v19, 4  ;;  %v513_v34 = vrot.slane %v511_v21, 5  ;;  %v327_v35 = vshll.u32 %v5969_v3, 16  ;;  %v333_v38 = vshll.u32 %v5977_v14, 16  ;;  %v6023_v18 = vld [vmem:[%s5844_s25 + $0x34] sm:$0xf] }
  0x2c   : > { %5406 = vmatpush3.bf16.msra.mxu1 %v5847_v4  ;;  %v322_v40 = vsel %vm5889_vm4, %v317_v25, %v321_v57  ;;  %v508_v41 = vor.u32 %v507_v26, %v503_v20  ;;  %v326_v44 = vrot.slane %v324_v29, 4  ;;  %v337_v45 = vshrl.u32 %v5977_v14, 16 }
  0x2d   : > { %v4777_v47 = vcombine.low %v312_v24, %v322_v40  ;;  %v504_v49 = vsel %vm5889_vm4, %v499_v33, %v503_v20  ;;  %v329_v50 = vrot.slane %v327_v35, 5  ;;  %v335_v51 = vrot.slane %v333_v38, 5  ;;  %5683 = vmatprep.subr.msk.bf16.mxu1 %vm734_vm0, %v5983_v22  ;;  %v6031_v38 = vld [vmem:[%s5844_s25 + $0x38] sm:$0x1] }
  0x2e   : > { %v509_v4 = vrot.slane %v508_v41, 4  ;;  %v339_v52 = vrot.slane %v337_v45, 4  ;;  %v343_v53 = vshll.u32 %v5988_v28, 16  ;;  %v516_v56 = vshrl.u32 %v5995_v39, 16 }
  0x2f   : > { %5377 = vmatprep.mubr.msk.bf16.mxu0 %vm685_vm3, %v4777_v47  ;;  %v330_v57 = vor.u32 %v329_v50, %v326_v44  ;;  %v519_v60 = vshll.u32 %v5995_v39, 16  ;;  %v525_v61 = vshll.u32 %v6002_v46, 16  ;;  %v529_v1 = vshrl.u32 %v6002_v46, 16  ;;  %v6036_v44 = vld [vmem:[%s5844_s25 + $0x90] sm:$0xf] }
  0x30   : > { %v514_v5 = vsel %vm5889_vm4, %v509_v4, %v513_v34  ;;  %v340_v9 = vor.u32 %v339_v52, %v335_v51  ;;  %v345_v11 = vrot.slane %v343_v53, 5  ;;  %v518_v12 = vrot.slane %v516_v56, 4  ;;  %v6041_v4 = vld [vmem:[%s5844_s25 + $0x94] sm:$0xf] }
  0x31   : > { %v4785_v19 = vcombine.low %v504_v49, %v514_v5  ;;  %v331_v20 = vrot.slane %v330_v57, 4  ;;  %v521_v21 = vrot.slane %v519_v60, 5  ;;  %v527_v24 = vrot.slane %v525_v61, 5 }
  0x32   : > { %v341_v25 = vrot.slane %v340_v9, 4  ;;  %v531_v26 = vrot.slane %v529_v1, 4  ;;  %v535_v29 = vshll.u32 %v6010_v55, 16  ;;  %v348_v33 = vshrl.u32 %v6018_v2, 16 }
  0x33   : > { %5393 = vmatprep.mubr.msk.bf16.mxu1 %vm685_vm3, %v4785_v19  ;;  %v336_v34 = vsel %vm5889_vm4, %v331_v20, %v335_v51  ;;  %v522_v35 = vor.u32 %v521_v21, %v518_v12  ;;  %v351_v40 = vshll.u32 %v6018_v2, 16  ;;  %v357_v41 = vshll.u32 %v6023_v18, 16  ;;  %v6055_v20 = vld [vmem:[%s5844_s25 + $0x3c] sm:$0xf] }
  0x34   : > { %v346_v45 = vsel %vm5889_vm4, %v341_v25, %v345_v11  ;;  %v532_v47 = vor.u32 %v531_v26, %v527_v24  ;;  %v537_v49 = vrot.slane %v535_v29, 5  ;;  %v350_v50 = vrot.slane %v348_v33, 4  ;;  %v6050_v11 = vld [vmem:[%s5844_s25 + $0x98] sm:$0x1]  ;;  %v6060_v33 = vld [vmem:[%s5844_s25 + $0x40] sm:$0xf] }
  0x35   : > { %v4778_v51 = vcombine.low %v336_v34, %v346_v45  ;;  %v523_v52 = vrot.slane %v522_v35, 4  ;;  %v353_v53 = vrot.slane %v351_v40, 5  ;;  %v359_v56 = vrot.slane %v357_v41, 5 }
  0x36   : > { %v533_v57 = vrot.slane %v532_v47, 4  ;;  %v361_v60 = vshrl.u32 %v6023_v18, 16  ;;  %v367_v61 = vshll.u32 %v6031_v38, 16  ;;  %v540_v1 = vshrl.u32 %v6036_v44, 16 }
  0x37   : > { %5378 = vmatmul.mubr.msk.bf16.gmra.mxu0 %vm685_vm3, %v4778_v51  ;;  %v528_v5 = vsel %vm5889_vm4, %v523_v52, %v527_v24  ;;  %v354_v9 = vor.u32 %v353_v53, %v350_v50  ;;  %v543_v12 = vshll.u32 %v6036_v44, 16  ;;  %v549_v19 = vshll.u32 %v6041_v4, 16  ;;  %v6069_v52 = vld [vmem:[%s5844_s25 + $0x44] sm:$0x1] }
  0x38   : > { %v538_v21 = vsel %vm5889_vm4, %v533_v57, %v537_v49  ;;  %v363_v25 = vrot.slane %v361_v60, 4  ;;  %v369_v26 = vrot.slane %v367_v61, 5  ;;  %v542_v29 = vrot.slane %v540_v1, 4  ;;  %v6074_v60 = vld [vmem:[%s5844_s25 + $0x9c] sm:$0xf] }
  0x39   : > { %v4786_v24 = vcombine.low %v528_v5, %v538_v21  ;;  %v355_v34 = vrot.slane %v354_v9, 4  ;;  %v545_v35 = vrot.slane %v543_v12, 5  ;;  %v551_v40 = vrot.slane %v549_v19, 5  ;;  %8738 = vst [vmem:[#allocation8_spill] sm:$0xff] %v6074_v60 }
  0x3a   : > { %v364_v41 = vor.u32 %v363_v25, %v359_v56  ;;  %v553_v45 = vshrl.u32 %v6041_v4, 16  ;;  %v559_v47 = vshll.u32 %v6050_v11, 16  ;;  %v372_v50 = vshrl.u32 %v6055_v20, 16 }
  0x3b   : > { %5394 = vmatmul.mubr.msk.bf16.gmra.mxu1 %vm685_vm3, %v4786_v24  ;;  %v360_v49 = vsel %vm5889_vm4, %v355_v34, %v359_v56  ;;  %v546_v51 = vor.u32 %v545_v35, %v542_v29  ;;  %v375_v53 = vshll.u32 %v6055_v20, 16  ;;  %v381_v57 = vshll.u32 %v6060_v33, 16  ;;  %v6081_v34 = vld [vmem:[%s5844_s25 + $0xa0] sm:$0xf] }
  0x3c   : > { %v365_v61 = vrot.slane %v364_v41, 4  ;;  %v555_v1 = vrot.slane %v553_v45, 4  ;;  %v561_v5 = vrot.slane %v559_v47, 5  ;;  %v374_v9 = vrot.slane %v372_v50, 4 }
  0x3d   : > { %v547_v12 = vrot.slane %v546_v51, 4  ;;  %v377_v19 = vrot.slane %v375_v53, 5  ;;  %v383_v21 = vrot.slane %v381_v57, 5  ;;  %v385_v56 = vshrl.u32 %v6060_v33, 16  ;;  %v6087_v51 = vld [vmem:[%s5844_s25 + $0xa4] sm:$0x1] }
  0x3e   : > { %v370_v25 = vsel %vm5889_vm4, %v365_v61, %v369_v26  ;;  %v556_v29 = vor.u32 %v555_v1, %v551_v40  ;;  %v391_v24 = vshll.u32 %v6069_v52, 16  ;;  %v564_v35 = vshrl.u32 %v6074_v60, 16  ;;  %8739 = vst [vmem:[#allocation9_spill] sm:$0xff] %v6087_v51  ;;  %v6090_v53 = vld [vmem:[%s5844_s25 + $0x48] sm:$0xf] }
  0x3f   : > { %v4779_v41 = vcombine.low %v360_v49, %v370_v25  ;;  %v552_v45 = vsel %vm5889_vm4, %v547_v12, %v551_v40  ;;  %v378_v47 = vor.u32 %v377_v19, %v374_v9  ;;  %v387_v50 = vrot.slane %v385_v56, 4  ;;  %v6100_v56 = vld [vmem:[%s5844_s25 + $0x4c] sm:$0xf] }
  0x40   : > { %v557_v57 = vrot.slane %v556_v29, 4  ;;  %v393_v26 = vrot.slane %v391_v24, 5  ;;  %v566_v61 = vrot.slane %v564_v35, 4  ;;  %v567_v1 = vshll.u32 %v6074_v60, 16 }
  0x41   : > { %5381 = vmatprep.mubr.msk.bf16.mxu0 %vm685_vm3, %v4779_v41  ;;  %v379_v36 = vrot.slane %v378_v47, 4  ;;  %v388_v49 = vor.u32 %v387_v50, %v383_v21  ;;  %v573_v25 = vshll.u32 %v6081_v34, 16  ;;  %v577_v40 = vshrl.u32 %v6081_v34, 16  ;;  %v6106_v50 = vld [vmem:[%s5844_s25 + $0x50] sm:$0x1] }
  0x42   : > { %v562_v9 = vsel %vm5889_vm4, %v557_v57, %v561_v5  ;;  %v569_v12 = vrot.slane %v567_v1, 5  ;;  %v583_v19 = vshll.u32 %v6087_v51, 16  ;;  %v396_v29 = vshrl.u32 %v6090_v53, 16  ;;  %v6109_v57 = vld [vmem:[%s5844_s25 + $0xa8] sm:$0xf] }
  0x43   : > { %v4787_v24 = vcombine.low %v552_v45, %v562_v9  ;;  %v384_v35 = vsel %vm5889_vm4, %v379_v36, %v383_v21  ;;  %v389_v41 = vrot.slane %v388_v49, 4  ;;  %v575_v47 = vrot.slane %v573_v25, 5  ;;  %8740 = vst [vmem:[#allocation10_spill] sm:$0xff] %v6109_v57  ;;  %v6119_v9 = vld [vmem:[%s5844_s25 + $0xac] sm:$0xf] }
  0x44   : > { %v570_v63 = vor.u32 %v569_v12, %v566_v61  ;;  %v579_v15 = vrot.slane %v577_v40, 4  ;;  %v585_v62 = vrot.slane %v583_v19, 5  ;;  %v398_v5 = vrot.slane %v396_v29, 4  ;;  %8741 = vst [vmem:[#allocation11_spill] sm:$0xff] %v6119_v9 }
  0x45   : > { %5397 = vmatprep.mubr.msk.bf16.mxu1 %vm685_vm3, %v4787_v24  ;;  %v394_v45 = vsel %vm5889_vm4, %v389_v41, %v393_v26  ;;  %v399_v1 = vshll.u32 %v6090_v53, 16  ;;  %v405_v36 = vshll.u32 %v6100_v56, 16  ;;  %v409_v21 = vshrl.u32 %v6100_v56, 16  ;;  %v6122_v24 = vld [vmem:[%s5844_s25 + $0xb0] sm:$0x1] }
  0x46   : > { %v4780_v49 = vcombine.low %v384_v35, %v394_v45  ;;  %v571_v25 = vrot.slane %v570_v63, 4  ;;  %v580_v61 = vor.u32 %v579_v15, %v575_v47  ;;  %v415_v40 = vshll.u32 %v6106_v50, 16  ;;  %8742 = vst [vmem:[#allocation12_spill] sm:$0xff] %v6122_v24 }
  0x47   : > { %v401_v12 = vrot.slane %v399_v1, 5  ;;  %v407_v19 = vrot.slane %v405_v36, 5  ;;  %v411_v29 = vrot.slane %v409_v21, 4  ;;  %v588_v26 = vshrl.u32 %v6109_v57, 16  ;;  %v6131_v36 = vld [vmem:[%s5844_s25 + $0x54] sm:$0xf] }
  0x48   : > { %5382 = vmatmul.mubr.msk.bf16.gmra.mxu0 %vm685_vm3, %v4780_v49  ;;  %v576_v35 = vsel %vm5889_vm4, %v571_v25, %v575_v47  ;;  %v581_v63 = vrot.slane %v580_v61, 4  ;;  %v417_v15 = vrot.slane %v415_v40, 5  ;;  %v591_v41 = vshll.u32 %v6109_v57, 16  ;;  %v6138_v61 = vld [vmem:[%s5844_s25 + $0x58] sm:$0xf] }
  0x49   : > { %v402_v45 = vor.u32 %v401_v12, %v398_v5  ;;  %v412_v58 = vor.u32 %v411_v29, %v407_v19  ;;  %v590_v37 = vrot.slane %v588_v26, 4  ;;  %v597_v1 = vshll.u32 %v6119_v9, 16 }
  0x4a   : > { %v586_v21 = vsel %vm5889_vm4, %v581_v63, %v585_v62  ;;  %v593_v49 = vrot.slane %v591_v41, 5  ;;  %v601_v47 = vshrl.u32 %v6119_v9, 16  ;;  %v607_v25 = vshll.u32 %v6122_v24, 16  ;;  %v6165_v24 = vld [vmem:[%s5844_s25 + $0xbc] sm:$0x1] }
  0x4b   : > { %v4788_v5 = vcombine.low %v576_v35, %v586_v21  ;;  %v403_v40 = vrot.slane %v402_v45, 4  ;;  %v413_v12 = vrot.slane %v412_v58, 4  ;;  %v599_v29 = vrot.slane %v597_v1, 5  ;;  %v6152_v45 = vld [vmem:[%s5844_s25 + $0xb4] sm:$0xf] }
  0x4c   : > { %v594_v26 = vor.u32 %v593_v49, %v590_v37  ;;  %v603_v0 = vrot.slane %v601_v47, 4  ;;  %v609_v54 = vrot.slane %v607_v25, 5  ;;  %v420_v62 = vshrl.u32 %v6131_v36, 16  ;;  %8743 = vst [vmem:[#allocation13_spill] sm:$0xff] %v6152_v45  ;;  %v6155_v47 = vld [vmem:[%s5844_s25 + $0xb8] sm:$0xf] }
  0x4d   : > { %5398 = vmatmul.mubr.msk.bf16.gmra.mxu1 %vm685_vm3, %v4788_v5  ;;  %v408_v63 = vsel %vm5889_vm4, %v403_v40, %v407_v19  ;;  %v418_v41 = vsel %vm5889_vm4, %v413_v12, %v417_v15  ;;  %v423_v35 = vshll.u32 %v6131_v36, 16  ;;  %v429_v58 = vshll.u32 %v6138_v61, 16 }
  0x4e   : > { %v4781_v37 = vcombine.low %v408_v63, %v418_v41  ;;  %v595_v1 = vrot.slane %v594_v26, 4  ;;  %v604_v21 = vor.u32 %v603_v0, %v599_v29  ;;  %v422_v49 = vrot.slane %v420_v62, 4 }
  0x4f   : > { %v425_v25 = vrot.slane %v423_v35, 5  ;;  %v431_v5 = vrot.slane %v429_v58, 5  ;;  %v433_v19 = vshrl.u32 %v6138_v61, 16  ;;  %v439_v40 = vshll.u32 %v6141_v48, 16 }
  0x50   : > { %5385 = vmatprep.mubr.msk.bf16.mxu0 %vm685_vm3, %v4781_v37  ;;  %v600_v15 = vsel %vm5889_vm4, %v595_v1, %v599_v29  ;;  %v605_v12 = vrot.slane %v604_v21, 4  ;;  %v612_v63 = vshrl.u32 %v6152_v45, 16  ;;  %v615_v26 = vshll.u32 %v6152_v45, 16 }
  0x51   : > { %v426_v0 = vor.u32 %v425_v25, %v422_v49  ;;  %v435_v62 = vrot.slane %v433_v19, 4  ;;  %v441_v41 = vrot.slane %v439_v40, 5  ;;  %v621_v35 = vshll.u32 %v6155_v47, 16 }
  0x52   : > { %v610_v58 = vsel %vm5889_vm4, %v605_v12, %v609_v54  ;;  %v614_v57 = vrot.slane %v612_v63, 4  ;;  %v617_v37 = vrot.slane %v615_v26, 5  ;;  %v625_v9 = vshrl.u32 %v6155_v47, 16 }
  0x53   : > { %v4789_v29 = vcombine.low %v600_v15, %v610_v58  ;;  %v427_v1 = vrot.slane %v426_v0, 4  ;;  %v436_v21 = vor.u32 %v435_v62, %v431_v5  ;;  %v623_v51 = vrot.slane %v621_v35, 5 }
  0x54   : > { %v618_v60 = vor.u32 %v617_v37, %v614_v57  ;;  %v627_v45 = vrot.slane %v625_v9, 4  ;;  %v631_v49 = vshll.u32 %v6165_v24, 16  ;;  %v8744_v25 = vmov 0 }
  0x55   : > { %v8745_v25 = vsel %vm6174_vm7, 4294967295, %v8744_v25  ;;  %v4839_v54 = vrot.slane %v5853_v6, 9  ;;  %5401 = vmatprep.mubr.msk.bf16.mxu1 %vm685_vm3, %v4789_v29  ;;  %v432_v19 = vsel %vm5889_vm4, %v427_v1, %v431_v5  ;;  %v437_v40 = vrot.slane %v436_v21, 4 }
  0x56   : > { %8746 = vst [vmem:[#allocation14_spill] sm:$0xff] %v8745_v25  ;;  %v1212_v15 = vrot.slane %v5856_v7, 5  ;;  %v4808_v57 = vcombine.low %v5882_v30, %v5885_v31  ;;  %v619_v9 = vrot.slane %v618_v60, 4  ;;  %v628_v12 = vor.u32 %v627_v45, %v623_v51 }
  0x57   : > { %v633_v63 = vrot.slane %v631_v49, 5  ;;  %v4840_v26 = vrot.slane %v5882_v30, 9  ;;  %v442_v0 = vsel %vm5889_vm4, %v437_v40, %v441_v41  ;;  %v8747_v5 = vrot.slane %v5885_v31, 5 }
  0x58   : > { %v1213_v62 = vsel %vm6174_vm7, %v4839_v54, %v1212_v15  ;;  %v1214_v35 = vrot.slane %v1212_v15, 4  ;;  %v4782_v37 = vcombine.low %v432_v19, %v442_v0  ;;  %v624_v29 = vsel %vm5889_vm4, %v619_v9, %v623_v51 }
  0x59   : > { %v1221_v58 = vrot.slane %v8747_v5, 4  ;;  %v629_v1 = vrot.slane %v628_v12, 4  ;;  %v8748_v60 = vmov %v8747_v5  ;;  %v8749_v45 = vrot.slane %v5859_v8, 5 }
  0x5a   : > { %v1220_v30 = vsel %vm6174_vm7, %v4840_v26, %v8748_v60  ;;  %v8750_v21 = vrot.slane %v5896_v42, 5  ;;  %v4809_v54 = vcombine.low %v5925_v10, %v5932_v23  ;;  %v4841_v51 = vrot.slane %v5925_v10, 9  ;;  %5386 = vmatmul.mubr.msk.bf16.gmra.mxu0 %vm685_vm3, %v4782_v37 }
  0x5b   : > { %v1216_v41 = vsel %vm6174_vm7, %v1214_v35, %v8749_v45  ;;  %v634_v31 = vsel %vm5889_vm4, %v629_v1, %v633_v63  ;;  %v1226_v40 = vrot.slane %v5932_v23, 5  ;;  %v1229_v42 = vrot.slane %v5938_v27, 5 }
  0x5c   : > { %v1223_v49 = vsel %vm6174_vm7, %v1221_v58, %v8750_v21  ;;  %v4856_v19 = vcombine.low %v1213_v62, %v1216_v41  ;;  %v4790_v15 = vcombine.low %v624_v29, %v634_v31  ;;  %v1233_v10 = vrot.slane %v5977_v14, 5  ;;  %v6258_v31 = vld [vmem:[%s8659_s1 + $0xa] sm:$0x3] }
  0x5d   : > { %v4857_v8 = vcombine.low %v1220_v30, %v1223_v49  ;;  %v1227_v9 = vsel %vm6174_vm7, %v4841_v51, %v1226_v40  ;;  %v1228_v12 = vrot.slane %v1226_v40, 4  ;;  %v4842_v26 = vrot.slane %v5969_v3, 9 }
  0x5e   : > { %5441 = vmatprep.mubr.msk.bf16.mxu0 %vm685_vm3, %v4856_v19  ;;  %5402 = vmatmul.mubr.msk.bf16.gmra.mxu1 %vm685_vm3, %v4790_v15  ;;  %v4843_v63 = vrot.slane %v6018_v2, 9  ;;  %v1240_v0 = vrot.slane %v6023_v18, 5  ;;  %v8751_v23 = vcombine.low %v5853_v6, %v5856_v7  ;;  %v1235_v62 = vrot.slane %v1233_v10, 4 }
  0x5f   : > { %v1230_v27 = vsel %vm6174_vm7, %v1228_v12, %v1229_v42  ;;  %v1236_v35 = vrot.slane %v5988_v28, 5  ;;  %v1243_v5 = vrot.slane %v6031_v38, 5  ;;  %v2477_v29 = vsel %vm734_vm0, %v5951_v43, 0  ;;  %v6243_v38 = vld [vmem:[%s8659_s1 + $0xc] sm:$0x3] }
  0x60   : > { %5407 = vmatprep.mubr.msk.bf16.mxu1 %vm685_vm3, %v8751_v23  ;;  %v4858_v58 = vcombine.low %v1227_v9, %v1230_v27  ;;  %v1242_v37 = vrot.slane %v1240_v0, 4  ;;  %v1247_v1 = vrot.slane %v6060_v33, 5  ;;  %v1799_v6 = vsel %vm734_vm0, %v5983_v22, 0 }
  0x61   : > { %v1234_v7 = vsel %vm6174_vm7, %v4842_v26, %v1233_v10  ;;  %v1241_v60 = vsel %vm6174_vm7, %v4843_v63, %v1240_v0  ;;  %v1254_v28 = vrot.slane %v6100_v56, 5  ;;  %v1237_v43 = vsel %vm6174_vm7, %v1235_v62, %v1236_v35 }
  0x62   : > { %5442 = vmatmul.mubr.msk.bf16.vlgmr.msra.gmra.mxu0 %vm685_vm3, %v4857_v8  ;;  %v1244_v22 = vsel %vm6174_vm7, %v1242_v37, %v1243_v5  ;;  %v4844_v30 = vrot.slane %v6055_v20, 9  ;;  %v1250_v45 = vrot.slane %v6069_v52, 5  ;;  %v1249_v41 = vrot.slane %v1247_v1, 4 }
  0x63   : > { %5508 = vmatpush3.bf16.msra.mxu0 %v2477_v29  ;;  %5445 = vmatprep.mubr.msk.bf16.mxu0 %vm685_vm3, %v4858_v58  ;;  %v4845_v21 = vrot.slane %v6090_v53, 9  ;;  %v1256_v49 = vrot.slane %v1254_v28, 4  ;;  %v1257_v51 = vrot.slane %v6106_v50, 5  ;;  %v4859_v52 = vcombine.low %v1234_v7, %v1237_v43  ;;  %v8752_v29 = vld [vmem:[#allocation8_spill] sm:$0xff] }
  0x64   : > { %5686 = vmatprep.subr.msk.bf16.mxu0 %vm734_vm0, %v6243_v38  ;;  %v4860_v19 = vcombine.low %v1241_v60, %v1244_v22  ;;  %v1248_v8 = vsel %vm6174_vm7, %v4844_v30, %v1247_v1  ;;  %v1251_v50 = vsel %vm6174_vm7, %v1249_v41, %v1250_v45  ;;  %v1261_v42 = vrot.slane %v6138_v61, 5  ;;  %v8753_v30 = vld [vmem:[#allocation9_spill] sm:$0xff]  ;;  %v8754_v41 = vld [vmem:[#allocation11_spill] sm:$0xff] }
  0x65   : > { %v1255_v40 = vsel %vm6174_vm7, %v4845_v21, %v1254_v28  ;;  %v1258_v15 = vsel %vm6174_vm7, %v1256_v49, %v1257_v51  ;;  %v4847_v9 = vrot.slane %v5866_v13, 9  ;;  %v1268_v12 = vrot.slane %v5871_v16, 5  ;;  %v8755_v21 = vld [vmem:[#allocation10_spill] sm:$0xff]  ;;  %v6471_v49 = vld [vmem:[%s5844_s25 + $0x2c] sm:$0x1] }
  0x66   : > { %5408 = vmatmul.mubr.msk.bf16.vlgmr.msra.gmra.mxu1 %vm685_vm3, %v4808_v57  ;;  %v1271_v57 = vrot.slane %v5874_v17, 5  ;;  %v4810_v10 = vcombine.low %v5969_v3, %v5977_v14  ;;  %v4811_v26 = vcombine.low %v6018_v2, %v6023_v18  ;;  %v4812_v63 = vcombine.low %v6055_v20, %v6060_v33 }
  0x67   : > { %5474 = vmatpush3.bf16.msra.mxu1 %v1799_v6  ;;  %5411 = vmatprep.mubr.msk.bf16.mxu1 %vm685_vm3, %v4809_v54  ;;  %v4846_v54 = vrot.slane %v6131_v36, 9  ;;  %v4813_v0 = vcombine.low %v6090_v53, %v6100_v56  ;;  %v4861_v17 = vcombine.low %v1248_v8, %v1251_v50  ;;  %v4862_v23 = vcombine.low %v1255_v40, %v1258_v15  ;;  %v8756_v8 = vld [vmem:[#allocation12_spill] sm:$0xff] }
  0x68   : > { %5685 = vmatprep.subr.msk.bf16.mxu1 %vm734_vm0, %v6258_v31  ;;  %v1264_v27 = vrot.slane %v6141_v48, 5  ;;  %v1263_v3 = vrot.slane %v1261_v42, 4  ;;  %v4850_v14 = vrot.slane %v5995_v39, 9  ;;  %v1289_v2 = vrot.slane %v6002_v46, 5 }
  0x69   : > { %v1292_v18 = vrot.slane %v6010_v55, 5  ;;  %v1262_v20 = vsel %vm6174_vm7, %v4846_v54, %v1261_v42  ;;  %v1269_v33 = vsel %vm6174_vm7, %v4847_v9, %v1268_v12  ;;  %v1270_v53 = vrot.slane %v1268_v12, 4  ;;  %v8757_v54 = vld [vmem:[#allocation13_spill] sm:$0xff] }
  0x6a   : > { %5446 = vmatmul.mubr.msk.bf16.gmra.mxu0 %vm685_vm3, %v4859_v52  ;;  %v6304_v56 = vsel %vm6174_vm7, %v4850_v14, %v1289_v2  ;;  %v1291_v35 = vrot.slane %v1289_v2, 4  ;;  %v4851_v5 = vrot.slane %v6036_v44, 9  ;;  %v1296_v55 = vrot.slane %v6041_v4, 5 }
  0x6b   : > { %5449 = vmatprep.mubr.msk.bf16.mxu0 %vm685_vm3, %v4860_v19  ;;  %v1275_v58 = vrot.slane %v5911_v59, 5  ;;  %v1299_v37 = vrot.slane %v6050_v11, 5  ;;  %v4852_v6 = vrot.slane %v8752_v29, 9  ;;  %v1265_v7 = vsel %vm6174_vm7, %v1263_v3, %v1264_v27  ;;  %v8758_v3 = vld [vmem:[#allocation6_spill] sm:$0xff] }
  0x6c   : > { %v6318_v60 = vsel %vm6174_vm7, %v1291_v35, %v1292_v18  ;;  %v6322_v28 = vsel %vm6174_vm7, %v4851_v5, %v1296_v55  ;;  %v1298_v43 = vrot.slane %v1296_v55, 4  ;;  %v1303_v22 = vrot.slane %v6081_v34, 5  ;;  %v6477_v11 = vld [vmem:[%s5844_s25 + $0x40] sm:$0xf] }
  0x6d   : > { %v1306_v45 = vrot.slane %v8753_v30, 5  ;;  %v4853_v52 = vrot.slane %v8755_v21, 9  ;;  %v1310_v19 = vrot.slane %v8754_v41, 5  ;;  %v1313_v50 = vrot.slane %v8756_v8, 5  ;;  %v8762_v8 = vld [vmem:[#allocation7_spill] sm:$0xff]  ;;  %8766 = vst [vmem:[#allocation10_spill] sm:$0xff] %v6477_v11 }
  0x6e   : > { %5412 = vmatmul.mubr.msk.bf16.gmra.mxu1 %vm685_vm3, %v4810_v10  ;;  %v6332_v51 = vsel %vm6174_vm7, %v1298_v43, %v1299_v37  ;;  %v6342_v15 = vsel %vm6174_vm7, %v4852_v6, %v1303_v22  ;;  %v1305_v42 = vrot.slane %v1303_v22, 4  ;;  %v1272_v27 = vsel %vm6174_vm7, %v1270_v53, %v1271_v57  ;;  %v8760_v43 = vld [vmem:[#allocation4_spill] sm:$0xff] }
  0x6f   : > { %5415 = vmatprep.mubr.msk.bf16.mxu1 %vm685_vm3, %v4811_v26  ;;  %v6349_v12 = vsel %vm6174_vm7, %v4853_v52, %v1310_v19  ;;  %v1312_v10 = vrot.slane %v1310_v19, 4  ;;  %v4854_v26 = vrot.slane %v8757_v54, 9  ;;  %v1282_v14 = vrot.slane %v8758_v3, 5 }
  0x70   : > { %v6358_v2 = vsel %vm6174_vm7, %v1305_v42, %v1306_v45  ;;  %v4863_v5 = vcombine.low %v1262_v20, %v1265_v7  ;;  %v4864_v37 = vcombine.low %v1269_v33, %v1272_v27  ;;  %v1277_v6 = vrot.slane %v1275_v58, 4  ;;  %v8761_v45 = vld [vmem:[#allocation5_spill] sm:$0xff]  ;;  %v6388_v7 = vld [vmem:[%s5844_s25 + $0xc] sm:$0xf]  ;;  %v6394_v42 = vld [vmem:[%s5844_s25 + $0x10] sm:$0xf] }
  0x71   : > { %v6366_v35 = vsel %vm6174_vm7, %v1312_v10, %v1313_v50  ;;  %v1278_v22 = vrot.slane %v8760_v43, 5  ;;  %v4849_v52 = vrot.slane %v8761_v45, 9  ;;  %v1284_v19 = vrot.slane %v1282_v14, 4  ;;  %v6410_v27 = vld [vmem:[%s5844_s25 + $0x14] sm:$0x1] }
  0x72   : > { %5450 = vmatmul.mubr.msk.bf16.gmra.mxu0 %vm685_vm3, %v4861_v17  ;;  %v1317_v17 = vrot.slane %v6155_v47, 5  ;;  %v4814_v33 = vcombine.low %v6131_v36, %v6138_v61  ;;  %v4815_v50 = vcombine.low %v5866_v13, %v5871_v16  ;;  %v1995_v13 = vshrl.u32 %v6388_v7, 16  ;;  %8763 = vst [vmem:[#allocation8_spill] sm:$0xff] %v6410_v27 }
  0x73   : > { %5453 = vmatprep.mubr.msk.bf16.mxu0 %vm685_vm3, %v4862_v23  ;;  %v1320_v23 = vrot.slane %v6165_v24, 5  ;;  %v8759_v24 = vld [vmem:[#allocation3_spill] sm:$0xff]  ;;  %v1283_v36 = vsel %vm6174_vm7, %v4849_v52, %v1282_v14  ;;  %v1998_v16 = vshll.u32 %v6388_v7, 16  ;;  %v2014_v43 = vshll.u32 %v6410_v27, 16 }
  0x74   : > { %v6370_v57 = vsel %vm6174_vm7, %v4854_v26, %v1317_v17  ;;  %v1319_v53 = vrot.slane %v1317_v17, 4  ;;  %v4848_v55 = vrot.slane %v8759_v24, 9  ;;  %v1279_v26 = vsel %vm6174_vm7, %v1277_v6, %v1278_v22  ;;  %v6426_v52 = vld [vmem:[%s5844_s25 + $0x28] sm:$0xf] }
  0x75   : > { %v2008_v17 = vshrl.u32 %v6394_v42, 16  ;;  %v2000_v6 = vrot.slane %v1998_v16, 5  ;;  %v8769_v27 = vcombine.low %v6322_v28, %v6332_v51  ;;  %v8770_v28 = vcombine.low %v5995_v39, %v6002_v46 }
  0x76   : > { %5416 = vmatmul.mubr.msk.bf16.gmra.mxu1 %vm685_vm3, %v4812_v63  ;;  %v6379_v30 = vsel %vm6174_vm7, %v1319_v53, %v1320_v23  ;;  %v1276_v10 = vsel %vm6174_vm7, %v4848_v55, %v1275_v58  ;;  %v6413_v58 = vld [vmem:[%s5844_s25 + $0x18] sm:$0xf]  ;;  %v2004_v23 = vshll.u32 %v6394_v42, 16  ;;  %v6421_v55 = vld [vmem:[%s5844_s25 + $0x24] sm:$0xf] }
  0x77   : > { %5419 = vmatprep.mubr.msk.bf16.mxu1 %vm685_vm3, %v4813_v0  ;;  %v1285_v0 = vrot.slane %v8762_v8, 5  ;;  %v4865_v14 = vcombine.low %v1276_v10, %v1279_v26  ;;  %v2019_v22 = vshrl.u32 %v6413_v58, 16  ;;  %v4817_v8 = vcombine.low %v8761_v45, %v8758_v3 }
  0x78   : > { %v6438_v10 = vrot.slane %v2004_v23, 5  ;;  %v2022_v26 = vshll.u32 %v6413_v58, 16  ;;  %v2043_v3 = vshrl.u32 %v6421_v55, 16  ;;  %v2046_v45 = vshll.u32 %v6421_v55, 16  ;;  %v6456_v23 = vld [vmem:[%s5844_s25 + $0x20] sm:$0x1] }
  0x79   : > { %v1286_v61 = vsel %vm6174_vm7, %v1284_v19, %v1285_v0  ;;  %v4816_v19 = vcombine.low %v8759_v24, %v5911_v59  ;;  %v6444_v24 = vld [vmem:[%s5844_s25 + $0x34] sm:$0xf]  ;;  %8764 = vst [vmem:[#allocation9_spill] sm:$0xff] %v6456_v23  ;;  %v2021_v0 = vrot.slane %v2019_v22, 4  ;;  %v2038_v40 = vshll.u32 %v6456_v23, 16 }
  0x7a   : > { %5454 = vmatmul.mubr.msk.bf16.gmra.mxu0 %vm685_vm3, %v4863_v5  ;;  %v4866_v53 = vcombine.low %v1283_v36, %v1286_v61  ;;  %v6418_v5 = vld [vmem:[%s5844_s25 + $0x1c] sm:$0xf]  ;;  %v2056_v61 = vshrl.u32 %v6426_v52, 16  ;;  %v2080_v20 = vshrl.u32 %v6444_v24, 16  ;;  %v2045_v1 = vrot.slane %v2043_v3, 4 }
  0x7b   : > { %5457 = vmatprep.mubr.msk.bf16.mxu0 %vm685_vm3, %v4864_v37  ;;  %v1997_v37 = vrot.slane %v1995_v13, 4  ;;  %v2032_v36 = vshrl.u32 %v6418_v5, 16  ;;  %v2028_v59 = vshll.u32 %v6418_v5, 16  ;;  %v2052_v13 = vshll.u32 %v6426_v52, 16 }
  0x7c   : > { %v2048_v63 = vrot.slane %v2046_v45, 5  ;;  %v2058_v48 = vrot.slane %v2056_v61, 4  ;;  %v2082_v3 = vrot.slane %v2080_v20, 4  ;;  %v8768_v45 = vcombine.low %v6304_v56, %v6318_v60 }
  0x7d   : > { %v2001_v16 = vor.u32 %v2000_v6, %v1997_v37  ;;  %v2076_v37 = vshll.u32 %v6444_v24, 16  ;;  %v6464_v6 = vld [vmem:[%s5844_s25 + $0x3c] sm:$0xf]  ;;  %v6468_v22 = vrot.slane %v2028_v59, 5  ;;  %v6473_v18 = vrot.slane %v2052_v13, 5 }
  0x7e   : > { %5420 = vmatmul.mubr.msk.bf16.gmra.mxu1 %vm685_vm3, %v4814_v33  ;;  %v2010_v33 = vrot.slane %v2008_v17, 4  ;;  %v6451_v17 = vrot.slane %v2014_v43, 5  ;;  %8765 = vst [vmem:[#allocation11_spill] sm:$0xff] %v6464_v6  ;;  %v2062_v23 = vshll.u32 %v6471_v49, 16  ;;  %v2100_v56 = vshll.u32 %v6477_v11, 16 }
  0x7f   : > { %5423 = vmatprep.mubr.msk.bf16.mxu1 %vm685_vm3, %v4815_v50  ;;  %v6435_v50 = vld [vmem:[%s5844_s25 + $0x30] sm:$0xf]  ;;  %v2002_v62 = vrot.slane %v2001_v16, 4  ;;  %v6484_v25 = vrot.slane %v2076_v37, 5  ;;  %v2059_v20 = vor.u32 %v2058_v48, %v6473_v18  ;;  %v6501_v60 = vsel %vm734_vm0, %v6258_v31, 0 }
  0x80   : > { %v2070_v9 = vshll.u32 %v6435_v50, 16  ;;  %v2011_v43 = vor.u32 %v2010_v33, %v6438_v10  ;;  %v2094_v33 = vshll.u32 %v6464_v6, 16  ;;  %v6513_v31 = vld [vmem:[%s5844_s25 + $0x48] sm:$0xf] }
  0x81   : > { %v2007_v48 = vsel %vm5889_vm4, %v2002_v62, %v6438_v10  ;;  %8771 = vst [vmem:[#allocation13_spill] sm:$0xff] %v6513_v31  ;;  %v6523_v62 = vld [vmem:[%s5844_s25 + $0x4c] sm:$0xf]  ;;  %v2060_v10 = vrot.slane %v2059_v20, 4  ;;  %v6545_v20 = vsel %vm734_vm0, %v6243_v38, 0 }
  0x82   : > { %5458 = vmatmul.mubr.msk.bf16.gmra.mxu0 %vm685_vm3, %v4865_v14  ;;  %v2024_v14 = vrot.slane %v2022_v26, 5  ;;  %v6482_v26 = vld [vmem:[%s5844_s25 + $0x38] sm:$0x1]  ;;  %v2012_v61 = vrot.slane %v2011_v43, 4  ;;  %v2096_v37 = vrot.slane %v2094_v33, 5  ;;  %8773 = vst [vmem:[#allocation6_spill] sm:$0xff] %v6523_v62 }
  0x83   : > { %5461 = vmatprep.mubr.msk.bf16.mxu0 %vm685_vm3, %v4866_v53  ;;  %v2067_v53 = vshrl.u32 %v6435_v50, 16  ;;  %8767 = vst [vmem:[#allocation12_spill] sm:$0xff] %v6482_v26 }
  0x84   : > { %v2025_v13 = vor.u32 %v2024_v14, %v2021_v0  ;;  %v2086_v0 = vshll.u32 %v6482_v26, 16  ;;  %v2017_v39 = vsel %vm5889_vm4, %v2012_v61, %v6451_v17  ;;  %v2124_v61 = vshll.u32 %v6523_v62, 16  ;;  %v6857_v26 = vld [vmem:[%s5844_s25 + $0xc0] sm:$0xf] }
  0x85   : > { %v2069_v59 = vrot.slane %v2067_v53, 4  ;;  %v2104_v53 = vshrl.u32 %v6477_v11, 16 }
  0x86   : > { %5424 = vmatmul.mubr.msk.bf16.gmra.mxu1 %vm685_vm3, %v4816_v19  ;;  %v2034_v19 = vrot.slane %v2032_v36, 4  ;;  %v2072_v36 = vrot.slane %v2070_v9, 5  ;;  %v2049_v9 = vor.u32 %v2048_v63, %v2045_v1  ;;  %v2040_v1 = vrot.slane %v2038_v40, 5 }
  0x87   : > { %5427 = vmatprep.mubr.msk.bf16.mxu1 %vm685_vm3, %v4817_v8  ;;  %v2091_v8 = vshrl.u32 %v6464_v6, 16  ;;  %v2083_v63 = vor.u32 %v2082_v3, %v6484_v25  ;;  %v2026_v46 = vrot.slane %v2025_v13, 4  ;;  %v2106_v33 = vrot.slane %v2104_v53, 4 }
  0x88   : > { %v2035_v16 = vor.u32 %v2034_v19, %v6468_v22  ;;  %v2073_v51 = vor.u32 %v2072_v36, %v2069_v59  ;;  %v2064_v19 = vrot.slane %v2062_v23, 5  ;;  %v2050_v40 = vrot.slane %v2049_v9, 4  ;;  %v6528_v36 = vld [vmem:[%s5844_s25 + $0x44] sm:$0x1] }
  0x89   : > { %v2093_v14 = vrot.slane %v2091_v8, 4  ;;  %v6525_v8 = vrot.slane %v2100_v56, 5  ;;  %v2088_v59 = vrot.slane %v2086_v0, 5  ;;  %8774 = vst [vmem:[#allocation3_spill] sm:$0xff] %v6528_v36  ;;  %v2118_v3 = vshll.u32 %v6513_v31, 16 }
  0x8a   : > { %5462 = vmatmul.mubr.msk.bf16.gmra.mxu0 %vm685_vm3, %v8768_v45  ;;  %v2036_v43 = vrot.slane %v2035_v16, 4  ;;  %v2074_v45 = vrot.slane %v2073_v51, 4  ;;  %v2084_v17 = vrot.slane %v2083_v63, 4  ;;  %v2128_v23 = vshrl.u32 %v6523_v62, 16  ;;  %v6577_v63 = vld [vmem:[%s5844_s25 + $0x54] sm:$0xf] }
  0x8b   : > { %5465 = vmatprep.mubr.msk.bf16.mxu0 %vm685_vm3, %v8769_v27  ;;  %v8772_v27 = vcombine.low %v6036_v44, %v6041_v4  ;;  %v2097_v44 = vor.u32 %v2096_v37, %v2093_v14  ;;  %v2115_v4 = vshrl.u32 %v6513_v31, 16  ;;  %v8775_v13 = vcombine.low %v6342_v15, %v6358_v2  ;;  %8779 = vst [vmem:[#allocation5_spill] sm:$0xff] %v6577_v63 }
  0x8c   : > { %v2031_v16 = vsel %vm5889_vm4, %v2026_v46, %v6468_v22  ;;  %v2041_v9 = vsel %vm5889_vm4, %v2036_v43, %v2040_v1  ;;  %v4939_v53 = vcombine.low %v6421_v55, %v6426_v52  ;;  %v8776_v56 = vcombine.low %v6349_v12, %v6366_v35  ;;  %v6563_v12 = vld [vmem:[%s5844_s25 + $0x50] sm:$0x1]  ;;  %v6592_v46 = vld [vmem:[%s5844_s25 + $0x58] sm:$0xf]  ;;  %v6595_v43 = vld [vmem:[%s5844_s25 + $0x60] sm:$0xf] }
  0x8d   : > { %v2055_v15 = vsel %vm5889_vm4, %v2050_v40, %v6473_v18  ;;  %v2065_v2 = vsel %vm5889_vm4, %v2060_v10, %v2064_v19  ;;  %v2107_v22 = vor.u32 %v2106_v33, %v6525_v8  ;;  %v2110_v38 = vshll.u32 %v6528_v36, 16  ;;  %8777 = vst [vmem:[#allocation4_spill] sm:$0xff] %v6563_v12  ;;  %8781 = vst [vmem:[#allocation7_spill] sm:$0xff] %v6592_v46  ;;  %v6601_v10 = vld [vmem:[%s5844_s25 + $0x64] sm:$0xf] }
  0x8e   : > { %5428 = vmatmul.mubr.msk.bf16.gmra.mxu1 %vm685_vm3, %v8770_v28  ;;  %v4970_v0 = vcombine.low %v2007_v48, %v2017_v39  ;;  %v6560_v14 = vrot.slane %v2097_v44, 4  ;;  %v2117_v35 = vrot.slane %v2115_v4, 4  ;;  %v2120_v37 = vrot.slane %v2118_v3, 5  ;;  %8782 = vst [vmem:[#allocation15_spill] sm:$0xff] %v6595_v43  ;;  %8783 = vst [vmem:[#allocation16_spill] sm:$0xff] %v6601_v10 }
  0x8f   : > { %5431 = vmatprep.mubr.msk.bf16.mxu1 %vm685_vm3, %v8772_v27  ;;  %v8778_v28 = vcombine.low %v8752_v29, %v6081_v34  ;;  %v2079_v18 = vsel %vm5889_vm4, %v2074_v45, %v6484_v25  ;;  %v2089_v48 = vsel %vm5889_vm4, %v2084_v17, %v2088_v59  ;;  %v6574_v1 = vrot.slane %v2124_v61, 5  ;;  %v6611_v3 = vld [vmem:[%s5844_s25 + $0x6c] sm:$0xf]  ;;  %v6823_v36 = vld [vmem:[%s5844_s25 + $0xb8] sm:$0xf] }
  0x90   : > { %v2130_v51 = vrot.slane %v2128_v23, 4  ;;  %v8780_v27 = vcombine.low %v8755_v21, %v8754_v41  ;;  %v6583_v34 = vcombine.low %v2031_v16, %v2041_v9  ;;  %v6585_v29 = vcombine.low %v2055_v15, %v2065_v2 }
  0x91   : > { %v2108_v19 = vrot.slane %v2107_v22, 4  ;;  %v2112_v41 = vrot.slane %v2110_v38, 5  ;;  %v2134_v40 = vshll.u32 %v6563_v12, 16  ;;  %v6603_v33 = vcombine.low %v2079_v18, %v2089_v48 }
  0x92   : > { %5466 = vmatmul.mubr.msk.bf16.gmra.mxu0 %vm685_vm3, %v8775_v13  ;;  %v2103_v59 = vsel %vm5889_vm4, %v6560_v14, %v6525_v8  ;;  %v2121_v44 = vor.u32 %v2120_v37, %v2117_v35  ;;  %v2139_v4 = vshrl.u32 %v6577_v63, 16  ;;  %v2131_v45 = vor.u32 %v2130_v51, %v6574_v1  ;;  %v6618_v13 = vld [vmem:[%s5844_s25 + $0x70] sm:$0xf]  ;;  %v6638_v14 = vld [vmem:[%s5844_s25 + $0x5c] sm:$0x1] }
  0x93   : > { %5469 = vmatprep.mubr.msk.bf16.mxu0 %vm685_vm3, %v8776_v56  ;;  %v2142_v17 = vshll.u32 %v6577_v63, 16  ;;  %v2152_v23 = vshrl.u32 %v6592_v46, 16  ;;  %v2148_v61 = vshll.u32 %v6592_v46, 16  ;;  %v8784_v16 = vcombine.low %v6370_v57, %v6379_v30  ;;  %8785 = vst [vmem:[#allocation17_spill] sm:$0xff] %v6638_v14 }
  0x94   : > { %v2163_v8 = vshrl.u32 %v6595_v43, 16  ;;  %v2166_v9 = vshll.u32 %v6595_v43, 16  ;;  %v2176_v56 = vshrl.u32 %v6601_v10, 16  ;;  %v2172_v15 = vshll.u32 %v6601_v10, 16 }
  0x95   : > { %v2113_v2 = vsel %vm5889_vm4, %v2108_v19, %v2112_v41  ;;  %v6631_v22 = vrot.slane %v2134_v40, 5  ;;  %v2187_v57 = vshrl.u32 %v6611_v3, 16  ;;  %v2190_v30 = vshll.u32 %v6611_v3, 16  ;;  %v6654_v41 = vld [vmem:[%s5844_s25 + $0x7c] sm:$0xf] }
  0x96   : > { %5432 = vmatmul.mubr.msk.bf16.gmra.mxu1 %vm685_vm3, %v8778_v28  ;;  %v6635_v38 = vrot.slane %v2121_v44, 4  ;;  %v2141_v35 = vrot.slane %v2139_v4, 4  ;;  %v2200_v37 = vshrl.u32 %v6618_v13, 16  ;;  %v6643_v28 = vld [vmem:[%s5844_s25 + $0x78] sm:$0xf]  ;;  %v8786_v18 = vcombine.low %v8757_v54, %v6155_v47 }
  0x97   : > { %5435 = vmatprep.mubr.msk.bf16.mxu1 %vm685_vm3, %v8780_v27  ;;  %v6649_v48 = vrot.slane %v2131_v45, 4  ;;  %v2144_v51 = vrot.slane %v2142_v17, 5  ;;  %v6651_v27 = vrot.slane %v2148_v61, 5  ;;  %v2154_v19 = vrot.slane %v2152_v23, 4  ;;  %v6661_v44 = vld [vmem:[%s5844_s25 + $0x68] sm:$0x1] }
  0x98   : > { %v8787_v40 = vcombine.low %v6388_v7, %v6394_v42  ;;  %8788 = vst [vmem:[#allocation18_spill] sm:$0xff] %v6661_v44  ;;  %v2165_v4 = vrot.slane %v2163_v8, 4  ;;  %v2168_v47 = vrot.slane %v2166_v9, 5  ;;  %v6663_v54 = vrot.slane %v2172_v15, 5  ;;  %v6668_v61 = vld [vmem:[%s5844_s25 + $0x74] sm:$0x1] }
  0x99   : > { %v2189_v45 = vrot.slane %v2187_v57, 4  ;;  %v2211_v17 = vshrl.u32 %v6643_v28, 16  ;;  %v2214_v23 = vshll.u32 %v6643_v28, 16  ;;  %8789 = vst [vmem:[#allocation19_spill] sm:$0xff] %v6668_v61  ;;  %v2202_v39 = vrot.slane %v2200_v37, 4 }
  0x9a   : > { %5470 = vmatmul.mubr.msk.bf16.gmra.mxu0 %vm685_vm3, %v8784_v16  ;;  %v2178_v16 = vrot.slane %v2176_v56, 4  ;;  %v2220_v25 = vshll.u32 %v6654_v41, 16  ;;  %v2145_v8 = vor.u32 %v2144_v51, %v2141_v35  ;;  %v2155_v9 = vor.u32 %v2154_v19, %v6651_v27  ;;  %v6680_v57 = vld [vmem:[%s8659_s1 + $0x10] sm:$0x3]  ;;  %v6698_v19 = vld [vmem:[%s5844_s25 + $0x84] sm:$0xf] }
  0x9b   : > { %5509 = vmatprep.mubr.msk.bf16.mxu0 %vm685_vm3, %v4970_v0  ;;  %v2196_v0 = vshll.u32 %v6618_v13, 16  ;;  %v2158_v56 = vshll.u32 %v6638_v14, 16  ;;  %v2182_v15 = vshll.u32 %v6661_v44, 16  ;;  %v2127_v35 = vsel %vm5889_vm4, %v6635_v38, %v6574_v1 }
  0x9c   : > { %v2169_v37 = vor.u32 %v2168_v47, %v2165_v4  ;;  %v2216_v51 = vrot.slane %v2214_v23, 5  ;;  %v6701_v4 = vrot.slane %v2220_v25, 5  ;;  %v6704_v47 = vld [vmem:[%s5844_s25 + $0x88] sm:$0xf]  ;;  %v2235_v23 = vshrl.u32 %v6698_v19, 16 }
  0x9d   : > { %v6670_v21 = vrot.slane %v2196_v0, 5  ;;  %v2179_v0 = vor.u32 %v2178_v16, %v6663_v54  ;;  %v2160_v25 = vrot.slane %v2158_v56, 5  ;;  %v2184_v16 = vrot.slane %v2182_v15, 5 }
  0x9e   : > { %5436 = vmatmul.mubr.msk.bf16.gmra.mxu1 %vm685_vm3, %v8786_v18  ;;  %v2192_v18 = vrot.slane %v2190_v30, 5  ;;  %v4974_v30 = vcombine.low %v2103_v59, %v2113_v2  ;;  %v2206_v59 = vshll.u32 %v6668_v61, 16  ;;  %v2213_v2 = vrot.slane %v2211_v17, 4 }
  0x9f   : > { %5475 = vmatprep.mubr.msk.bf16.mxu1 %vm685_vm3, %v8787_v40  ;;  %v2224_v40 = vshrl.u32 %v6654_v41, 16  ;;  %v2203_v38 = vor.u32 %v2202_v39, %v6670_v21  ;;  %v2156_v39 = vrot.slane %v2155_v9, 4  ;;  %v2180_v17 = vrot.slane %v2179_v0, 4  ;;  %v6758_v0 = vld [vmem:[%s5844_s25 + $0x90] sm:$0xf] }
  0xa0   : > { %v2193_v1 = vor.u32 %v2192_v18, %v2189_v45  ;;  %v6718_v45 = vld [vmem:[%s5844_s25 + $0x80] sm:$0x1]  ;;  %v2170_v18 = vrot.slane %v2169_v37, 4  ;;  %v2248_v9 = vshrl.u32 %v6704_v47, 16  ;;  %v2244_v56 = vshll.u32 %v6704_v47, 16 }
  0xa1   : > { %8791 = vst [vmem:[#allocation20_spill] sm:$0xff] %v6718_v45  ;;  %v2204_v15 = vrot.slane %v2203_v38, 4  ;;  %v2230_v37 = vshll.u32 %v6718_v45, 16  ;;  %v2185_v38 = vsel %vm5889_vm4, %v2180_v17, %v2184_v16  ;;  %v6766_v17 = vld [vmem:[%s5844_s25 + $0x94] sm:$0xf] }
  0xa2   : > { %5510 = vmatmul.mubr.msk.bf16.vlgmr.msra.gmra.mxu0 %vm685_vm3, %v6583_v34  ;;  %v2137_v34 = vsel %vm5889_vm4, %v6649_v48, %v6631_v22  ;;  %v8790_v22 = vcombine.low %v6413_v58, %v6418_v5  ;;  %v2146_v48 = vrot.slane %v2145_v8, 4  ;;  %v2217_v8 = vor.u32 %v2216_v51, %v2213_v2  ;;  %v6817_v45 = vld [vmem:[%s5844_s25 + $0xb4] sm:$0xf] }
  0xa3   : > { %5576 = vmatpush3.bf16.msra.mxu0 %v6545_v20  ;;  %5513 = vmatprep.mubr.msk.bf16.mxu0 %vm685_vm3, %v6585_v29  ;;  %v2226_v20 = vrot.slane %v2224_v40, 4  ;;  %v6709_v29 = vld [vmem:[%s8659_s1 + $0xe] sm:$0x3]  ;;  %v2238_v40 = vshll.u32 %v6698_v19, 16  ;;  %v2161_v2 = vsel %vm5889_vm4, %v2156_v39, %v2160_v25  ;;  %v4975_v39 = vcombine.low %v2127_v35, %v2137_v34 }
  0xa4   : > { %5688 = vmatprep.subr.msk.bf16.mxu0 %vm734_vm0, %v6680_v57  ;;  %v6753_v25 = vrot.slane %v2217_v8, 4  ;;  %v2250_v51 = vrot.slane %v2248_v9, 4  ;;  %v8793_v35 = vcombine.low %v6435_v50, %v6444_v24  ;;  %v6782_v8 = vld [vmem:[%s5844_s25 + $0xa0] sm:$0xf]  ;;  %v8794_v9 = vcombine.low %v6464_v6, %v6477_v11 }
  0xa5   : > { %v8797_v11 = vcombine.low %v6577_v63, %v6592_v46 }
  0xa6   : > { %5476 = vmatmul.mubr.msk.bf16.vlgmr.msra.gmra.mxu1 %vm685_vm3, %v8790_v22  ;;  %v2208_v22 = vrot.slane %v2206_v59, 5  ;;  %v2151_v59 = vsel %vm5889_vm4, %v2146_v48, %v6651_v27  ;;  %v2237_v27 = vrot.slane %v2235_v23, 4  ;;  %v2240_v48 = vrot.slane %v2238_v40, 5 }
  0xa7   : > { %5542 = vmatpush3.bf16.msra.mxu1 %v6501_v60  ;;  %5479 = vmatprep.mubr.msk.bf16.mxu1 %vm685_vm3, %v4939_v53  ;;  %v2194_v60 = vrot.slane %v2193_v1, 4  ;;  %v2227_v53 = vor.u32 %v2226_v20, %v6701_v4  ;;  %v2175_v1 = vsel %vm5889_vm4, %v2170_v18, %v6663_v54  ;;  %v6750_v20 = vld [vmem:[%s5844_s25 + $0x8c] sm:$0x1]  ;;  %v4976_v34 = vcombine.low %v2151_v59, %v2161_v2 }
  0xa8   : > { %5687 = vmatprep.subr.msk.bf16.mxu1 %vm734_vm0, %v6709_v29  ;;  %8792 = vst [vmem:[#allocation21_spill] sm:$0xff] %v6750_v20  ;;  %v2209_v16 = vsel %vm5889_vm4, %v2204_v15, %v2208_v22  ;;  %v6772_v23 = vcombine.low %v2175_v1, %v2185_v38  ;;  %v6779_v22 = vld [vmem:[%s5844_s25 + $0x9c] sm:$0xf]  ;;  %v2259_v15 = vshrl.u32 %v6758_v0, 16  ;;  %v2223_v2 = vsel %vm5889_vm4, %v6753_v25, %v6701_v4 }
  0xa9   : > { %v2199_v54 = vsel %vm5889_vm4, %v2194_v60, %v6670_v21  ;;  %v2228_v18 = vrot.slane %v2227_v53, 4  ;;  %v2254_v60 = vshll.u32 %v6750_v20, 16  ;;  %v2262_v53 = vshll.u32 %v6758_v0, 16 }
  0xaa   : > { %5514 = vmatmul.mubr.msk.bf16.gmra.mxu0 %vm685_vm3, %v6603_v33  ;;  %v6755_v33 = vrot.slane %v2244_v56, 5  ;;  %v2241_v56 = vor.u32 %v2240_v48, %v2237_v27  ;;  %v4978_v59 = vcombine.low %v2199_v54, %v2209_v16  ;;  %v2272_v38 = vshrl.u32 %v6766_v17, 16  ;;  %v6806_v54 = vld [vmem:[%s5844_s25 + $0xac] sm:$0xf]  ;;  %v6809_v16 = vld [vmem:[%s5844_s25 + $0x98] sm:$0x1] }
  0xab   : > { %5517 = vmatprep.mubr.msk.bf16.mxu0 %vm685_vm3, %v4974_v30  ;;  %v2232_v30 = vrot.slane %v2230_v37, 5  ;;  %v6792_v37 = vld [vmem:[%s5844_s25 + $0xa8] sm:$0xf]  ;;  %v2268_v48 = vshll.u32 %v6766_v17, 16  ;;  %8795 = vst [vmem:[#allocation22_spill] sm:$0xff] %v6809_v16  ;;  %v2296_v4 = vshrl.u32 %v6782_v8, 16 }
  0xac   : > { %v2251_v1 = vor.u32 %v2250_v51, %v6755_v33  ;;  %v2292_v51 = vshll.u32 %v6782_v8, 16  ;;  %v2307_v25 = vshrl.u32 %v6792_v37, 16  ;;  %v2310_v21 = vshll.u32 %v6792_v37, 16 }
  0xad   : > { %v2233_v27 = vsel %vm5889_vm4, %v2228_v18, %v2232_v30  ;;  %v2242_v18 = vrot.slane %v2241_v56, 4  ;;  %v2256_v30 = vrot.slane %v2254_v60, 5  ;;  %v2261_v40 = vrot.slane %v2259_v15, 4 }
  0xae   : > { %5480 = vmatmul.mubr.msk.bf16.gmra.mxu1 %vm685_vm3, %v8793_v35  ;;  %v2283_v35 = vshrl.u32 %v6779_v22, 16  ;;  %v2264_v20 = vrot.slane %v2262_v53, 5  ;;  %v2252_v61 = vrot.slane %v2251_v1, 4  ;;  %v2274_v44 = vrot.slane %v2272_v38, 4 }
  0xaf   : > { %5483 = vmatprep.mubr.msk.bf16.mxu1 %vm685_vm3, %v8794_v9  ;;  %v2286_v9 = vshll.u32 %v6779_v22, 16  ;;  %v2320_v14 = vshrl.u32 %v6806_v54, 16  ;;  %v2316_v12 = vshll.u32 %v6806_v54, 16  ;;  %v6825_v6 = vrot.slane %v2268_v48, 5  ;;  %v6839_v48 = vld [vmem:[%s5844_s25 + $0xa4] sm:$0x1] }
  0xb0   : > { %v2285_v56 = vrot.slane %v2283_v35, 4  ;;  %v8796_v15 = vcombine.low %v6513_v31, %v6523_v62  ;;  %v2298_v53 = vrot.slane %v2296_v4, 4  ;;  %v2309_v1 = vrot.slane %v2307_v25, 4  ;;  %8798 = vst [vmem:[#allocation23_spill] sm:$0xff] %v6839_v48  ;;  %v6854_v62 = vld [vmem:[%s5844_s25 + $0xb0] sm:$0x1] }
  0xb1   : > { %v2288_v60 = vrot.slane %v2286_v9, 5  ;;  %v2312_v38 = vrot.slane %v2310_v21, 5  ;;  %v2331_v35 = vshrl.u32 %v6817_v45, 16  ;;  %v2334_v9 = vshll.u32 %v6817_v45, 16  ;;  %8799 = vst [vmem:[#allocation24_spill] sm:$0xff] %v6854_v62 }
  0xb2   : > { %5518 = vmatmul.mubr.msk.bf16.gmra.mxu0 %vm685_vm3, %v4975_v39  ;;  %v2278_v39 = vshll.u32 %v6809_v16, 16  ;;  %v2340_v4 = vshll.u32 %v6823_v36, 16  ;;  %v2247_v21 = vsel %vm5889_vm4, %v2242_v18, %v6755_v33  ;;  %v6848_v25 = vrot.slane %v2316_v12, 5  ;;  %v6862_v18 = vld [vmem:[%s5844_s25 + $0xc4] sm:$0xf] }
  0xb3   : > { %5521 = vmatprep.mubr.msk.bf16.mxu0 %vm685_vm3, %v4976_v34  ;;  %v6832_v34 = vrot.slane %v2292_v51, 5  ;;  %v4979_v51 = vcombine.low %v2223_v2, %v2233_v27  ;;  %v2322_v16 = vrot.slane %v2320_v14, 4  ;;  %v2265_v63 = vor.u32 %v2264_v20, %v2261_v40 }
  0xb4   : > { %v2275_v46 = vor.u32 %v2274_v44, %v6825_v6  ;;  %v2280_v31 = vrot.slane %v2278_v39, 5  ;;  %v2289_v2 = vor.u32 %v2288_v60, %v2285_v56  ;;  %v2302_v33 = vshll.u32 %v6839_v48, 16  ;;  %v6872_v39 = vld [vmem:[%s5844_s25 + $0xbc] sm:$0x1] }
  0xb5   : > { %v2299_v27 = vor.u32 %v2298_v53, %v6832_v34  ;;  %v2313_v12 = vor.u32 %v2312_v38, %v2309_v1  ;;  %v2333_v14 = vrot.slane %v2331_v35, 4  ;;  %v6866_v44 = vrot.slane %v2340_v4, 5 }
  0xb6   : > { %5484 = vmatmul.mubr.msk.bf16.gmra.mxu1 %vm685_vm3, %v8796_v15  ;;  %v2344_v15 = vshrl.u32 %v6823_v36, 16  ;;  %v2323_v40 = vor.u32 %v2322_v16, %v6848_v25  ;;  %v2355_v56 = vshrl.u32 %v6857_v26, 16  ;;  %v2358_v60 = vshll.u32 %v6857_v26, 16 }
  0xb7   : > { %5487 = vmatprep.mubr.msk.bf16.mxu1 %vm685_vm3, %v8797_v11  ;;  %v2257_v11 = vsel %vm5889_vm4, %v2252_v61, %v2256_v30  ;;  %v2336_v61 = vrot.slane %v2334_v9, 5  ;;  %v2326_v30 = vshll.u32 %v6854_v62, 16  ;;  %v2266_v1 = vrot.slane %v2265_v63, 4 }
  0xb8   : > { %v2346_v20 = vrot.slane %v2344_v15, 4  ;;  %v4980_v53 = vcombine.low %v2247_v21, %v2257_v11  ;;  %v2364_v38 = vshll.u32 %v6862_v18, 16  ;;  %v8800_v35 = vcombine.low %v6595_v43, %v6601_v10 }
  0xb9   : > { %v2290_v16 = vrot.slane %v2289_v2, 4  ;;  %v2300_v9 = vrot.slane %v2299_v27, 4  ;;  %v2304_v15 = vrot.slane %v2302_v33, 5  ;;  %v8801_v4 = vcombine.low %v6611_v3, %v6618_v13  ;;  %v6893_v27 = vld [vmem:[%s5844_s25 + $0xc8] sm:$0x1] }
  0xba   : > { %5522 = vmatmul.mubr.msk.bf16.gmra.mxu0 %vm685_vm3, %v6772_v23  ;;  %v2368_v23 = vshrl.u32 %v6862_v18, 16  ;;  %v2314_v63 = vrot.slane %v2313_v12, 4  ;;  %v2337_v21 = vor.u32 %v2336_v61, %v2333_v14  ;;  %v2347_v11 = vor.u32 %v2346_v20, %v6866_v44 }
  0xbb   : > { %5525 = vmatprep.mubr.msk.bf16.mxu0 %vm685_vm3, %v4978_v59  ;;  %v2276_v59 = vrot.slane %v2275_v46, 4  ;;  %v2350_v48 = vshll.u32 %v6872_v39, 16  ;;  %v2324_v62 = vrot.slane %v2323_v40, 4  ;;  %v2328_v43 = vrot.slane %v2326_v30, 5 }
  0xbc   : > { %v2357_v10 = vrot.slane %v2355_v56, 4  ;;  %v4947_v46 = vcombine.low %v6698_v19, %v6704_v47  ;;  %v4948_v2 = vcombine.low %v6758_v0, %v6766_v17  ;;  %v6895_v33 = vrot.slane %v2364_v38, 5 }
  0xbd   : > { %v2370_v12 = vrot.slane %v2368_v23, 4  ;;  %v2271_v14 = vsel %vm5889_vm4, %v2266_v1, %v6825_v6  ;;  %v2281_v61 = vsel %vm5889_vm4, %v2276_v59, %v2280_v31  ;;  %v2295_v20 = vsel %vm5889_vm4, %v2290_v16, %v6832_v34 }
  0xbe   : > { %5488 = vmatmul.mubr.msk.bf16.gmra.mxu1 %vm685_vm3, %v8800_v35  ;;  %v2360_v35 = vrot.slane %v2358_v60, 5  ;;  %v2305_v40 = vsel %vm5889_vm4, %v2300_v9, %v2304_v15  ;;  %v2319_v30 = vsel %vm5889_vm4, %v2314_v63, %v6848_v25  ;;  %v2338_v56 = vrot.slane %v2337_v21, 4  ;;  %v6941_v63 = vld [vmem:[%s5844_s25 + $0x1c] sm:$0xf] }
  0xbf   : > { %5491 = vmatprep.mubr.msk.bf16.mxu1 %vm685_vm3, %v8801_v4  ;;  %v2348_v60 = vrot.slane %v2347_v11, 4  ;;  %v2352_v23 = vrot.slane %v2350_v48, 5  ;;  %v2329_v6 = vsel %vm5889_vm4, %v2324_v62, %v2328_v43  ;;  %v2374_v34 = vshll.u32 %v6893_v27, 16  ;;  %v6938_v4 = vld [vmem:[%s5844_s25 + $0x18] sm:$0xf] }
  0xc0   : > { %v2361_v31 = vor.u32 %v2360_v35, %v2357_v10  ;;  %v2690_v1 = vrot.slane %v6394_v42, 5  ;;  %v4949_v38 = vcombine.low %v6779_v22, %v6782_v8  ;;  %v4950_v25 = vcombine.low %v6792_v37, %v6806_v54  ;;  %v8803_v35 = vld [vmem:[#allocation8_spill] sm:$0xff] }
  0xc1   : > { %v2371_v48 = vor.u32 %v2370_v12, %v6895_v33  ;;  %v4982_v62 = vcombine.low %v2295_v20, %v2305_v40  ;;  %v4951_v42 = vcombine.low %v6817_v45, %v6823_v36  ;;  %v2697_v10 = vrot.slane %v6418_v5, 5  ;;  %v6950_v40 = vld [vmem:[%s5844_s25 + $0x28] sm:$0xf] }
  0xc2   : > { %5526 = vmatmul.mubr.msk.bf16.gmra.mxu0 %vm685_vm3, %v4979_v51  ;;  %v4981_v51 = vcombine.low %v2271_v14, %v2281_v61  ;;  %v4983_v59 = vcombine.low %v2319_v30, %v2329_v6  ;;  %v2343_v16 = vsel %vm5889_vm4, %v2338_v56, %v6866_v44  ;;  %v2353_v9 = vsel %vm5889_vm4, %v2348_v60, %v2352_v23  ;;  %v8805_v44 = vld [vmem:[#allocation9_spill] sm:$0xff] }
  0xc3   : > { %5529 = vmatprep.mubr.msk.bf16.mxu0 %vm685_vm3, %v4980_v53  ;;  %v8802_v53 = vcombine.low %v6643_v28, %v6654_v41  ;;  %v5002_v15 = vrot.slane %v6388_v7, 9  ;;  %v2362_v21 = vrot.slane %v2361_v31, 4  ;;  %v2376_v11 = vrot.slane %v2374_v34, 5 }
  0xc4   : > { %v2692_v5 = vrot.slane %v2690_v1, 4  ;;  %v2693_v12 = vrot.slane %v8803_v35, 5  ;;  %v2372_v14 = vrot.slane %v2371_v48, 4  ;;  %v5003_v61 = vrot.slane %v6413_v58, 9  ;;  %v8821_v58 = vld [vmem:[#allocation4_spill] sm:$0xff] }
  0xc5   : > { %v2700_v20 = vrot.slane %v8805_v44, 5  ;;  %v2699_v30 = vrot.slane %v2697_v10, 4  ;;  %v3506_v60 = vshll.u32 %v6950_v40, 16  ;;  %v3510_v23 = vshrl.u32 %v6950_v40, 16 }
  0xc6   : > { %5492 = vmatmul.mubr.msk.bf16.gmra.mxu1 %vm685_vm3, %v8802_v53  ;;  %v4984_v6 = vcombine.low %v2343_v16, %v2353_v9  ;;  %v6959_v34 = vsel %vm6174_vm7, %v5002_v15, %v2690_v1  ;;  %v2367_v53 = vsel %vm5889_vm4, %v2362_v21, %v6895_v33  ;;  %v6970_v35 = vsel %vm6174_vm7, %v2692_v5, %v2693_v12  ;;  %v7077_v12 = vld [vmem:[%s5844_s25 + $0x48] sm:$0xf] }
  0xc7   : > { %5495 = vmatprep.mubr.msk.bf16.mxu1 %vm685_vm3, %v4947_v46  ;;  %v6945_v46 = vld [vmem:[%s5844_s25 + $0x24] sm:$0xf]  ;;  %v2704_v1 = vrot.slane %v6426_v52, 5  ;;  %v2377_v16 = vsel %vm5889_vm4, %v2372_v14, %v2376_v11  ;;  %v8703_v33 = vrot.slane %v6950_v40, 5  ;;  %v6984_v15 = vsel %vm6174_vm7, %v2699_v30, %v2700_v20  ;;  %v6996_v14 = vld [vmem:[%s5844_s25 + $0x30] sm:$0xf] }
  0xc8   : > { %8804 = vst [vmem:[#allocation8_spill] sm:$0xff] %v6945_v46  ;;  %v3497_v7 = vshrl.u32 %v6945_v46, 16  ;;  %v3500_v56 = vshll.u32 %v6945_v46, 16  ;;  %v6986_v5 = vrot.slane %v3506_v60, 5  ;;  %v3512_v52 = vrot.slane %v3510_v23, 4 }
  0xc9   : > { %v4985_v44 = vcombine.low %v2367_v53, %v2377_v16  ;;  %v2706_v20 = vrot.slane %v2704_v1, 4  ;;  %v7012_v60 = vsel %vm734_vm0, %v6709_v29, 0  ;;  %v5005_v29 = vrot.slane %v6435_v50, 9  ;;  %v7087_v11 = vld [vmem:[%s5844_s25 + $0x4c] sm:$0xf] }
  0xca   : > { %5530 = vmatmul.mubr.msk.bf16.gmra.mxu0 %vm685_vm3, %v4981_v51  ;;  %v3499_v9 = vrot.slane %v3497_v7, 4  ;;  %v3502_v21 = vrot.slane %v3500_v56, 5  ;;  %8807 = vst [vmem:[#allocation9_spill] sm:$0xff] %v6986_v5  ;;  %v2707_v7 = vrot.slane %v6471_v49, 5  ;;  %v3513_v53 = vor.u32 %v3512_v52, %v6986_v5  ;;  %v7030_v52 = vld [vmem:[%s5844_s25 + $0x3c] sm:$0xf] }
  0xcb   : > { %5533 = vmatprep.mubr.msk.bf16.mxu0 %vm685_vm3, %v4982_v62  ;;  %v6978_v62 = vsel %vm6174_vm7, %v5003_v61, %v2697_v10  ;;  %v6999_v61 = vld [vmem:[%s5844_s25 + $0x34] sm:$0xf]  ;;  %v7017_v49 = vsel %vm734_vm0, %v6680_v57, 0  ;;  %v3548_v50 = vshll.u32 %v7030_v52, 16  ;;  %v8813_v51 = vld [vmem:[#allocation6_spill] sm:$0xff]  ;;  %v8825_v5 = vld [vmem:[#allocation5_spill] sm:$0xff] }
  0xcc   : > { %v3503_v23 = vor.u32 %v3502_v21, %v3499_v9  ;;  %v8809_v9 = vld [vmem:[#allocation12_spill] sm:$0xff]  ;;  %v7035_v57 = vsel %vm6174_vm7, %v2706_v20, %v2707_v7  ;;  %v7052_v7 = vrot.slane %v3513_v53, 4  ;;  %v2725_v56 = vrot.slane %v8813_v51, 5  ;;  %v8814_v53 = vld [vmem:[#allocation11_spill] sm:$0xff] }
  0xcd   : > { %v2714_v21 = vrot.slane %v8809_v9, 5 }
  0xce   : > { %5496 = vmatmul.mubr.msk.bf16.gmra.mxu1 %vm685_vm3, %v4948_v2  ;;  %v5004_v2 = vrot.slane %v6421_v55, 9  ;;  %v7008_v55 = vrot.slane %v8703_v33, 4  ;;  %v7050_v20 = vrot.slane %v3503_v23, 4  ;;  %v2727_v43 = vrot.slane %v2725_v56, 4 }
  0xcf   : > { %5499 = vmatprep.mubr.msk.bf16.mxu1 %vm685_vm3, %v4949_v38  ;;  %v2711_v38 = vrot.slane %v6444_v24, 5  ;;  %v8816_v24 = vld [vmem:[#allocation3_spill] sm:$0xff] }
  0xd0   : > { %8808 = vst [vmem:[#allocation14_spill] sm:$0xff] %v7008_v55  ;;  %v7024_v16 = vsel %vm6174_vm7, %v5004_v2, %v2704_v1  ;;  %v3545_v1 = vshrl.u32 %v7030_v52, 16  ;;  %v8810_v2 = vld [vmem:[#allocation10_spill] sm:$0xff]  ;;  %8811 = vst [vmem:[#allocation12_spill] sm:$0xff] %v7050_v20  ;;  %v2721_v48 = vrot.slane %v8816_v24, 5  ;;  %v8826_v20 = vcombine.low %v6959_v34, %v6970_v35  ;;  %v8838_v55 = vld [vmem:[#allocation19_spill] sm:$0xff] }
  0xd1   : > { %v2713_v33 = vrot.slane %v2711_v38, 4  ;;  %v2718_v10 = vrot.slane %v8810_v2, 5  ;;  %8812 = vst [vmem:[#allocation10_spill] sm:$0xff] %v7052_v7  ;;  %v5006_v2 = vrot.slane %v8814_v53, 9  ;;  %v2728_v7 = vrot.slane %v8821_v58, 5 }
  0xd2   : > { %5534 = vmatmul.mubr.msk.bf16.gmra.mxu0 %vm685_vm3, %v4983_v59  ;;  %v7038_v59 = vld [vmem:[%s5844_s25 + $0x40] sm:$0xf]  ;;  %v7073_v30 = vrot.slane %v3545_v1, 4  ;;  %v7093_v24 = vld [vmem:[%s5844_s25 + $0x54] sm:$0xf]  ;;  %v8823_v58 = vcombine.low %v6938_v4, %v6941_v63 }
  0xd3   : > { %5537 = vmatprep.mubr.msk.bf16.mxu0 %vm685_vm3, %v4984_v6  ;;  %v3554_v9 = vshll.u32 %v7038_v59, 16  ;;  %v3558_v6 = vshrl.u32 %v7038_v59, 16  ;;  %v7071_v51 = vsel %vm6174_vm7, %v2713_v33, %v2714_v21  ;;  %v8820_v21 = vld [vmem:[#allocation13_spill] sm:$0xff]  ;;  %v3593_v53 = vshrl.u32 %v7093_v24, 16  ;;  %v8822_v33 = vld [vmem:[#allocation7_spill] sm:$0xff] }
  0xd4   : > { %8815 = vst [vmem:[#allocation6_spill] sm:$0xff] %v7073_v30  ;;  %v5007_v1 = vrot.slane %v8820_v21, 9  ;;  %v2732_v21 = vrot.slane %v8822_v33, 5  ;;  %v7133_v32 = vsel %vm6174_vm7, %v2727_v43, %v2728_v7  ;;  %v7146_v43 = vld [vmem:[%s5844_s25 + $0x60] sm:$0xf]  ;;  %v8828_v7 = vld [vmem:[#allocation16_spill] sm:$0xff] }
  0xd5   : > { %v7083_v23 = vrot.slane %v3558_v6, 4  ;;  %v7103_v6 = vld [vmem:[%s5844_s25 + $0x58] sm:$0xf]  ;;  %v7149_v33 = vrot.slane %v3593_v53, 4  ;;  %v7158_v35 = vld [vmem:[%s5844_s25 + $0x64] sm:$0xf] }
  0xd6   : > { %5500 = vmatmul.mubr.msk.bf16.gmra.mxu1 %vm685_vm3, %v4950_v25  ;;  %v7064_v25 = vsel %vm6174_vm7, %v5005_v29, %v2711_v38  ;;  %v7079_v38 = vrot.slane %v3548_v50, 5  ;;  %v7081_v29 = vrot.slane %v3554_v9, 5  ;;  %v7100_v9 = vsel %vm6174_vm7, %v5006_v2, %v2718_v10  ;;  %v7165_v30 = vld [vmem:[%s5844_s25 + $0x6c] sm:$0xf] }
  0xd7   : > { %5503 = vmatprep.mubr.msk.bf16.mxu1 %vm685_vm3, %v4951_v42  ;;  %v2720_v42 = vrot.slane %v2718_v10, 4  ;;  %8819 = vst [vmem:[#allocation25_spill] sm:$0xff] %v7083_v23  ;;  %v3596_v50 = vshll.u32 %v7093_v24, 16  ;;  %v3602_v10 = vshll.u32 %v7103_v6, 16  ;;  %v3606_v2 = vshrl.u32 %v7103_v6, 16  ;;  %8829 = vst [vmem:[#allocation13_spill] sm:$0xff] %v7149_v33 }
  0xd8   : > { %8817 = vst [vmem:[#allocation11_spill] sm:$0xff] %v7079_v38  ;;  %8818 = vst [vmem:[#allocation3_spill] sm:$0xff] %v7081_v29  ;;  %v2739_v29 = vrot.slane %v8828_v7, 5  ;;  %v2746_v53 = vrot.slane %v6618_v13, 5  ;;  %v8835_v7 = vld [vmem:[#allocation18_spill] sm:$0xff] }
  0xd9   : > { %v7151_v38 = vrot.slane %v3596_v50, 5  ;;  %v7155_v34 = vrot.slane %v3606_v2, 4 }
  0xda   : > { %5538 = vmatmul.mubr.msk.bf16.gmra.mxu0 %vm685_vm3, %v4985_v44  ;;  %v7113_v44 = vsel %vm6174_vm7, %v2720_v42, %v2721_v48  ;;  %v8824_v48 = vcombine.low %v6857_v26, %v6862_v18  ;;  %v7129_v42 = vsel %vm6174_vm7, %v5007_v1, %v2725_v56  ;;  %v2734_v56 = vrot.slane %v2732_v21, 4  ;;  %v8827_v1 = vld [vmem:[#allocation17_spill] sm:$0xff] }
  0xdb   : > { %5577 = vmatprep.mubr.msk.bf16.mxu0 %vm685_vm3, %v8823_v58  ;;  %v5008_v58 = vrot.slane %v8825_v5, 9  ;;  %v2735_v23 = vrot.slane %v8827_v1, 5  ;;  %8830 = vst [vmem:[#allocation4_spill] sm:$0xff] %v7151_v38  ;;  %v7153_v5 = vrot.slane %v3602_v10, 5  ;;  %8832 = vst [vmem:[#allocation5_spill] sm:$0xff] %v7155_v34  ;;  %v8834_v10 = vld [vmem:[#allocation15_spill] sm:$0xff]  ;;  %v8836_v1 = vcombine.low %v6945_v46, %v6950_v40 }
  0xdc   : > { %8833 = vst [vmem:[#allocation17_spill] sm:$0xff] %v7165_v30  ;;  %v5009_v2 = vrot.slane %v8834_v10, 9  ;;  %v2742_v34 = vrot.slane %v8835_v7, 5  ;;  %v8837_v10 = vcombine.low %v6996_v14, %v6999_v61  ;;  %v2748_v33 = vrot.slane %v2746_v53, 4 }
  0xdd   : > { %8831 = vst [vmem:[#allocation7_spill] sm:$0xff] %v7153_v5  ;;  %v7170_v50 = vsel %vm6174_vm7, %v5008_v58, %v2732_v21  ;;  %v7175_v5 = vld [vmem:[%s5844_s25 + $0x70] sm:$0xf]  ;;  %v7184_v13 = vsel %vm6174_vm7, %v2734_v56, %v2735_v23  ;;  %v3644_v21 = vshll.u32 %v7165_v30, 16  ;;  %v5010_v56 = vrot.slane %v6611_v3, 9 }
  0xde   : > { %5504 = vmatmul.mubr.msk.bf16.gmra.mxu1 %vm685_vm3, %v8824_v48  ;;  %v2741_v48 = vrot.slane %v2739_v29, 4  ;;  %v3650_v58 = vshll.u32 %v7175_v5, 16  ;;  %v2753_v46 = vrot.slane %v6654_v41, 5  ;;  %v7209_v3 = vsel %vm6174_vm7, %v5009_v2, %v2739_v29  ;;  %v7215_v41 = vld [vmem:[%s5844_s25 + $0x78] sm:$0xf] }
  0xdf   : > { %5543 = vmatprep.mubr.msk.bf16.mxu1 %vm685_vm3, %v8826_v20  ;;  %v3641_v20 = vshrl.u32 %v7165_v30, 16  ;;  %8840 = vst [vmem:[#allocation16_spill] sm:$0xff] %v7215_v41  ;;  %v7228_v2 = vrot.slane %v3644_v21, 5  ;;  %v7233_v23 = vld [vmem:[%s5844_s25 + $0x7c] sm:$0xf]  ;;  %v8858_v7 = vcombine.low %v7100_v9, %v7113_v44  ;;  %v8866_v9 = vcombine.low %v7093_v24, %v7103_v6 }
  0xe0   : > { %8843 = vst [vmem:[#allocation18_spill] sm:$0xff] %v7233_v23  ;;  %v7250_v21 = vld [vmem:[%s5844_s25 + $0x88] sm:$0xf]  ;;  %v7327_v44 = vld [vmem:[%s5844_s25 + $0x9c] sm:$0xf] }
  0xe1   : > { %v7226_v29 = vrot.slane %v3641_v20, 4  ;;  %v2755_v20 = vrot.slane %v2753_v46, 4 }
  0xe2   : > { %5578 = vmatmul.mubr.msk.bf16.vlgmr.msra.gmra.mxu0 %vm685_vm3, %v8836_v1 }
  0xe3   : > { %5644 = vmatpush3.bf16.msra.mxu0 %v7017_v49  ;;  %5581 = vmatprep.mubr.msk.bf16.mxu0 %vm685_vm3, %v8837_v10  ;;  %v2749_v49 = vrot.slane %v8838_v55, 5  ;;  %v8839_v10 = vcombine.low %v6978_v62, %v6984_v15  ;;  %v3654_v55 = vshrl.u32 %v7175_v5, 16  ;;  %v8841_v62 = vcombine.low %v7024_v16, %v7035_v57  ;;  %v8844_v57 = vld [vmem:[#allocation20_spill] sm:$0xff] }
  0xe4   : > { %v7224_v15 = vsel %vm6174_vm7, %v2741_v48, %v2742_v34  ;;  %v5011_v16 = vrot.slane %v6643_v28, 9  ;;  %v7243_v48 = vld [vmem:[%s5844_s25 + $0x84] sm:$0xf]  ;;  %8846 = vst [vmem:[#allocation20_spill] sm:$0xff] %v7250_v21  ;;  %v3702_v28 = vshrl.u32 %v7250_v21, 16 }
  0xe5   : > { %8845 = vst [vmem:[#allocation19_spill] sm:$0xff] %v7243_v48  ;;  %v7247_v34 = vsel %vm6174_vm7, %v2748_v33, %v2749_v49  ;;  %v3692_v38 = vshll.u32 %v7243_v48, 16  ;;  %v8848_v33 = vcombine.low %v7030_v52, %v7038_v59  ;;  %v8855_v49 = vcombine.low %v7064_v25, %v7071_v51 }
  0xe6   : > { %5544 = vmatmul.mubr.msk.bf16.vlgmr.msra.gmra.mxu1 %vm685_vm3, %v8839_v10  ;;  %v7230_v10 = vrot.slane %v3650_v58, 5  ;;  %v3689_v58 = vshrl.u32 %v7243_v48, 16  ;;  %v7267_v1 = vpop.f32.mrf.mxu0  ;;  %v7314_v25 = vrot.slane %v3702_v28, 4  ;;  %v2767_v28 = vrot.slane %v6766_v17, 5 }
  0xe7   : > { %5610 = vmatpush3.bf16.msra.mxu1 %v7012_v60  ;;  %5547 = vmatprep.mubr.msk.bf16.mxu1 %vm685_vm3, %v8841_v62  ;;  %v7238_v60 = vsel %vm6174_vm7, %v5010_v56, %v2746_v53  ;;  %v2756_v62 = vrot.slane %v8844_v57, 5  ;;  %v7256_v56 = vrot.slane %v3654_v55, 4  ;;  %v2760_v57 = vrot.slane %v6704_v47, 5  ;;  %8849 = vst [vmem:[#allocation27_spill] sm:$0xff] %v7267_v1  ;;  %v7297_v53 = vld [vmem:[%s5844_s25 + $0x94] sm:$0xf] }
  0xe8   : > { %8842 = vst [vmem:[#allocation15_spill] sm:$0xff] %v7230_v10  ;;  %v3698_v55 = vshll.u32 %v7250_v21, 16  ;;  %v8850_v47 = vcombine.low %v7077_v12, %v7087_v11  ;;  %v7283_v1 = vsel %vm6174_vm7, %v5011_v16, %v2753_v46  ;;  %v7289_v10 = vrot.slane %v3689_v58, 4  ;;  %8854 = vst [vmem:[#allocation31_spill] sm:$0xff] %v7297_v53  ;;  %v7316_v51 = vpop.f32.mrf.mxu0 }
  0xe9   : > { %8847 = vst [vmem:[#allocation26_spill] sm:$0xff] %v7256_v56  ;;  %v7287_v56 = vsel %vm6174_vm7, %v2755_v20, %v2756_v62  ;;  %v5012_v16 = vrot.slane %v6698_v19, 9  ;;  %v2762_v62 = vrot.slane %v2760_v57, 4  ;;  %v8857_v20 = vld [vmem:[#allocation21_spill] sm:$0xff]  ;;  %8860 = vst [vmem:[#allocation33_spill] sm:$0xff] %v7314_v25  ;;  %v8862_v19 = vld [vmem:[#allocation24_spill] sm:$0xff] }
  0xea   : > { %5582 = vmatmul.mubr.msk.bf16.gmra.mxu0 %vm685_vm3, %v8848_v33  ;;  %8851 = vst [vmem:[#allocation28_spill] sm:$0xff] %v7289_v10  ;;  %v7294_v33 = vld [vmem:[%s5844_s25 + $0x90] sm:$0xf]  ;;  %v2763_v58 = vrot.slane %v8857_v20, 5  ;;  %8861 = vst [vmem:[#allocation34_spill] sm:$0xff] %v7316_v51  ;;  %v5013_v17 = vrot.slane %v6758_v0, 9  ;;  %v8868_v0 = vcombine.low %v7146_v43, %v7158_v35 }
  0xeb   : > { %5585 = vmatprep.mubr.msk.bf16.mxu0 %vm685_vm3, %v8850_v47  ;;  %v7291_v47 = vrot.slane %v3692_v38, 5  ;;  %8853 = vst [vmem:[#allocation30_spill] sm:$0xff] %v7294_v33  ;;  %v7303_v46 = vpop.f32.mrf.mxu1  ;;  %v5015_v38 = vrot.slane %v6792_v37, 9  ;;  %8863 = vst [vmem:[#allocation24_spill] sm:$0xff] %v7327_v44  ;;  %v7342_v37 = vsel %vm6174_vm7, %v5012_v16, %v2760_v57  ;;  %v3737_v57 = vshrl.u32 %v7327_v44, 16 }
  0xec   : > { %8856 = vst [vmem:[#allocation32_spill] sm:$0xff] %v7303_v46  ;;  %v2784_v46 = vrot.slane %v8862_v19, 5  ;;  %v7346_v10 = vsel %vm6174_vm7, %v2762_v62, %v2763_v58  ;;  %v2774_v16 = vrot.slane %v6782_v8, 5  ;;  %v8869_v58 = vld [vmem:[#allocation22_spill] sm:$0xff]  ;;  %v5017_v8 = vrot.slane %v6857_v26, 9 }
  0xed   : > { %8852 = vst [vmem:[#allocation29_spill] sm:$0xff] %v7291_v47  ;;  %v7312_v47 = vrot.slane %v3698_v55, 5  ;;  %v7332_v55 = vld [vmem:[%s5844_s25 + $0xa0] sm:$0xf]  ;;  %v7338_v20 = vpop.f32.mrf.mxu1  ;;  %v2795_v25 = vrot.slane %v6862_v18, 5 }
  0xee   : > { %5548 = vmatmul.mubr.msk.bf16.gmra.mxu1 %vm685_vm3, %v8855_v49  ;;  %v2781_v49 = vrot.slane %v6806_v54, 5  ;;  %8864 = vst [vmem:[#allocation35_spill] sm:$0xff] %v7332_v55  ;;  %8865 = vst [vmem:[#allocation36_spill] sm:$0xff] %v7338_v20  ;;  %v5014_v20 = vrot.slane %v6779_v22, 9  ;;  %v2798_v22 = vrot.slane %v6893_v27, 5 }
  0xef   : > { %5551 = vmatprep.mubr.msk.bf16.mxu1 %vm685_vm3, %v8858_v7  ;;  %8859 = vst [vmem:[#allocation21_spill] sm:$0xff] %v7312_v47  ;;  %v2770_v7 = vrot.slane %v8869_v58, 5  ;;  %v7381_v58 = vpop.f32.mrf.mxu1  ;;  %v8872_v47 = vcombine.low %v7170_v50, %v7184_v13  ;;  %v7403_v18 = vld [vmem:[%s5844_s25 + $0xa8] sm:$0xf]  ;;  %v2788_v50 = vrot.slane %v6823_v36, 5  ;;  %v7408_v13 = vsel %vm6174_vm7, %v5017_v8, %v2795_v25 }
  0xf0   : > { %v7336_v54 = vsel %vm6174_vm7, %v5015_v38, %v2781_v49  ;;  %v2783_v19 = vrot.slane %v2781_v49, 4  ;;  %v7354_v38 = vpop.f32.mrf.mxu0  ;;  %v3740_v49 = vshll.u32 %v7327_v44, 16  ;;  %8871 = vst [vmem:[#allocation22_spill] sm:$0xff] %v7381_v58  ;;  %v7426_v36 = vsel %vm6174_vm7, %v5014_v20, %v2774_v16  ;;  %v7429_v8 = vld [vmem:[%s5844_s25 + $0xac] sm:$0xf] }
  0xf1   : > { %8867 = vst [vmem:[#allocation37_spill] sm:$0xff] %v7354_v38  ;;  %v3750_v38 = vshrl.u32 %v7332_v55, 16 }
  0xf2   : > { %5586 = vmatmul.mubr.msk.bf16.gmra.mxu0 %vm685_vm3, %v8866_v9  ;;  %v7361_v62 = vsel %vm6174_vm7, %v2783_v19, %v2784_v46  ;;  %v2769_v46 = vrot.slane %v2767_v28, 4  ;;  %v3746_v19 = vshll.u32 %v7332_v55, 16  ;;  %v7385_v9 = vsel %vm6174_vm7, %v5013_v17, %v2767_v28  ;;  %v8875_v28 = vld [vmem:[#allocation23_spill] sm:$0xff] }
  0xf3   : > { %5589 = vmatprep.mubr.msk.bf16.mxu0 %vm685_vm3, %v8868_v0  ;;  %v8870_v0 = vcombine.low %v7129_v42, %v7133_v32  ;;  %v7394_v32 = vpop.f32.mrf.mxu0  ;;  %v7396_v42 = vrot.slane %v3737_v57, 4  ;;  %v2777_v17 = vrot.slane %v8875_v28, 5  ;;  %v7400_v26 = vrot.slane %v3740_v49, 5  ;;  %v7420_v49 = vld [vmem:[%s5844_s25 + $0xb4] sm:$0xf] }
  0xf4   : > { %8873 = vst [vmem:[#allocation38_spill] sm:$0xff] %v7394_v32  ;;  %v7412_v57 = vsel %vm6174_vm7, %v2769_v46, %v2770_v7  ;;  %v7414_v58 = vrot.slane %v3746_v19, 5  ;;  %v7416_v28 = vrot.slane %v3750_v38, 4  ;;  %v3785_v7 = vshrl.u32 %v7420_v49, 16  ;;  %v7483_v32 = vld [vmem:[%s5844_s25 + $0xc4] sm:$0xf] }
  0xf5   : > { %8874 = vst [vmem:[#allocation39_spill] sm:$0xff] %v7396_v42  ;;  %8876 = vst [vmem:[#allocation23_spill] sm:$0xff] %v7400_v26  ;;  %v7422_v26 = vpop.f32.mrf.mxu1  ;;  %v3788_v46 = vshll.u32 %v7420_v49, 16  ;;  %v8880_v19 = vcombine.low %v7165_v30, %v7175_v5  ;;  %v7500_v42 = vld [vmem:[%s5844_s25 + $0xcc] sm:$0xf] }
  0xf6   : > { %5552 = vmatmul.mubr.msk.bf16.gmra.mxu1 %vm685_vm3, %v8870_v0  ;;  %v2776_v0 = vrot.slane %v2774_v16, 4  ;;  %8877 = vst [vmem:[#allocation40_spill] sm:$0xff] %v7414_v58  ;;  %8878 = vst [vmem:[#allocation41_spill] sm:$0xff] %v7416_v28  ;;  %v7480_v28 = vld [vmem:[%s5844_s25 + $0xc0] sm:$0xf] }
  0xf7   : > { %5555 = vmatprep.mubr.msk.bf16.mxu1 %vm685_vm3, %v8872_v47  ;;  %v2797_v47 = vrot.slane %v2795_v25, 4  ;;  %8879 = vst [vmem:[#allocation42_spill] sm:$0xff] %v7422_v26  ;;  %v7432_v25 = vld [vmem:[%s5844_s25 + $0xb8] sm:$0xf]  ;;  %v7444_v27 = vpop.f32.mrf.mxu0 }
  0xf8   : > { %8881 = vst [vmem:[#allocation43_spill] sm:$0xff] %v7444_v27  ;;  %v7448_v20 = vsel %vm6174_vm7, %v2776_v0, %v2777_v17  ;;  %v3794_v16 = vshll.u32 %v7432_v25, 16  ;;  %v3798_v26 = vshrl.u32 %v7432_v25, 16  ;;  %v2790_v0 = vrot.slane %v2788_v50, 4 }
  0xf9   : > { %v7438_v38 = vsel %vm6174_vm7, %v2797_v47, %v2798_v22  ;;  %v8882_v22 = vcombine.low %v7215_v41, %v7233_v23  ;;  %v2791_v17 = vrot.slane %v6872_v39, 5  ;;  %v3482_v27 = vshll.u32 %v6941_v63, 16  ;;  %v7583_v41 = vld [vmem:[%s5844_s25 + $0x44] sm:$0x1] }
  0xfa   : > { %5590 = vmatmul.mubr.msk.bf16.gmra.mxu0 %vm685_vm3, %v8880_v19  ;;  %v5016_v19 = vrot.slane %v6817_v45, 9  ;;  %v7493_v47 = vrot.slane %v3788_v46, 5  ;;  %v7495_v58 = vrot.slane %v3794_v16, 5  ;;  %v7497_v39 = vrot.slane %v3798_v26, 4  ;;  %v5053_v16 = vld [vmem:[%s5844_s25 + $0x20] sm:$0x1] }
  0xfb   : > { %5593 = vmatprep.mubr.msk.bf16.mxu0 %vm685_vm3, %v8882_v22  ;;  %v8883_v22 = vcombine.low %v7209_v3, %v7224_v15  ;;  %v7471_v45 = vpop.f32.mrf.mxu1  ;;  %v8885_v3 = vcombine.low %v7238_v60, %v7247_v34  ;;  %v7489_v15 = vpop.f32.mrf.mxu0  ;;  %v7509_v34 = vsel %vm6174_vm7, %v2790_v0, %v2791_v17  ;;  %v3833_v46 = vshrl.u32 %v7500_v42, 16 }
  0xfc   : > { %8884 = vst [vmem:[#allocation44_spill] sm:$0xff] %v7471_v45  ;;  %8886 = vst [vmem:[#allocation45_spill] sm:$0xff] %v7489_v15  ;;  %v7505_v60 = vsel %vm6174_vm7, %v5016_v19, %v2788_v50  ;;  %v8891_v26 = vshrl.u32 %v6938_v4, 16  ;;  %v7520_v45 = vrot.slane %v3482_v27, 5  ;;  %v8893_v50 = vshrl.u32 %v6941_v63, 16 }
  0xfd   : > { %8888 = vst [vmem:[#allocation47_spill] sm:$0xff] %v7493_v47  ;;  %8889 = vst [vmem:[#allocation48_spill] sm:$0xff] %v7495_v58  ;;  %v7524_v47 = vpop.f32.mrf.mxu1  ;;  %v3836_v15 = vshll.u32 %v7500_v42, 16  ;;  %v7536_v27 = vpop.f32.mrf.mxu0  ;;  %v4168_v17 = vrot.slane %v6941_v63, 5  ;;  %v3492_v0 = vshll.u32 %v5053_v16, 16 }
  0xfe   : > { %5556 = vmatmul.mubr.msk.bf16.gmra.mxu1 %vm685_vm3, %v8883_v22  ;;  %v7491_v22 = vrot.slane %v3785_v7, 4  ;;  %8890 = vst [vmem:[#allocation49_spill] sm:$0xff] %v7497_v39  ;;  %v7512_v7 = vld [vmem:[%s5844_s25 + $0xd0] sm:$0xf]  ;;  %v8892_v39 = vshll.u32 %v6938_v4, 16  ;;  %v3488_v19 = vrot.slane %v8893_v50, 4 }
  0xff   : > { %5559 = vmatprep.mubr.msk.bf16.mxu1 %vm685_vm3, %v8885_v3  ;;  %v3475_v3 = vrot.slane %v8891_v26, 4  ;;  %8894 = vst [vmem:[#allocation50_spill] sm:$0xff] %v7524_v47  ;;  %v5056_v26 = vld [vmem:[%s5844_s25 + $0x2c] sm:$0x1]  ;;  %8896 = vst [vmem:[#allocation51_spill] sm:$0xff] %v7536_v27  ;;  %v3842_v27 = vshll.u32 %v7512_v7, 16 }
 0x100   : > { %8887 = vst [vmem:[#allocation46_spill] sm:$0xff] %v7491_v22  ;;  %v3478_v58 = vrot.slane %v8892_v39, 5  ;;  %v8895_v39 = vcombine.low %v7243_v48, %v7250_v21  ;;  %v8897_v22 = vcombine.low %v7294_v33, %v7297_v53  ;;  %v3530_v50 = vshll.u32 %v6999_v61, 16 }
 0x101   : > { %v3489_v21 = vor.u32 %v3488_v19, %v7520_v45  ;;  %v3516_v63 = vshll.u32 %v5056_v26, 16  ;;  %v8899_v33 = vcombine.low %v7283_v1, %v7287_v56  ;;  %v7560_v48 = vrot.slane %v3836_v15, 5 }
 0x102   : > { %5594 = vmatmul.mubr.msk.bf16.gmra.mxu0 %vm685_vm3, %v8895_v39  ;;  %v7549_v39 = vrot.slane %v3833_v46, 4  ;;  %v3479_v47 = vor.u32 %v3478_v58, %v3475_v3  ;;  %v3846_v46 = vshrl.u32 %v7512_v7, 16  ;;  %v4171_v53 = vrot.slane %v5053_v16, 5  ;;  %v7568_v3 = vpop.f32.mrf.mxu0  ;;  %v5059_v16 = vld [vmem:[%s5844_s25 + $0x38] sm:$0x1] }
 0x103   : > { %5597 = vmatprep.mubr.msk.bf16.mxu0 %vm685_vm3, %v8897_v22  ;;  %v7558_v22 = vpop.f32.mrf.mxu1  ;;  %8901 = vst [vmem:[#allocation54_spill] sm:$0xff] %v7560_v48  ;;  %v8902_v58 = vcombine.low %v7342_v37, %v7346_v10  ;;  %8903 = vst [vmem:[#allocation55_spill] sm:$0xff] %v7568_v3  ;;  %v4170_v1 = vrot.slane %v4168_v17, 4  ;;  %v4178_v56 = vrot.slane %v5056_v26, 5  ;;  %v8905_v15 = vshll.u32 %v6996_v14, 16 }
 0x104   : > { %8898 = vst [vmem:[#allocation52_spill] sm:$0xff] %v7549_v39  ;;  %8900 = vst [vmem:[#allocation53_spill] sm:$0xff] %v7558_v22  ;;  %v5165_v39 = vrot.slane %v6938_v4, 9  ;;  %v7574_v48 = vrot.slane %v3842_v27, 5  ;;  %v7578_v51 = vrot.slane %v3530_v50, 5  ;;  %v8907_v10 = vshrl.u32 %v6999_v61, 16 }
 0x105   : > { %v3526_v22 = vrot.slane %v8905_v15, 5  ;;  %v3490_v3 = vrot.slane %v3489_v21, 4  ;;  %v3494_v30 = vrot.slane %v3492_v0, 5  ;;  %v3518_v26 = vrot.slane %v3516_v63, 5  ;;  %v8911_v15 = vld [vmem:[#allocation8_spill] sm:$0xff] }
 0x106   : > { %5560 = vmatmul.mubr.msk.bf16.gmra.mxu1 %vm685_vm3, %v8899_v33  ;;  %v8904_v33 = vshrl.u32 %v6996_v14, 16  ;;  %8906 = vst [vmem:[#allocation56_spill] sm:$0xff] %v7574_v48  ;;  %v3536_v37 = vrot.slane %v8907_v10, 4  ;;  %v7587_v23 = vrot.slane %v3846_v46, 4  ;;  %v7591_v27 = vsel %vm6174_vm7, %v5165_v39, %v4168_v17  ;;  %v8922_v48 = vld [vmem:[#allocation12_spill] sm:$0xff] }
 0x107   : > { %5563 = vmatprep.mubr.msk.bf16.mxu1 %vm685_vm3, %v8902_v58  ;;  %v3480_v58 = vrot.slane %v3479_v47, 4  ;;  %v8910_v50 = vrot.slane %v6950_v40, 5  ;;  %v8912_v4 = vrot.slane %v8911_v15, 9  ;;  %v4182_v21 = vrot.slane %v6999_v61, 5  ;;  %v8914_v40 = vld [vmem:[#allocation14_spill] sm:$0xff]  ;;  %v8917_v15 = vld [vmem:[#allocation11_spill] sm:$0xff] }
 0x108   : > { %v3523_v19 = vrot.slane %v8904_v33, 4  ;;  %v7585_v33 = vpop.f32.mrf.mxu1  ;;  %8909 = vst [vmem:[#allocation58_spill] sm:$0xff] %v7587_v23  ;;  %v8913_v0 = vcombine.low %v7327_v44, %v7332_v55  ;;  %v7606_v63 = vpop.f32.mrf.mxu0  ;;  %v7610_v17 = vsel %vm6174_vm7, %v4170_v1, %v4171_v53  ;;  %v7615_v39 = vsel %vm6174_vm7, %v8914_v40, %v4178_v56  ;;  %v8919_v53 = vld [vmem:[#allocation25_spill] sm:$0xff] }
 0x109   : > { %8908 = vst [vmem:[#allocation57_spill] sm:$0xff] %v7585_v33  ;;  %v7599_v47 = vsel %vm6174_vm7, %v8912_v4, %v8910_v50  ;;  %v3540_v4 = vshll.u32 %v5059_v16, 16  ;;  %v8915_v61 = vcombine.low %v7403_v18, %v7429_v8  ;;  %v3537_v10 = vor.u32 %v3536_v37, %v7578_v51  ;;  %v8916_v50 = vld [vmem:[#allocation6_spill] sm:$0xff]  ;;  %v8918_v33 = vld [vmem:[#allocation3_spill] sm:$0xff]  ;;  %v8921_v40 = vld [vmem:[#allocation9_spill] sm:$0xff] }
 0x10a   : > { %5598 = vmatmul.mubr.msk.bf16.gmra.mxu0 %vm685_vm3, %v8913_v0  ;;  %v3527_v46 = vor.u32 %v3526_v22, %v3523_v19  ;;  %v3551_v0 = vor.u32 %v8917_v15, %v8916_v50  ;;  %v3561_v1 = vor.u32 %v8919_v53, %v8918_v33  ;;  %v3564_v23 = vshll.u32 %v7583_v41, 16 }
 0x10b   : > { %5601 = vmatprep.mubr.msk.bf16.mxu0 %vm685_vm3, %v8915_v61  ;;  %v3485_v22 = vsel %vm5889_vm4, %v3480_v58, %v7520_v45  ;;  %v3495_v19 = vsel %vm5889_vm4, %v3490_v3, %v3494_v30  ;;  %v3509_v37 = vsel %vm5889_vm4, %v8922_v48, %v8921_v40  ;;  %v8923_v61 = vld [vmem:[#allocation10_spill] sm:$0xff]  ;;  %v8924_v15 = vcombine.low %v7385_v9, %v7412_v57  ;;  %v7651_v40 = vpop.f32.mrf.mxu0 }
 0x10c   : > { %v3519_v50 = vsel %vm5889_vm4, %v8923_v61, %v3518_v26  ;;  %v5167_v45 = vrot.slane %v6996_v14, 9  ;;  %v4184_v58 = vrot.slane %v4182_v21, 4  ;;  %v4185_v30 = vrot.slane %v5059_v16, 5  ;;  %8927 = vst [vmem:[#allocation14_spill] sm:$0xff] %v7651_v40 }
 0x10d   : > { %v7643_v53 = vpop.f32.mrf.mxu1  ;;  %v3578_v3 = vshll.u32 %v7087_v11, 16  ;;  %v8926_v48 = vcombine.low %v7426_v36, %v7448_v20  ;;  %v3528_v26 = vrot.slane %v3527_v46, 4  ;;  %v3542_v14 = vrot.slane %v3540_v4, 5  ;;  %v7676_v4 = vld [vmem:[%s5844_s25 + $0x50] sm:$0x1] }
 0x10e   : > { %5564 = vmatmul.mubr.msk.bf16.gmra.mxu1 %vm685_vm3, %v8924_v15  ;;  %8925 = vst [vmem:[#allocation8_spill] sm:$0xff] %v7643_v53  ;;  %v3538_v61 = vrot.slane %v3537_v10, 4  ;;  %v3552_v16 = vrot.slane %v3551_v0, 4  ;;  %v3562_v15 = vrot.slane %v3561_v1, 4  ;;  %v3566_v53 = vrot.slane %v3564_v23, 5 }
 0x10f   : > { %5567 = vmatprep.mubr.msk.bf16.mxu1 %vm685_vm3, %v8926_v48  ;;  %v7657_v44 = vcombine.low %v3485_v22, %v3495_v19  ;;  %v7659_v36 = vcombine.low %v3509_v37, %v3519_v50  ;;  %v8928_v20 = vshrl.u32 %v7077_v12, 16  ;;  %v8929_v55 = vshll.u32 %v7077_v12, 16  ;;  %v7665_v40 = vpop.f32.mrf.mxu1  ;;  %v7686_v22 = vpop.f32.mrf.mxu0 }
 0x110   : > { %8930 = vst [vmem:[#allocation6_spill] sm:$0xff] %v7665_v40  ;;  %v7669_v46 = vsel %vm6174_vm7, %v5167_v45, %v4182_v21  ;;  %v7673_v23 = vsel %vm6174_vm7, %v4184_v58, %v4185_v30  ;;  %v7678_v10 = vrot.slane %v3578_v3, 5  ;;  %v8931_v0 = vshrl.u32 %v7087_v11, 16  ;;  %v7703_v3 = vld [vmem:[%s5844_s25 + $0x5c] sm:$0x1] }
 0x111   : > { %v3571_v48 = vrot.slane %v8928_v20, 4  ;;  %v3574_v9 = vrot.slane %v8929_v55, 5  ;;  %v8932_v55 = vcombine.low %v7420_v49, %v7432_v25  ;;  %v3533_v21 = vsel %vm5889_vm4, %v3528_v26, %v7578_v51  ;;  %v7761_v40 = vld [vmem:[%s5844_s25 + $0x74] sm:$0x1] }
 0x112   : > { %v3584_v1 = vrot.slane %v8931_v0, 4  ;;  %v8933_v19 = vrot.slane %v7038_v59, 5  ;;  %v8934_v37 = vrot.slane %v7030_v52, 9  ;;  %v4192_v30 = vrot.slane %v7583_v41, 5 }
 0x113   : > { %5602 = vmatmul.mubr.msk.bf16.gmra.mxu0 %vm685_vm3, %v8932_v55  ;;  %v8936_v20 = vcombine.low %v7480_v28, %v7483_v32  ;;  %v3543_v51 = vsel %vm5889_vm4, %v3538_v61, %v3542_v14  ;;  %v3557_v52 = vsel %vm5889_vm4, %v3552_v16, %v8918_v33  ;;  %v3567_v59 = vsel %vm5889_vm4, %v3562_v15, %v3566_v53  ;;  %v7725_v61 = vpop.f32.mrf.mxu1  ;;  %v8939_v53 = vld [vmem:[#allocation13_spill] sm:$0xff]  ;;  %v8940_v16 = vld [vmem:[#allocation4_spill] sm:$0xff] }
 0x114   : > { %v7697_v50 = vsel %vm6174_vm7, %v8934_v37, %v8933_v19  ;;  %v8935_v45 = vmov %v8933_v19  ;;  %v3626_v26 = vshll.u32 %v7158_v35, 16  ;;  %v3575_v0 = vor.u32 %v3574_v9, %v3571_v48  ;;  %8938 = vst [vmem:[#allocation11_spill] sm:$0xff] %v7725_v61  ;;  %v8941_v37 = vld [vmem:[#allocation7_spill] sm:$0xff]  ;;  %v7733_v48 = vpop.f32.mrf.mxu0 }
 0x115   : > { %v4191_v58 = vrot.slane %v8935_v45, 4  ;;  %5605 = vmatprep.mubr.msk.bf16.mxu0 %vm685_vm3, %v8936_v20  ;;  %v3588_v55 = vshll.u32 %v7676_v4, 16  ;;  %v4196_v19 = vrot.slane %v7087_v11, 5  ;;  %v8937_v14 = vcombine.low %v7336_v54, %v7361_v62  ;;  %v8942_v45 = vld [vmem:[#allocation5_spill] sm:$0xff] }
 0x116   : > { %v3585_v33 = vor.u32 %v3584_v1, %v7678_v10  ;;  %v3599_v15 = vor.u32 %v8940_v16, %v8939_v53  ;;  %v3609_v20 = vor.u32 %v8942_v45, %v8941_v37  ;;  %v3612_v9 = vshll.u32 %v7703_v3, 16 }
 0x117   : > { %5568 = vmatmul.mubr.msk.bf16.gmra.mxu1 %vm685_vm3, %v8937_v14  ;;  %v8943_v11 = vcombine.low %v7505_v60, %v7509_v34  ;;  %v7739_v54 = vcombine.low %v3533_v21, %v3543_v51  ;;  %v7741_v62 = vcombine.low %v3557_v52, %v3567_v59  ;;  %v7745_v1 = vsel %vm6174_vm7, %v4191_v58, %v4192_v30  ;;  %v5071_v30 = vld [vmem:[%s5844_s25 + $0x68] sm:$0x1] }
 0x118   : > { %v5169_v14 = vrot.slane %v7077_v12, 9  ;;  %v8944_v53 = vshrl.u32 %v7146_v43, 16  ;;  %v8945_v45 = vshll.u32 %v7146_v43, 16  ;;  %v7752_v60 = vrot.slane %v3626_v26, 5 }
 0x119   : > { %5571 = vmatprep.mubr.msk.bf16.mxu1 %vm685_vm3, %v8943_v11  ;;  %v8946_v34 = vshrl.u32 %v7158_v35, 16  ;;  %v3576_v51 = vrot.slane %v3575_v0, 4  ;;  %v3590_v52 = vrot.slane %v3588_v55, 5  ;;  %v4198_v59 = vrot.slane %v4196_v19, 4  ;;  %v7758_v11 = vpop.f32.mrf.mxu1 }
 0x11a   : > { %v3619_v16 = vrot.slane %v8944_v53, 4  ;;  %v3622_v41 = vrot.slane %v8945_v45, 5  ;;  %v4199_v58 = vrot.slane %v7676_v4, 5  ;;  %8947 = vst [vmem:[#allocation3_spill] sm:$0xff] %v7758_v11  ;;  %v3586_v12 = vrot.slane %v3585_v33, 4  ;;  %v7763_v45 = vpop.f32.mrf.mxu0 }
 0x11b   : > { %v3632_v21 = vrot.slane %v8946_v34, 4  ;;  %v3600_v57 = vrot.slane %v3599_v15, 4  ;;  %v3610_v61 = vrot.slane %v3609_v20, 4  ;;  %v3614_v53 = vrot.slane %v3612_v9, 5 }
 0x11c   : > { %v8948_v26 = vcombine.low %v7500_v42, %v7512_v7  ;;  %v7771_v0 = vsel %vm6174_vm7, %v5169_v14, %v4196_v19  ;;  %v8949_v4 = vrot.slane %v7103_v6, 5  ;;  %v4206_v33 = vrot.slane %v7703_v3, 5  ;;  %v7784_v14 = vpop.f32.mrf.mxu0 }
 0x11d   : > { %v4210_v15 = vrot.slane %v7158_v35, 5  ;;  %v8950_v20 = vcombine.low %v7591_v27, %v7610_v17  ;;  %v3623_v9 = vor.u32 %v3622_v41, %v3619_v16  ;;  %v3633_v34 = vor.u32 %v3632_v21, %v7752_v60  ;;  %v8953_v17 = vld [vmem:[#allocation15_spill] sm:$0xff]  ;;  %v8954_v41 = vld [vmem:[#allocation26_spill] sm:$0xff] }
 0x11e   : > { %5606 = vmatmul.mubr.msk.bf16.gmra.mxu0 %vm685_vm3, %v8948_v26  ;;  %v4205_v55 = vrot.slane %v8949_v4, 4  ;;  %v3636_v26 = vshll.u32 %v5071_v30, 16  ;;  %v3647_v19 = vor.u32 %v7228_v2, %v7226_v29  ;;  %v3581_v3 = vsel %vm5889_vm4, %v3576_v51, %v7678_v10  ;;  %v7800_v29 = vpop.f32.mrf.mxu1 }
 0x11f   : > { %5645 = vmatprep.mubr.msk.bf16.mxu0 %vm685_vm3, %v8950_v20  ;;  %v8951_v35 = vmov %v8949_v4  ;;  %v8952_v4 = vrot.slane %v7093_v24, 9  ;;  %v3657_v16 = vor.u32 %v8954_v41, %v8953_v17  ;;  %v3660_v21 = vshll.u32 %v7761_v40, 16  ;;  %8955 = vst [vmem:[#allocation25_spill] sm:$0xff] %v7800_v29  ;;  %v7817_v20 = vpop.f32.mrf.mxu0 }
 0x120   : > { %v8956_v2 = vcombine.low %v7408_v13, %v7438_v38  ;;  %v3591_v6 = vsel %vm5889_vm4, %v3586_v12, %v3590_v52  ;;  %v7810_v24 = vsel %vm6174_vm7, %v4198_v59, %v4199_v58  ;;  %v3605_v10 = vsel %vm5889_vm4, %v3600_v57, %v8941_v37  ;;  %v7826_v58 = vpop.f32.mrf.mxu1 }
 0x121   : > { %v7795_v27 = vsel %vm6174_vm7, %v8952_v4, %v8951_v35  ;;  %v3615_v51 = vsel %vm5889_vm4, %v3610_v61, %v3614_v53  ;;  %v7823_v13 = vsel %vm6174_vm7, %v4205_v55, %v4206_v33  ;;  %v5171_v38 = vrot.slane %v7146_v43, 9  ;;  %8957 = vst [vmem:[#allocation2_spill] sm:$0xff] %v7826_v58  ;;  %v7828_v61 = vpop.f32.mrf.mxu0  ;;  %v9040_v56 = vld [vmem:[#allocation3_spill] sm:$0xff] }
 0x122   : > { %5572 = vmatmul.mubr.msk.bf16.gmra.mxu1 %vm685_vm3, %v8956_v2  ;;  %v4212_v52 = vrot.slane %v4210_v15, 4  ;;  %v4213_v59 = vrot.slane %v5071_v30, 5  ;;  %v3624_v12 = vrot.slane %v3623_v9, 4  ;;  %v3634_v57 = vrot.slane %v3633_v34, 4  ;;  %v7833_v33 = vpop.f32.mrf.mxu1  ;;  %v8960_v34 = vld [vmem:[#allocation18_spill] sm:$0xff] }
 0x123   : > { %5611 = vmatprep.mubr.msk.bf16.mxu1 %vm685_vm3, %v7657_v44  ;;  %v3638_v37 = vrot.slane %v3636_v26, 5  ;;  %v3648_v35 = vrot.slane %v3647_v19, 4  ;;  %v3658_v53 = vrot.slane %v3657_v16, 4  ;;  %v3662_v4 = vrot.slane %v3660_v21, 5  ;;  %8959 = vst [vmem:[#allocation9_spill] sm:$0xff] %v7833_v33  ;;  %v5443_v19 = vpop.f32.mrf.mxu0 }
 0x124   : > { %v8958_v44 = vrot.slane %v7175_v5, 5  ;;  %v4220_v55 = vrot.slane %v7761_v40, 5  ;;  %v5185_v43 = vcombine.low %v7697_v50, %v7745_v1  ;;  %v7837_v30 = vcombine.low %v3581_v3, %v3591_v6  ;;  %v8962_v1 = vld [vmem:[#allocation16_spill] sm:$0xff]  ;;  %v7858_v6 = vpop.f32.mrf.mxu1 }
 0x125   : > { %v5186_v9 = vcombine.low %v7771_v0, %v7810_v24  ;;  %v3674_v26 = vshll.u32 %v8960_v34, 16  ;;  %v8961_v16 = vcombine.low %v7599_v47, %v7615_v39  ;;  %v7848_v40 = vsel %vm6174_vm7, %v5171_v38, %v4210_v15  ;;  %8965 = vst [vmem:[#allocation12_spill] sm:$0xff] %v7858_v6 }
 0x126   : > { %v4219_v41 = vrot.slane %v8958_v44, 4  ;;  %v7852_v50 = vsel %vm6174_vm7, %v4212_v52, %v4213_v59  ;;  %v8963_v3 = vshrl.u32 %v8962_v1, 16  ;;  %v8964_v0 = vshll.u32 %v8962_v1, 16  ;;  %v5077_v52 = vld [vmem:[%s5844_s25 + $0x80] sm:$0x1]  ;;  %v1457_v59 = vpop.f32.mrf.mxu0 }
 0x127   : > { %5646 = vmatmul.mubr.msk.bf16.vlgmr.msra.gmra.mxu0 %vm685_vm3, %v8961_v16  ;;  %v8966_v47 = vcombine.low %v7669_v46, %v7673_v23  ;;  %v7864_v39 = vcombine.low %v3605_v10, %v3615_v51  ;;  %v3629_v24 = vsel %vm5889_vm4, %v3624_v12, %v7752_v60  ;;  %v3639_v38 = vsel %vm5889_vm4, %v3634_v57, %v3638_v37  ;;  %v8968_v51 = vld [vmem:[#allocation17_spill] sm:$0xff]  ;;  %v5409_v12 = vpop.f32.mrf.mxu1 }
 0x128   : > { %v3667_v21 = vrot.slane %v8963_v3, 4  ;;  %v3670_v2 = vrot.slane %v8964_v0, 5  ;;  %v3653_v46 = vsel %vm5889_vm4, %v3648_v35, %v8953_v17  ;;  %v3663_v23 = vsel %vm5889_vm4, %v3658_v53, %v3662_v4  ;;  %v7901_v53 = vld [vmem:[%s5844_s25 + $0x8c] sm:$0x1] }
 0x129   : > { %5649 = vmatprep.mubr.msk.bf16.mxu0 %vm685_vm3, %v8966_v47  ;;  %v8967_v10 = vmov %v8958_v44  ;;  %v8969_v44 = vrot.slane %v8968_v51, 9  ;;  %v7889_v60 = vsel %vm6174_vm7, %v4219_v41, %v4220_v55  ;;  %v7895_v57 = vrot.slane %v3674_v26, 5  ;;  %v8971_v4 = vld [vmem:[#allocation27_spill] sm:$0xff]  ;;  %v5444_v41 = vpop.f32.mrf.mxu0  ;;  %v1064_v47 = vpop.f32.mrf.mxu1  ;;  %v8972_v51 = vld [vmem:[#allocation28_spill] sm:$0xff] }
 0x12a   : > { %5612 = vmatmul.mubr.msk.bf16.vlgmr.msra.gmra.mxu1 %vm685_vm3, %v7659_v36  ;;  %v8970_v5 = vshrl.u32 %v8960_v34, 16  ;;  %v4224_v35 = vrot.slane %v8960_v34, 5  ;;  %v1073_v3 = vadd.f32 %v5409_v12, %v8971_v4  ;;  %v7906_v55 = vcombine.low %v3629_v24, %v3639_v38  ;;  %v8975_v4 = vld [vmem:[#allocation34_spill] sm:$0xff]  ;;  %v8976_v24 = vld [vmem:[#allocation21_spill] sm:$0xff] }
 0x12b   : > { %v7885_v16 = vsel %vm6174_vm7, %v8969_v44, %v8967_v10  ;;  %5615 = vmatprep.mubr.msk.bf16.mxu1 %vm685_vm3, %v7739_v54  ;;  %v3671_v36 = vor.u32 %v3670_v2, %v3667_v21  ;;  %v3684_v0 = vshll.u32 %v5077_v52, 16  ;;  %v7908_v26 = vcombine.low %v3653_v46, %v3663_v23  ;;  %v8973_v44 = vld [vmem:[#allocation29_spill] sm:$0xff]  ;;  %v1460_v54 = vpop.f32.mrf.mxu0  ;;  %v5410_v46 = vpop.f32.mrf.mxu1 }
 0x12c   : > { %v3680_v37 = vrot.slane %v8970_v5, 4  ;;  %v5173_v34 = vrot.slane %v8962_v1, 9  ;;  %v3695_v5 = vor.u32 %v8973_v44, %v8972_v51  ;;  %v7915_v12 = vadd.f32 %v5443_v19, %v1073_v3  ;;  %v8977_v38 = vld [vmem:[#allocation33_spill] sm:$0xff]  ;;  %v8978_v1 = vld [vmem:[#allocation31_spill] sm:$0xff] }
 0x12d   : > { %v1065_v17 = vadd.f32 %v1064_v47, %v8975_v4  ;;  %v3705_v21 = vor.u32 %v8977_v38, %v8976_v24  ;;  %v3708_v2 = vshll.u32 %v7901_v53, 16  ;;  %v4226_v10 = vrot.slane %v4224_v35, 4  ;;  %v8980_v19 = vld [vmem:[#allocation37_spill] sm:$0xff]  ;;  %v5447_v51 = vpop.f32.mrf.mxu0  ;;  %v1067_v4 = vpop.f32.mrf.mxu1 }
 0x12e   : > { %8974 = vst [vmem:[#allocation10_spill] sm:$0xff] %v7915_v12  ;;  %v3681_v23 = vor.u32 %v3680_v37, %v7895_v57  ;;  %v4227_v15 = vrot.slane %v5077_v52, 5  ;;  %v3722_v6 = vshll.u32 %v8978_v1, 16  ;;  %v1076_v3 = vadd.f32 %v5410_v46, %v8980_v19 }
 0x12f   : > { %v7923_v33 = vadd.f32 %v1457_v59, %v1065_v17  ;;  %5650 = vmatmul.mubr.msk.bf16.gmra.mxu0 %vm685_vm3, %v5185_v43  ;;  %v7927_v47 = vrot.slane %v3671_v36, 4  ;;  %v7929_v44 = vrot.slane %v3684_v0, 5  ;;  %v7934_v37 = vsel %vm6174_vm7, %v5173_v34, %v4224_v35  ;;  %v7939_v59 = vld [vmem:[%s5844_s25 + $0x98] sm:$0x1]  ;;  %v8981_v17 = vld [vmem:[#allocation30_spill] sm:$0xff]  ;;  %v1473_v12 = vpop.f32.mrf.mxu0  ;;  %v5413_v35 = vpop.f32.mrf.mxu1 }
 0x130   : > { %5653 = vmatprep.mubr.msk.bf16.mxu0 %vm685_vm3, %v5186_v9  ;;  %v7936_v52 = vrot.slane %v3695_v5, 4  ;;  %v8982_v38 = vshrl.u32 %v8981_v17, 16  ;;  %v8983_v43 = vshll.u32 %v8981_v17, 16  ;;  %v7945_v19 = vadd.f32 %v5444_v41, %v1076_v3  ;;  %v8985_v0 = vld [vmem:[#allocation38_spill] sm:$0xff] }
 0x131   : > { %8979 = vst [vmem:[#allocation13_spill] sm:$0xff] %v7923_v33  ;;  %v1068_v33 = vadd.f32 %v1067_v4, %v8985_v0  ;;  %v7948_v9 = vrot.slane %v3705_v21, 4  ;;  %v7950_v58 = vrot.slane %v3708_v2, 5  ;;  %v3682_v34 = vrot.slane %v3681_v23, 4  ;;  %v8988_v21 = vld [vmem:[#allocation43_spill] sm:$0xff]  ;;  %v5448_v2 = vpop.f32.mrf.mxu0 }
 0x132   : > { %v3715_v46 = vrot.slane %v8982_v38, 4  ;;  %v3718_v36 = vrot.slane %v8983_v43, 5  ;;  %8984 = vst [vmem:[#allocation4_spill] sm:$0xff] %v7945_v19  ;;  %5616 = vmatmul.mubr.msk.bf16.gmra.mxu1 %vm685_vm3, %v7741_v62  ;;  %v7956_v5 = vsel %vm6174_vm7, %v4226_v10, %v4227_v15  ;;  %v7958_v38 = vrot.slane %v3722_v6, 5  ;;  %v1080_v6 = vpop.f32.mrf.mxu1  ;;  %v8989_v10 = vld [vmem:[#allocation20_spill] sm:$0xff]  ;;  %v8991_v23 = vld [vmem:[#allocation19_spill] sm:$0xff] }
 0x133   : > { %v8986_v41 = vshrl.u32 %v8978_v1, 16  ;;  %v7962_v4 = vadd.f32 %v1460_v54, %v1068_v33  ;;  %v1089_v43 = vadd.f32 %v5413_v35, %v8988_v21  ;;  %5619 = vmatprep.mubr.msk.bf16.mxu1 %vm685_vm3, %v7837_v30  ;;  %v3677_v62 = vsel %vm5889_vm4, %v7927_v47, %v7895_v57 }
 0x134   : > { %v3732_v15 = vshll.u32 %v7939_v59, 16  ;;  %v8990_v54 = vrot.slane %v8989_v10, 5  ;;  %v8992_v0 = vrot.slane %v8991_v23, 9  ;;  %v3719_v35 = vor.u32 %v3718_v36, %v3715_v46  ;;  %v5414_v11 = vpop.f32.mrf.mxu1  ;;  %v8002_v36 = vld [vmem:[%s5844_s25 + $0xa4] sm:$0x1]  ;;  %v8999_v10 = vld [vmem:[#allocation23_spill] sm:$0xff] }
 0x135   : > { %v3728_v3 = vrot.slane %v8986_v41, 4  ;;  %8987 = vst [vmem:[#allocation7_spill] sm:$0xff] %v7962_v4  ;;  %v4238_v57 = vrot.slane %v8978_v1, 5  ;;  %v7985_v47 = vadd.f32 %v5447_v51, %v1089_v43  ;;  %v8993_v41 = vld [vmem:[#allocation45_spill] sm:$0xff]  ;;  %v1476_v4 = vpop.f32.mrf.mxu0  ;;  %v5190_v19 = vcombine.low %v7934_v37, %v7956_v5  ;;  %v8995_v5 = vld [vmem:[#allocation51_spill] sm:$0xff] }
 0x136   : > { %v7982_v30 = vsel %vm6174_vm7, %v8992_v0, %v8990_v54  ;;  %v1081_v21 = vadd.f32 %v1080_v6, %v8993_v41  ;;  %v8994_v33 = vmov %v8990_v54  ;;  %v3687_v54 = vsel %vm5889_vm4, %v3682_v34, %v7929_v44  ;;  %v9001_v41 = vld [vmem:[#allocation40_spill] sm:$0xff] }
 0x137   : > { %v4233_v29 = vrot.slane %v8994_v33, 4  ;;  %v3711_v1 = vsel %vm5889_vm4, %v7948_v9, %v7950_v58  ;;  %v4234_v51 = vrot.slane %v7901_v53, 5  ;;  %v3729_v46 = vor.u32 %v3728_v3, %v7958_v38  ;;  %v5451_v6 = vpop.f32.mrf.mxu0  ;;  %v1083_v58 = vpop.f32.mrf.mxu1 }
 0x138   : > { %v8004_v37 = vadd.f32 %v1473_v12, %v1081_v21  ;;  %v1092_v43 = vadd.f32 %v5414_v11, %v8995_v5  ;;  %v8996_v33 = vcombine.low %v7795_v27, %v7823_v13  ;;  %v3734_v44 = vrot.slane %v3732_v15, 5  ;;  %v8998_v11 = vld [vmem:[#allocation39_spill] sm:$0xff] }
 0x139   : > { %v5175_v34 = vrot.slane %v8981_v17, 9  ;;  %v8997_v53 = vcombine.low %v7848_v40, %v7852_v50  ;;  %v3720_v9 = vrot.slane %v3719_v35, 4  ;;  %v4240_v12 = vrot.slane %v4238_v57, 4  ;;  %v9000_v27 = vld [vmem:[#allocation55_spill] sm:$0xff]  ;;  %v1489_v15 = vpop.f32.mrf.mxu0  ;;  %v9002_v17 = vld [vmem:[#allocation41_spill] sm:$0xff]  ;;  %v5417_v40 = vpop.f32.mrf.mxu1 }
 0x13a   : > { %5654 = vmatmul.mubr.msk.bf16.gmra.mxu0 %vm685_vm3, %v8996_v33  ;;  %v4241_v3 = vrot.slane %v7939_v59, 5  ;;  %v3743_v23 = vor.u32 %v8999_v10, %v8998_v11  ;;  %v8019_v0 = vadd.f32 %v5448_v2, %v1092_v43  ;;  %v1084_v13 = vadd.f32 %v1083_v58, %v9000_v27  ;;  %5620 = vmatmul.mubr.msk.bf16.gmra.mxu1 %vm685_vm3, %v7864_v39 }
 0x13b   : > { %5657 = vmatprep.mubr.msk.bf16.mxu0 %vm685_vm3, %v8997_v53  ;;  %v3753_v21 = vor.u32 %v9002_v17, %v9001_v41  ;;  %v3756_v5 = vshll.u32 %v8002_v36, 16  ;;  %v3730_v50 = vrot.slane %v3729_v46, 4  ;;  %v9003_v59 = vshrl.u32 %v7403_v18, 16  ;;  %v5452_v11 = vpop.f32.mrf.mxu0  ;;  %5623 = vmatprep.mubr.msk.bf16.mxu1 %vm685_vm3, %v7906_v55  ;;  %v1096_v46 = vpop.f32.mrf.mxu1 }
 0x13c   : > { %v9004_v33 = vshll.u32 %v7403_v18, 16  ;;  %v3770_v43 = vshll.u32 %v7429_v8, 16  ;;  %v8032_v58 = vadd.f32 %v1476_v4, %v1084_v13  ;;  %v1105_v53 = vadd.f32 %v5417_v40, %v7606_v63 }
 0x13d   : > { %v3763_v35 = vrot.slane %v9003_v59, 4  ;;  %v5141_v10 = vcombine.low %v3677_v62, %v3687_v54  ;;  %v8039_v39 = vsel %vm6174_vm7, %v4233_v29, %v4234_v51  ;;  %v3725_v27 = vsel %vm5889_vm4, %v3720_v9, %v7958_v38  ;;  %v9005_v62 = vld [vmem:[#allocation14_spill] sm:$0xff]  ;;  %v1492_v54 = vpop.f32.mrf.mxu0  ;;  %v5418_v40 = vpop.f32.mrf.mxu1 }
 0x13e   : > { %v3766_v2 = vrot.slane %v9004_v33, 5  ;;  %v8046_v4 = vsel %vm6174_vm7, %v5175_v34, %v4238_v57  ;;  %v8050_v63 = vsel %vm6174_vm7, %v4240_v12, %v4241_v3  ;;  %v3744_v13 = vrot.slane %v3743_v23, 4 }
 0x13f   : > { %v8052_v55 = vadd.f32 %v5451_v6, %v1105_v53  ;;  %v1097_v29 = vadd.f32 %v1096_v46, %v9005_v62  ;;  %v3754_v51 = vrot.slane %v3753_v21, 4  ;;  %v3758_v17 = vrot.slane %v3756_v5, 5  ;;  %v5455_v23 = vpop.f32.mrf.mxu0  ;;  %v9008_v21 = vld [vmem:[#allocation35_spill] sm:$0xff] }
 0x140   : > { %v3735_v38 = vsel %vm5889_vm4, %v3730_v50, %v3734_v44  ;;  %v3767_v9 = vor.u32 %v3766_v2, %v3763_v35  ;;  %v8057_v57 = vrot.slane %v3770_v43, 5  ;;  %v9006_v34 = vshrl.u32 %v7429_v8, 16  ;;  %v5089_v50 = vld [vmem:[%s5844_s25 + $0xb0] sm:$0x1]  ;;  %v1099_v35 = vpop.f32.mrf.mxu1 }
 0x141   : > { %v8061_v3 = vadd.f32 %v1489_v15, %v1097_v29  ;;  %v1108_v6 = vadd.f32 %v5418_v40, %v7686_v22  ;;  %v9007_v59 = vcombine.low %v7885_v16, %v7889_v60  ;;  %v9009_v5 = vrot.slane %v9008_v21, 5  ;;  %v1505_v43 = vpop.f32.mrf.mxu0  ;;  %v9014_v29 = vld [vmem:[#allocation46_spill] sm:$0xff] }
 0x142   : > { %v3776_v12 = vrot.slane %v9006_v34, 4  ;;  %v4248_v44 = vrot.slane %v8002_v36, 5  ;;  %v9010_v22 = vsel %vm5889_vm4, %v7936_v52, %v8976_v24  ;;  %v5191_v16 = vcombine.low %v7982_v30, %v8039_v39  ;;  %v5421_v52 = vpop.f32.mrf.mxu1  ;;  %5624 = vmatmul.mubr.msk.bf16.gmra.mxu1 %vm685_vm3, %v7908_v26 }
 0x143   : > { %5658 = vmatmul.mubr.msk.bf16.gmra.mxu0 %vm685_vm3, %v9007_v59  ;;  %v4247_v33 = vrot.slane %v9009_v5, 4  ;;  %v5142_v15 = vcombine.low %v9010_v22, %v3711_v1  ;;  %v5192_v60 = vcombine.low %v8046_v4, %v8050_v63  ;;  %v3749_v36 = vsel %vm5889_vm4, %v3744_v13, %v9001_v41  ;;  %v5456_v46 = vpop.f32.mrf.mxu0  ;;  %5627 = vmatprep.mubr.msk.bf16.mxu1 %vm685_vm3, %v5141_v10 }
 0x144   : > { %5661 = vmatprep.mubr.msk.bf16.mxu0 %vm685_vm3, %v5190_v19  ;;  %v8085_v2 = vadd.f32 %v5452_v11, %v1108_v6  ;;  %v1100_v19 = vadd.f32 %v1099_v35, %v7733_v48  ;;  %v3759_v53 = vsel %vm5889_vm4, %v3754_v51, %v3758_v17  ;;  %v4252_v24 = vrot.slane %v7429_v8, 5  ;;  %v9012_v8 = vld [vmem:[#allocation24_spill] sm:$0xff]  ;;  %v1112_v13 = vpop.f32.mrf.mxu1 }
 0x145   : > { %v5143_v30 = vcombine.low %v3725_v27, %v3735_v38  ;;  %v8093_v1 = vrot.slane %v3767_v9, 4  ;;  %v3777_v39 = vor.u32 %v3776_v12, %v8057_v57  ;;  %v3780_v41 = vshll.u32 %v5089_v50, 16  ;;  %v1508_v38 = vpop.f32.mrf.mxu0 }
 0x146   : > { %v8096_v11 = vadd.f32 %v1492_v54, %v1100_v19  ;;  %v1121_v48 = vadd.f32 %v5421_v52, %v7763_v45  ;;  %v9011_v4 = vmov %v9009_v5  ;;  %v9013_v63 = vrot.slane %v9012_v8, 9  ;;  %v9015_v54 = vld [vmem:[#allocation47_spill] sm:$0xff]  ;;  %v5422_v12 = vpop.f32.mrf.mxu1  ;;  %v9020_v8 = vld [vmem:[#allocation49_spill] sm:$0xff] }
 0x147   : > { %v8110_v27 = vsel %vm6174_vm7, %v4247_v33, %v4248_v44  ;;  %v8112_v62 = vcombine.low %v3749_v36, %v3759_v53  ;;  %v5177_v45 = vrot.slane %v7403_v18, 9  ;;  %v3791_v10 = vor.u32 %v9015_v54, %v9014_v29  ;;  %v5092_v33 = vld [vmem:[%s5844_s25 + $0xbc] sm:$0x1] }
 0x148   : > { %v8106_v26 = vsel %vm6174_vm7, %v9013_v63, %v9011_v4  ;;  %v3818_v51 = vshll.u32 %v7483_v32, 16  ;;  %v8118_v17 = vadd.f32 %v5455_v23, %v1121_v48  ;;  %v1113_v40 = vadd.f32 %v1112_v13, %v7784_v14  ;;  %v5459_v14 = vpop.f32.mrf.mxu0  ;;  %v1115_v36 = vpop.f32.mrf.mxu1  ;;  %v9019_v4 = vld [vmem:[#allocation48_spill] sm:$0xff] }
 0x149   : > { %v4254_v9 = vrot.slane %v4252_v24, 4  ;;  %v4255_v34 = vrot.slane %v5089_v50, 5  ;;  %v5193_v6 = vcombine.low %v8106_v26, %v8110_v27  ;;  %v3773_v18 = vsel %vm5889_vm4, %v8093_v1, %v8057_v57  ;;  %v9022_v13 = vld [vmem:[#allocation32_spill] sm:$0xff] }
 0x14a   : > { %v3778_v59 = vrot.slane %v3777_v39, 4  ;;  %v3782_v21 = vrot.slane %v3780_v41, 5  ;;  %v8127_v5 = vadd.f32 %v1505_v43, %v1113_v40  ;;  %v1124_v23 = vadd.f32 %v5422_v12, %v7817_v20  ;;  %v1521_v1 = vpop.f32.mrf.mxu0  ;;  %v5095_v41 = vld [vmem:[%s5844_s25 + $0xc8] sm:$0x1]  ;;  %v5425_v48 = vpop.f32.mrf.mxu1  ;;  %5628 = vmatmul.mubr.msk.bf16.gmra.mxu1 %vm685_vm3, %v5142_v15  ;;  %v9023_v12 = vld [vmem:[#allocation36_spill] sm:$0xff] }
 0x14b   : > { %5662 = vmatmul.mubr.msk.bf16.gmra.mxu0 %vm685_vm3, %v5191_v16  ;;  %v9016_v44 = vshrl.u32 %v7480_v28, 16  ;;  %v9017_v35 = vshll.u32 %v7480_v28, 16  ;;  %v4253_v57 = vsel %vm6174_vm7, %v5177_v45, %v4252_v24  ;;  %v8139_v19 = vrot.slane %v3791_v10, 4  ;;  %5631 = vmatprep.mubr.msk.bf16.mxu1 %vm685_vm3, %v5143_v30 }
 0x14c   : > { %5665 = vmatprep.mubr.msk.bf16.mxu0 %vm685_vm3, %v5192_v60  ;;  %v8141_v20 = vrot.slane %v3818_v51, 5  ;;  %v9018_v43 = vshrl.u32 %v7483_v32, 16  ;;  %v8145_v53 = vadd.f32 %v5456_v46, %v1124_v23  ;;  %v1116_v52 = vadd.f32 %v1115_v36, %v7828_v61  ;;  %v5460_v29 = vpop.f32.mrf.mxu0  ;;  %v1128_v15 = vpop.f32.mrf.mxu1 }
 0x14d   : > { %v3811_v50 = vrot.slane %v9016_v44, 4  ;;  %v3814_v22 = vrot.slane %v9017_v35, 5  ;;  %v4256_v39 = vsel %vm6174_vm7, %v4254_v9, %v4255_v34  ;;  %v4266_v60 = vrot.slane %v7483_v32, 5 }
 0x14e   : > { %v3824_v16 = vrot.slane %v9018_v43, 4  ;;  %v3783_v24 = vsel %vm5889_vm4, %v3778_v59, %v3782_v21  ;;  %v3801_v63 = vor.u32 %v9020_v8, %v9019_v4  ;;  %v3804_v46 = vshll.u32 %v5092_v33, 16  ;;  %v5426_v44 = vpop.f32.mrf.mxu1 }
 0x14f   : > { %v9021_v26 = vrot.slane %v7432_v25, 5  ;;  %v8159_v27 = vadd.f32 %v1508_v38, %v1116_v52  ;;  %v1137_v45 = vadd.f32 %v5425_v48, %v9022_v13  ;;  %v4262_v32 = vrot.slane %v5092_v33, 5  ;;  %v1524_v38 = vpop.f32.mrf.mxu0 }
 0x150   : > { %v3815_v54 = vor.u32 %v3814_v22, %v3811_v50  ;;  %v5194_v10 = vcombine.low %v4253_v57, %v4256_v39  ;;  %v3825_v51 = vor.u32 %v3824_v16, %v8141_v20  ;;  %v3828_v40 = vshll.u32 %v5095_v41, 16  ;;  %v1131_v39 = vpop.f32.mrf.mxu1 }
 0x151   : > { %v4261_v61 = vrot.slane %v9021_v26, 4  ;;  %v5179_v9 = vrot.slane %v7480_v28, 9  ;;  %v8165_v34 = vadd.f32 %v5459_v14, %v1137_v45  ;;  %v1129_v59 = vadd.f32 %v1128_v15, %v9023_v12  ;;  %v9026_v14 = vld [vmem:[#allocation22_spill] sm:$0xff]  ;;  %v5463_v43 = vpop.f32.mrf.mxu0  ;;  %v9030_v45 = vld [vmem:[#allocation56_spill] sm:$0xff] }
 0x152   : > { %v4268_v21 = vrot.slane %v4266_v60, 4  ;;  %v4269_v23 = vrot.slane %v5095_v41, 5  ;;  %v5145_v35 = vcombine.low %v3773_v18, %v3783_v24  ;;  %v3802_v30 = vrot.slane %v3801_v63, 4  ;;  %v5098_v41 = vld [vmem:[%s5844_s25 + $0xd4] sm:$0x1]  ;;  %5632 = vmatmul.mubr.msk.bf16.gmra.mxu1 %vm685_vm3, %v8112_v62 }
 0x153   : > { %v3806_v33 = vrot.slane %v3804_v46, 5  ;;  %v9024_v50 = vmov %v9021_v26  ;;  %v9025_v22 = vrot.slane %v7420_v49, 9  ;;  %v8174_v28 = vadd.f32 %v1521_v1, %v1129_v59  ;;  %5666 = vmatmul.mubr.msk.bf16.gmra.mxu0 %vm685_vm3, %v5193_v6  ;;  %v9027_v6 = vld [vmem:[#allocation42_spill] sm:$0xff]  ;;  %v1537_v8 = vpop.f32.mrf.mxu0  ;;  %v5429_v46 = vpop.f32.mrf.mxu1  ;;  %v9028_v26 = vld [vmem:[#allocation52_spill] sm:$0xff] }
 0x154   : > { %v1140_v57 = vadd.f32 %v5426_v44, %v9026_v14  ;;  %v4263_v18 = vsel %vm6174_vm7, %v4261_v61, %v4262_v32  ;;  %v3816_v16 = vrot.slane %v3815_v54, 4  ;;  %v4273_v52 = vrot.slane %v7512_v7, 5  ;;  %5669 = vmatprep.mubr.msk.bf16.mxu0 %vm685_vm3, %v5194_v10  ;;  %v9029_v61 = vld [vmem:[#allocation54_spill] sm:$0xff]  ;;  %5635 = vmatprep.mubr.msk.bf16.mxu1 %vm685_vm3, %v5145_v35 }
 0x155   : > { %v4260_v36 = vsel %vm6174_vm7, %v9025_v22, %v9024_v50  ;;  %v3797_v49 = vsel %vm5889_vm4, %v8139_v19, %v9019_v4  ;;  %v3826_v25 = vrot.slane %v3825_v51, 4  ;;  %v3830_v1 = vrot.slane %v3828_v40, 5  ;;  %v5464_v10 = vpop.f32.mrf.mxu0  ;;  %v1144_v40 = vpop.f32.mrf.mxu1 }
 0x156   : > { %v8187_v48 = vadd.f32 %v5460_v29, %v1140_v57  ;;  %v1132_v24 = vadd.f32 %v1131_v39, %v9027_v6  ;;  %v4267_v63 = vsel %vm6174_vm7, %v5179_v9, %v4266_v60  ;;  %v4270_v7 = vsel %vm6174_vm7, %v4268_v21, %v4269_v23  ;;  %v9031_v29 = vld [vmem:[#allocation58_spill] sm:$0xff]  ;;  %v9032_v60 = vld [vmem:[#allocation44_spill] sm:$0xff] }
 0x157   : > { %v3807_v19 = vsel %vm5889_vm4, %v3802_v30, %v3806_v33  ;;  %v5195_v4 = vcombine.low %v4260_v36, %v4263_v18  ;;  %v3839_v13 = vor.u32 %v9029_v61, %v9028_v26  ;;  %v3849_v32 = vor.u32 %v9031_v29, %v9030_v45  ;;  %v1540_v30 = vpop.f32.mrf.mxu0  ;;  %v5430_v33 = vpop.f32.mrf.mxu1  ;;  %v9038_v61 = vld [vmem:[#allocation6_spill] sm:$0xff] }
 0x158   : > { %v8202_v54 = vadd.f32 %v1524_v38, %v1132_v24  ;;  %v1153_v15 = vadd.f32 %v5429_v46, %v9032_v60  ;;  %v3821_v62 = vsel %vm5889_vm4, %v3816_v16, %v8141_v20  ;;  %v3852_v51 = vshll.u32 %v5098_v41, 16  ;;  %v9033_v38 = vld [vmem:[#allocation50_spill] sm:$0xff]  ;;  %v9034_v20 = vld [vmem:[#allocation53_spill] sm:$0xff] }
 0x159   : > { %v3831_v9 = vsel %vm5889_vm4, %v3826_v25, %v3830_v1  ;;  %v5196_v12 = vcombine.low %v4267_v63, %v4270_v7  ;;  %v4275_v59 = vrot.slane %v4273_v52, 4  ;;  %v4276_v21 = vrot.slane %v5098_v41, 5  ;;  %v5467_v57 = vpop.f32.mrf.mxu0  ;;  %v1147_v39 = vpop.f32.mrf.mxu1  ;;  %v9036_v41 = vld [vmem:[#allocation57_spill] sm:$0xff] }
 0x15a   : > { %v8211_v23 = vadd.f32 %v5463_v43, %v1153_v15  ;;  %v1145_v44 = vadd.f32 %v1144_v40, %v9033_v38  ;;  %v5146_v50 = vcombine.low %v3797_v49, %v3807_v19  ;;  %v3840_v35 = vrot.slane %v3839_v13, 4  ;;  %v9039_v15 = vld [vmem:[#allocation11_spill] sm:$0xff]  ;;  %v9041_v38 = vld [vmem:[#allocation25_spill] sm:$0xff] }
 0x15b   : > { %v3850_v22 = vrot.slane %v3849_v32, 4  ;;  %v1156_v14 = vadd.f32 %v5430_v33, %v9034_v20  ;;  %5670 = vmatmul.mubr.msk.bf16.gmra.mxu0 %vm685_vm3, %v5195_v4  ;;  %v5147_v18 = vcombine.low %v3821_v62, %v3831_v9  ;;  %v3854_v16 = vrot.slane %v3852_v51, 5  ;;  %v1553_v24 = vpop.f32.mrf.mxu0 }
 0x15c   : > { %v8214_v36 = vadd.f32 %v1537_v8, %v1145_v44  ;;  %5673 = vmatprep.mubr.msk.bf16.mxu0 %vm685_vm3, %v5196_v12  ;;  %v9035_v43 = vrot.slane %v7500_v42, 9  ;;  %v4277_v49 = vsel %vm6174_vm7, %v4275_v59, %v4276_v21  ;;  %v1148_v6 = vadd.f32 %v1147_v39, %v9036_v41  ;;  %v5433_v8 = vpop.f32.mrf.mxu1  ;;  %5636 = vmatmul.mubr.msk.bf16.gmra.mxu1 %vm685_vm3, %v5146_v50  ;;  %v9037_v42 = vld [vmem:[#allocation8_spill] sm:$0xff] }
 0x15d   : > { %v8225_v1 = vadd.f32 %v5464_v10, %v1156_v14  ;;  %v3845_v63 = vsel %vm5889_vm4, %v3840_v35, %v9030_v45  ;;  %v1169_v46 = vadd.f32 %v5433_v8, %v9037_v42  ;;  %5639 = vmatprep.mubr.msk.bf16.mxu1 %vm685_vm3, %v5147_v18  ;;  %v3855_v31 = vsel %vm5889_vm4, %v3850_v22, %v3854_v16  ;;  %v9042_v35 = vld [vmem:[#allocation2_spill] sm:$0xff]  ;;  %v9043_v18 = vld [vmem:[#allocation9_spill] sm:$0xff] }
 0x15e   : > { %v4274_v25 = vsel %vm6174_vm7, %v9035_v43, %v4273_v52  ;;  %v8232_v7 = vadd.f32 %v1540_v30, %v1148_v6  ;;  %v5468_v52 = vpop.f32.mrf.mxu0  ;;  %v1160_v4 = vpop.f32.mrf.mxu1  ;;  %v5148_v60 = vcombine.low %v3845_v63, %v3855_v31  ;;  %v9045_v63 = vld [vmem:[#allocation10_spill] sm:$0xff] }
 0x15f   : > { %v5197_v19 = vcombine.low %v4274_v25, %v4277_v49  ;;  %v8238_v26 = vadd.f32 %v5467_v57, %v1169_v46  ;;  %v1161_v13 = vadd.f32 %v1160_v4, %v9038_v61  ;;  %v9044_v49 = vld [vmem:[#allocation12_spill] sm:$0xff] }
 0x160   : > { %v1556_v29 = vpop.f32.mrf.mxu0  ;;  %v5434_v32 = vpop.f32.mrf.mxu1 }
 0x161   : > { %v8241_v45 = vadd.f32 %v1553_v24, %v1161_v13  ;;  %v1172_v10 = vadd.f32 %v5434_v32, %v9039_v15  ;;  %v9047_v32 = vld [vmem:[#allocation4_spill] sm:$0xff] }
 0x162   : > { %v5471_v62 = vpop.f32.mrf.mxu0  ;;  %v1163_v51 = vpop.f32.mrf.mxu1 }
 0x163   : > { %5674 = vmatmul.mubr.msk.bf16.gmra.mxu0 %vm685_vm3, %v5197_v19  ;;  %v8245_v40 = vadd.f32 %v5468_v52, %v1172_v10  ;;  %v1164_v9 = vadd.f32 %v1163_v51, %v9040_v56  ;;  %v9046_v19 = vld [vmem:[#allocation13_spill] sm:$0xff]  ;;  %v9048_v51 = vld [vmem:[#allocation7_spill] sm:$0xff] }
 0x164   : > { %v1569_v12 = vpop.f32.mrf.mxu0  ;;  %v5437_v59 = vpop.f32.mrf.mxu1  ;;  %5640 = vmatmul.mubr.msk.bf16.gmra.mxu1 %vm685_vm3, %v5148_v60 }
 0x165   : > { %v8249_v21 = vadd.f32 %v1556_v29, %v1164_v9  ;;  %v1185_v44 = vadd.f32 %v5437_v59, %v9041_v38 }
 0x166   : > { %v5472_v30 = vpop.f32.mrf.mxu0  ;;  %v1176_v33 = vpop.f32.mrf.mxu1 }
 0x167   : > { %v8252_v50 = vadd.f32 %v5471_v62, %v1185_v44  ;;  %v1177_v22 = vadd.f32 %v1176_v33, %v9042_v35 }
 0x168   : > { %v1572_v20 = vpop.f32.mrf.mxu0  ;;  %v5438_v14 = vpop.f32.mrf.mxu1 }
 0x169   : > { %v8255_v57 = vadd.f32 %v1569_v12, %v1177_v22  ;;  %v1188_v16 = vadd.f32 %v5438_v14, %v9043_v18 }
 0x16a   : > { %v5511_v39 = vpop.f32.mrf.mxu0  ;;  %v1179_v43 = vpop.f32.mrf.mxu1 }
 0x16b   : > { %v8258_v25 = vadd.f32 %v5472_v30, %v1188_v16  ;;  %v1180_v41 = vadd.f32 %v1179_v43, %v9044_v49 }
 0x16c   : > { %v2513_v6 = vpop.f32.mrf.mxu0  ;;  %v5477_v24 = vpop.f32.mrf.mxu1 }
 0x16d   : > { %v8261_v8 = vadd.f32 %v1572_v20, %v1180_v41  ;;  %v1964_v42 = vadd.f32 %v5477_v24, %v9045_v63 }
 0x16e   : > { %v5512_v46 = vpop.f32.mrf.mxu0  ;;  %v1835_v52 = vpop.f32.mrf.mxu1 }
 0x16f   : > { %v8264_v31 = vadd.f32 %v5511_v39, %v1964_v42  ;;  %v1962_v4 = vadd.f32 %v1835_v52, %v9046_v19 }
 0x170   : > { %v2516_v61 = vpop.f32.mrf.mxu0  ;;  %v5478_v13 = vpop.f32.mrf.mxu1 }
 0x171   : > { %v8267_v29 = vadd.f32 %v2513_v6, %v1962_v4  ;;  %v1965_v60 = vadd.f32 %v5478_v13, %v9047_v32 }
 0x172   : > { %v5515_v15 = vpop.f32.mrf.mxu0  ;;  %v1838_v10 = vpop.f32.mrf.mxu1 }
 0x173   : > { %v8270_v62 = vadd.f32 %v5512_v46, %v1965_v60  ;;  %v1963_v56 = vadd.f32 %v1838_v10, %v9048_v51 }
 0x174   : > { %v2529_v9 = vpop.f32.mrf.mxu0  ;;  %v5481_v12 = vpop.f32.mrf.mxu1 }
 0x175   : > { %v8273_v59 = vadd.f32 %v2516_v61, %v1963_v56  ;;  %v1968_v38 = vadd.f32 %v5481_v12, %v7985_v47 }
 0x176   : > { %v5516_v44 = vpop.f32.mrf.mxu0  ;;  %v1851_v30 = vpop.f32.mrf.mxu1 }
 0x177   : > { %v8276_v33 = vadd.f32 %v5515_v15, %v1968_v38  ;;  %v1966_v35 = vadd.f32 %v1851_v30, %v8004_v37 }
 0x178   : > { %v2532_v22 = vpop.f32.mrf.mxu0  ;;  %v5482_v20 = vpop.f32.mrf.mxu1 }
 0x179   : > { %v8279_v14 = vadd.f32 %v2529_v9, %v1966_v35  ;;  %v1969_v18 = vadd.f32 %v5482_v20, %v8019_v0 }
 0x17a   : > { %v5519_v16 = vpop.f32.mrf.mxu0  ;;  %v1854_v39 = vpop.f32.mrf.mxu1 }
 0x17b   : > { %v8282_v43 = vadd.f32 %v5516_v44, %v1969_v18  ;;  %v1967_v49 = vadd.f32 %v1854_v39, %v8032_v58 }
 0x17c   : > { %v2545_v41 = vpop.f32.mrf.mxu0  ;;  %v5485_v47 = vpop.f32.mrf.mxu1 }
 0x17d   : > { %v8285_v6 = vadd.f32 %v2532_v22, %v1967_v49  ;;  %v1972_v24 = vadd.f32 %v5485_v47, %v8052_v55 }
 0x17e   : > { %v5520_v63 = vpop.f32.mrf.mxu0  ;;  %v1867_v37 = vpop.f32.mrf.mxu1 }
 0x17f   : > { %v8288_v42 = vadd.f32 %v5519_v16, %v1972_v24  ;;  %v1970_v46 = vadd.f32 %v1867_v37, %v8061_v3 }
 0x180   : > { %v2548_v52 = vpop.f32.mrf.mxu0  ;;  %v5486_v0 = vpop.f32.mrf.mxu1 }
 0x181   : > { %v8291_v19 = vadd.f32 %v2545_v41, %v1970_v46  ;;  %v1973_v4 = vadd.f32 %v5486_v0, %v8085_v2 }
 0x182   : > { %v5523_v61 = vpop.f32.mrf.mxu0  ;;  %v1870_v58 = vpop.f32.mrf.mxu1 }
 0x183   : > { %v8294_v13 = vadd.f32 %v5520_v63, %v1973_v4  ;;  %v1971_v32 = vadd.f32 %v1870_v58, %v8096_v11 }
 0x184   : > { %v2561_v60 = vpop.f32.mrf.mxu0  ;;  %v5489_v55 = vpop.f32.mrf.mxu1 }
 0x185   : > { %v8297_v15 = vadd.f32 %v2548_v52, %v1971_v32  ;;  %v1976_v10 = vadd.f32 %v5489_v55, %v8118_v17 }
 0x186   : > { %v5524_v51 = vpop.f32.mrf.mxu0  ;;  %v1883_v3 = vpop.f32.mrf.mxu1 }
 0x187   : > { %v8300_v56 = vadd.f32 %v5523_v61, %v1976_v10  ;;  %v1974_v9 = vadd.f32 %v1883_v3, %v8127_v5 }
 0x188   : > { %v2564_v12 = vpop.f32.mrf.mxu0  ;;  %v5490_v2 = vpop.f32.mrf.mxu1 }
 0x189   : > { %v8303_v38 = vadd.f32 %v2561_v60, %v1974_v9  ;;  %v1977_v44 = vadd.f32 %v5490_v2, %v8145_v53 }
 0x18a   : > { %v5527_v30 = vpop.f32.mrf.mxu0  ;;  %v1886_v11 = vpop.f32.mrf.mxu1 }
 0x18b   : > { %v8306_v35 = vadd.f32 %v5524_v51, %v1977_v44  ;;  %v1975_v22 = vadd.f32 %v1886_v11, %v8159_v27 }
 0x18c   : > { %v2577_v20 = vpop.f32.mrf.mxu0  ;;  %v5493_v17 = vpop.f32.mrf.mxu1 }
 0x18d   : > { %v8309_v18 = vadd.f32 %v2564_v12, %v1975_v22  ;;  %v1980_v16 = vadd.f32 %v5493_v17, %v8165_v34 }
 0x18e   : > { %v5528_v39 = vpop.f32.mrf.mxu0  ;;  %v1899_v5 = vpop.f32.mrf.mxu1 }
 0x18f   : > { %v8312_v49 = vadd.f32 %v5527_v30, %v1980_v16  ;;  %v1978_v41 = vadd.f32 %v1899_v5, %v8174_v28 }
 0x190   : > { %v2580_v47 = vpop.f32.mrf.mxu0  ;;  %v5494_v53 = vpop.f32.mrf.mxu1 }
 0x191   : > { %v8315_v24 = vadd.f32 %v2577_v20, %v1978_v41  ;;  %v1981_v63 = vadd.f32 %v5494_v53, %v8187_v48 }
 0x192   : > { %v5531_v37 = vpop.f32.mrf.mxu0  ;;  %v1902_v27 = vpop.f32.mrf.mxu1 }
 0x193   : > { %v8318_v46 = vadd.f32 %v5528_v39, %v1981_v63  ;;  %v1979_v52 = vadd.f32 %v1902_v27, %v8202_v54 }
 0x194   : > { %v2593_v0 = vpop.f32.mrf.mxu0  ;;  %v5497_v34 = vpop.f32.mrf.mxu1 }
 0x195   : > { %9049 = vst [vmem:[#allocation5_spill] sm:$0xff] %v8318_v46  ;;  %v8321_v4 = vadd.f32 %v2580_v47, %v1979_v52  ;;  %v1984_v61 = vadd.f32 %v5497_v34, %v8211_v23 }
 0x196   : > { %v5532_v58 = vpop.f32.mrf.mxu0  ;;  %v1915_v28 = vpop.f32.mrf.mxu1 }
 0x197   : > { %9050 = vst [vmem:[#allocation15_spill] sm:$0xff] %v8321_v4  ;;  %v8324_v32 = vadd.f32 %v5531_v37, %v1984_v61  ;;  %v1982_v60 = vadd.f32 %v1915_v28, %v8214_v36 }
 0x198   : > { %v2596_v55 = vpop.f32.mrf.mxu0  ;;  %v5498_v48 = vpop.f32.mrf.mxu1 }
 0x199   : > { %9051 = vst [vmem:[#allocation26_spill] sm:$0xff] %v8324_v32  ;;  %v8327_v10 = vadd.f32 %v2593_v0, %v1982_v60  ;;  %v1985_v51 = vadd.f32 %v5498_v48, %v8225_v1 }
 0x19a   : > { %v5535_v3 = vpop.f32.mrf.mxu0  ;;  %v1918_v54 = vpop.f32.mrf.mxu1 }
 0x19b   : > { %9052 = vst [vmem:[#allocation18_spill] sm:$0xff] %v8327_v10  ;;  %v8330_v9 = vadd.f32 %v5532_v58, %v1985_v51  ;;  %v1983_v12 = vadd.f32 %v1918_v54, %v8232_v7 }
 0x19c   : > { %v2609_v2 = vpop.f32.mrf.mxu0  ;;  %v5501_v23 = vpop.f32.mrf.mxu1 }
 0x19d   : > { %9053 = vst [vmem:[#allocation16_spill] sm:$0xff] %v8330_v9  ;;  %v8333_v44 = vadd.f32 %v2596_v55, %v1983_v12  ;;  %v1988_v30 = vadd.f32 %v5501_v23, %v8238_v26 }
 0x19e   : > { %v5536_v11 = vpop.f32.mrf.mxu0  ;;  %v1931_v36 = vpop.f32.mrf.mxu1 }
 0x19f   : > { %9054 = vst [vmem:[#allocation17_spill] sm:$0xff] %v8333_v44  ;;  %v8336_v22 = vadd.f32 %v5535_v3, %v1988_v30  ;;  %v1986_v20 = vadd.f32 %v1931_v36, %v8241_v45 }
 0x1a0   : > { %v2612_v17 = vpop.f32.mrf.mxu0  ;;  %v5502_v1 = vpop.f32.mrf.mxu1 }
 0x1a1   : > { %9055 = vst [vmem:[#allocation27_spill] sm:$0xff] %v8336_v22  ;;  %v8339_v16 = vadd.f32 %v2609_v2, %v1986_v20  ;;  %v1989_v39 = vadd.f32 %v5502_v1, %v8245_v40 }
 0x1a2   : > { %v5539_v5 = vpop.f32.mrf.mxu0  ;;  %v1934_v7 = vpop.f32.mrf.mxu1 }
 0x1a3   : > { %9056 = vst [vmem:[#allocation28_spill] sm:$0xff] %v8339_v16  ;;  %v8342_v41 = vadd.f32 %v5536_v11, %v1989_v39  ;;  %v1987_v47 = vadd.f32 %v1934_v7, %v8249_v21 }
 0x1a4   : > { %v2625_v53 = vpop.f32.mrf.mxu0  ;;  %v5505_v26 = vpop.f32.mrf.mxu1 }
 0x1a5   : > { %9057 = vst [vmem:[#allocation29_spill] sm:$0xff] %v8342_v41  ;;  %v8345_v63 = vadd.f32 %v2612_v17, %v1987_v47  ;;  %v1992_v37 = vadd.f32 %v5505_v26, %v8252_v50 }
 0x1a6   : > { %v5540_v27 = vpop.f32.mrf.mxu0  ;;  %v1947_v45 = vpop.f32.mrf.mxu1 }
 0x1a7   : > { %9058 = vst [vmem:[#allocation34_spill] sm:$0xff] %v8345_v63  ;;  %v8348_v52 = vadd.f32 %v5539_v5, %v1992_v37  ;;  %v1990_v0 = vadd.f32 %v1947_v45, %v8255_v57 }
 0x1a8   : > { %v2628_v34 = vpop.f32.mrf.mxu0  ;;  %v5506_v40 = vpop.f32.mrf.mxu1 }
 0x1a9   : > { %9059 = vst [vmem:[#allocation21_spill] sm:$0xff] %v8348_v52  ;;  %v8351_v61 = vadd.f32 %v2625_v53, %v1990_v0  ;;  %v1993_v58 = vadd.f32 %v5506_v40, %v8258_v25 }
 0x1aa   : > { %v8354_v28 = vpop.f32.mrf.mxu0  ;;  %v1950_v21 = vpop.f32.mrf.mxu1 }
 0x1ab   : > { %9060 = vst [vmem:[#allocation33_spill] sm:$0xff] %v8351_v61  ;;  %v8356_v60 = vadd.f32 %v5540_v27, %v1993_v58  ;;  %v1991_v55 = vadd.f32 %v1950_v21, %v8261_v8 }
 0x1ac   : > { %v8359_v50 = vpop.f32.mrf.mxu0  ;;  %v5545_v48 = vpop.f32.mrf.mxu1 }
 0x1ad   : > { %9061 = vst [vmem:[#allocation31_spill] sm:$0xff] %v8356_v60  ;;  %v8361_v51 = vadd.f32 %v2628_v34, %v1991_v55 }
 0x1ae   : > { %v8363_v3 = vpop.f32.mrf.mxu0  ;;  %v2935_v57 = vpop.f32.mrf.mxu1 }
 0x1af   : > { %9062 = vst [vmem:[#allocation37_spill] sm:$0xff] %v8361_v51 }
 0x1b0   : > { %v8365_v54 = vpop.f32.mrf.mxu0  ;;  %v5546_v12 = vpop.f32.mrf.mxu1 }
 0x1b2   : > { %v8367_v2 = vpop.f32.mrf.mxu0  ;;  %v8369_v25 = vpop.f32.mrf.mxu1 }
 0x1b4   : > { %v8371_v23 = vpop.f32.mrf.mxu0  ;;  %v8373_v30 = vpop.f32.mrf.mxu1 }
 0x1b6   : > { %v8375_v8 = vpop.f32.mrf.mxu0  ;;  %v8377_v11 = vpop.f32.mrf.mxu1 }
 0x1b8   : > { %v8379_v36 = vpop.f32.mrf.mxu0  ;;  %v8381_v20 = vpop.f32.mrf.mxu1 }
 0x1ba   : > { %v8383_v17 = vpop.f32.mrf.mxu0  ;;  %v8385_v1 = vpop.f32.mrf.mxu1 }
 0x1bc   : > { %v8387_v39 = vpop.f32.mrf.mxu0  ;;  %v8389_v5 = vpop.f32.mrf.mxu1 }
 0x1be   : > { %v8391_v7 = vpop.f32.mrf.mxu0  ;;  %v8393_v47 = vpop.f32.mrf.mxu1 }
 0x1c0   : > { %v8395_v53 = vpop.f32.mrf.mxu0  ;;  %v8397_v26 = vpop.f32.mrf.mxu1 }
 0x1c2   : > { %v8399_v37 = vpop.f32.mrf.mxu0  ;;  %v8401_v27 = vpop.f32.mrf.mxu1 }
 0x1c4   : > { %v8403_v45 = vpop.f32.mrf.mxu0  ;;  %v8405_v0 = vpop.f32.mrf.mxu1 }
 0x1c6   : > { %v8407_v34 = vpop.f32.mrf.mxu0  ;;  %v8409_v40 = vpop.f32.mrf.mxu1 }
 0x1c8   : > { %v8411_v58 = vpop.f32.mrf.mxu0  ;;  %v8413_v21 = vpop.f32.mrf.mxu1 }
 0x1ca   : > { %v8415_v55 = vpop.f32.mrf.mxu0  ;;  %v8417_v51 = vpop.f32.mrf.mxu1 }
 0x1cc   : > { %v8419_v60 = vpop.f32.mrf.mxu0  ;;  %v8421_v61 = vpop.f32.mrf.mxu1 }
 0x1cd   : > { %9063 = vst [vmem:[#allocation30_spill] sm:$0xff] %v8419_v60 }
 0x1ce   : > { %v8423_v52 = vpop.f32.mrf.mxu0  ;;  %v8425_v63 = vpop.f32.mrf.mxu1 }
 0x1cf   : > { %9064 = vst [vmem:[#allocation38_spill] sm:$0xff] %v8423_v52 }
 0x1d0   : > { %v8427_v41 = vpop.f32.mrf.mxu0  ;;  %v8429_v16 = vpop.f32.mrf.mxu1 }
 0x1d1   : > { %9065 = vst [vmem:[#allocation43_spill] sm:$0xff] %v8427_v41  ;;  %9066 = vst [vmem:[#allocation20_spill] sm:$0xff] %v8429_v16 }
 0x1d2   : > { %v8431_v22 = vpop.f32.mrf.mxu0  ;;  %v8433_v44 = vpop.f32.mrf.mxu1 }
 0x1d3   : > { %9067 = vst [vmem:[#allocation19_spill] sm:$0xff] %v8431_v22  ;;  %9068 = vst [vmem:[#allocation45_spill] sm:$0xff] %v8433_v44 }
 0x1d4   : > { %v8435_v9 = vpop.f32.mrf.mxu0  ;;  %v8437_v10 = vpop.f32.mrf.mxu1 }
 0x1d5   : > { %9069 = vst [vmem:[#allocation51_spill] sm:$0xff] %v8435_v9  ;;  %9070 = vst [vmem:[#allocation39_spill] sm:$0xff] %v8437_v10 }
 0x1d6   : > { %v8439_v32 = vpop.f32.mrf.mxu0  ;;  %v8441_v4 = vpop.f32.mrf.mxu1 }
 0x1d7   : > { %9071 = vst [vmem:[#allocation23_spill] sm:$0xff] %v8439_v32  ;;  %9072 = vst [vmem:[#allocation55_spill] sm:$0xff] %v8441_v4 }
 0x1d8   : > { %v8443_v60 = vpop.f32.mrf.mxu0  ;;  %v8445_v52 = vpop.f32.mrf.mxu1 }
 0x1d9   : > { %9073 = vst [vmem:[#allocation40_spill] sm:$0xff] %v8443_v60  ;;  %9074 = vst [vmem:[#allocation41_spill] sm:$0xff] %v8445_v52 }
 0x1da   : > { %v8447_v46 = vpop.f32.mrf.mxu0  ;;  %v8449_v41 = vpop.f32.mrf.mxu1 }
 0x1db   : > { %9075 = vst [vmem:[#allocation14_spill] sm:$0xff] %v8447_v46  ;;  %9076 = vst [vmem:[#allocation35_spill] sm:$0xff] %v8449_v41 }
 0x1dc   : > { %v8451_v16 = vpop.f32.mrf.mxu0  ;;  %v8453_v22 = vpop.f32.mrf.mxu1 }
 0x1dd   : > { %9077 = vst [vmem:[#allocation24_spill] sm:$0xff] %v8451_v16  ;;  %9078 = vst [vmem:[#allocation46_spill] sm:$0xff] %v8453_v22 }
 0x1de   : > { %v8455_v44 = vpop.f32.mrf.mxu0  ;;  %v8457_v9 = vpop.f32.mrf.mxu1 }
 0x1df   : > { %9079 = vst [vmem:[#allocation47_spill] sm:$0xff] %v8455_v44  ;;  %9080 = vst [vmem:[#allocation48_spill] sm:$0xff] %v8457_v9  ;;  %v3064_v44 = vadd.f32 %v5545_v48, %v8264_v31  ;;  %v3063_v31 = vadd.f32 %v8369_v25, %v8273_v59  ;;  %v3066_v59 = vadd.f32 %v8377_v11, %v8279_v14 }
 0x1e0   : > { %v8459_v10 = vpop.f32.mrf.mxu0  ;;  %v8461_v32 = vpop.f32.mrf.mxu1 }
 0x1e1   : > { %9081 = vst [vmem:[#allocation49_spill] sm:$0xff] %v8459_v10  ;;  %9082 = vst [vmem:[#allocation32_spill] sm:$0xff] %v8461_v32  ;;  %v3062_v10 = vadd.f32 %v2935_v57, %v8267_v29  ;;  %v8493_v29 = vld [vmem:[%s8660_s2] ss:$0 sm:$0xff]  ;;  %v3444_v11 = vadd.f32 %v8371_v23, %v3066_v59 }
 0x1e2   : > { %v8463_v4 = vpop.f32.mrf.mxu0  ;;  %v8465_v60 = vpop.f32.mrf.mxu1 }
 0x1e3   : > { %9083 = vst [vmem:[#allocation36_spill] sm:$0xff] %v8463_v4  ;;  %9084 = vst [vmem:[#allocation22_spill] sm:$0xff] %v8465_v60 }
 0x1e4   : > { %v8467_v52 = vpop.f32.mrf.mxu0  ;;  %v8469_v46 = vpop.f32.mrf.mxu1 }
 0x1e5   : > { %9085 = vst [vmem:[#allocation42_spill] sm:$0xff] %v8467_v52  ;;  %9086 = vst [vmem:[#allocation52_spill] sm:$0xff] %v8469_v46  ;;  %v3442_v52 = vadd.f32 %v8354_v28, %v3064_v44  ;;  %v3065_v46 = vadd.f32 %v5546_v12, %v8270_v62 }
 0x1e6   : > { %v8471_v41 = vpop.f32.mrf.mxu0  ;;  %v8473_v16 = vpop.f32.mrf.mxu1 }
 0x1e7   : > { %9087 = vst [vmem:[#allocation54_spill] sm:$0xff] %v8471_v41  ;;  %9088 = vst [vmem:[#allocation56_spill] sm:$0xff] %v8473_v16  ;;  %v3440_v16 = vadd.f32 %v8359_v50, %v3062_v10  ;;  %v3443_v62 = vadd.f32 %v8363_v3, %v3065_v46  ;;  %v3069_v46 = vadd.f32 %v8381_v20, %v8282_v43 }
 0x1e8   : > { %v8476_v22 = vpop.f32.mrf.mxu0  ;;  %v8478_v9 = vpop.f32.mrf.mxu1 }
 0x1e9   : > { %9089 = vst [vmem:[#allocation58_spill] sm:$0xff] %v8476_v22  ;;  %9090 = vst [vmem:[#allocation44_spill] sm:$0xff] %v8478_v9  ;;  %v3068_v9 = vadd.f32 %v8373_v30, %v8276_v33 }
 0x1ea   : > { %v5647_v4 = vpop.f32.mrf.mxu0  ;;  %v8481_v32 = vpop.f32.mrf.mxu1 }
 0x1eb   : > { %v3446_v30 = vadd.f32 %v8367_v2, %v3068_v9  ;;  %v3067_v9 = vadd.f32 %v8385_v1, %v8285_v6 }
 0x1ec   : > { %v4413_v60 = vpop.f32.mrf.mxu0  ;;  %v5613_v41 = vpop.f32.mrf.mxu1 }
 0x1ed   : > { %v4120_v48 = vadd.f32 %v5613_v41, %v3442_v52  ;;  %v3441_v52 = vadd.f32 %v8365_v54, %v3063_v31 }
 0x1ee   : > { %v5648_v22 = vpop.f32.mrf.mxu0  ;;  %v3991_v44 = vpop.f32.mrf.mxu1 }
 0x1ef   : > { %v4542_v28 = vadd.f32 %v5647_v4, %v4120_v48  ;;  %v4118_v57 = vadd.f32 %v3991_v44, %v3440_v16 }
 0x1f0   : > { %v4416_v10 = vpop.f32.mrf.mxu0  ;;  %v5614_v41 = vpop.f32.mrf.mxu1 }
 0x1f1   : > { %v4581_v33 = vadd.f32 %v8493_v29, %v4542_v28  ;;  %v4540_v50 = vadd.f32 %v4413_v60, %v4118_v57  ;;  %v4121_v12 = vadd.f32 %v5614_v41, %v3443_v62  ;;  %v3447_v62 = vadd.f32 %v8375_v8, %v3069_v46 }
 0x1f2   : > { %v5651_v25 = vpop.f32.mrf.mxu0  ;;  %v3994_v14 = vpop.f32.mrf.mxu1  ;;  %v3445_v41 = vadd.f32 %v8379_v36, %v3067_v9  ;;  %v3076_v9 = vadd.f32 %v8405_v0, %v8300_v56 }
 0x1f3   : > { %v4613_v4 = vmax.f32 %v4581_v33, 0.0  ;;  %v4579_v16 = vadd.f32 %v8493_v29, %v4540_v50  ;;  %v4543_v3 = vadd.f32 %v5648_v22, %v4121_v12  ;;  %v4119_v60 = vadd.f32 %v3994_v14, %v3441_v52 }
 0x1f4   : > { %v4429_v54 = vpop.f32.mrf.mxu0  ;;  %v5617_v43 = vpop.f32.mrf.mxu1  ;;  %v3072_v22 = vadd.f32 %v8389_v5, %v8288_v42 }
 0x1f5   : > { %4645 = vst [vmem:[%s8507_s19 + $0x10] sm:$0xff] %v4613_v4  ;;  %v4611_v2 = vmax.f32 %v4579_v16, 0.0  ;;  %v4582_v20 = vadd.f32 %v8493_v29, %v4543_v3  ;;  %v4541_v31 = vadd.f32 %v4416_v10, %v4119_v60  ;;  %v4124_v48 = vadd.f32 %v5617_v43, %v3446_v30 }
 0x1f6   : > { %v5652_v44 = vpop.f32.mrf.mxu0  ;;  %v4007_v28 = vpop.f32.mrf.mxu1  ;;  %v3070_v10 = vadd.f32 %v8393_v47, %v8291_v19  ;;  %v3450_v12 = vadd.f32 %v8383_v17, %v3072_v22  ;;  %v3071_v16 = vadd.f32 %v8401_v27, %v8297_v15 }
 0x1f7   : > { %4643 = vst [vmem:[%s8507_s19] sm:$0xff] %v4611_v2  ;;  %v4614_v23 = vmax.f32 %v4582_v20, 0.0  ;;  %v4580_v57 = vadd.f32 %v8493_v29, %v4541_v31  ;;  %v4546_v6 = vadd.f32 %v5651_v25, %v4124_v48  ;;  %v4122_v1 = vadd.f32 %v4007_v28, %v3444_v11 }
 0x1f8   : > { %v4432_v59 = vpop.f32.mrf.mxu0  ;;  %v5618_v52 = vpop.f32.mrf.mxu1  ;;  %v3073_v25 = vadd.f32 %v8397_v26, %v8294_v13  ;;  %v3448_v4 = vadd.f32 %v8387_v39, %v3070_v10  ;;  %v3449_v31 = vadd.f32 %v8395_v53, %v3071_v16  ;;  %v3074_v48 = vadd.f32 %v8409_v40, %v8303_v38 }
 0x1f9   : > { %4646 = vst [vmem:[%s8507_s19 + $0x18] sm:$0xff] %v4614_v23  ;;  %v4612_v8 = vmax.f32 %v4580_v57, 0.0  ;;  %v4585_v33 = vadd.f32 %v8493_v29, %v4546_v6  ;;  %v4544_v42 = vadd.f32 %v4429_v54, %v4122_v1  ;;  %v4125_v5 = vadd.f32 %v5618_v52, %v3447_v62 }
 0x1fa   : > { %v5655_v50 = vpop.f32.mrf.mxu0  ;;  %v4010_v30 = vpop.f32.mrf.mxu1  ;;  %v3451_v11 = vadd.f32 %v8391_v7, %v3073_v25  ;;  %v3454_v28 = vadd.f32 %v8399_v37, %v3076_v9  ;;  %v3077_v23 = vadd.f32 %v8413_v21, %v8306_v35 }
 0x1fb   : > { %4644 = vst [vmem:[%s8507_s19 + $0x8] sm:$0xff] %v4612_v8  ;;  %v4617_v36 = vmax.f32 %v4585_v33, 0.0  ;;  %v4583_v46 = vadd.f32 %v8493_v29, %v4544_v42  ;;  %v4547_v19 = vadd.f32 %v5652_v44, %v4125_v5  ;;  %v4123_v47 = vadd.f32 %v4010_v30, %v3445_v41 }
 0x1fc   : > { %v4445_v14 = vpop.f32.mrf.mxu0  ;;  %v5621_v3 = vpop.f32.mrf.mxu1  ;;  %v3075_v41 = vadd.f32 %v8417_v51, %v8309_v18  ;;  %v3455_v33 = vadd.f32 %v8407_v34, %v3077_v23  ;;  %v3080_v42 = vadd.f32 %v8421_v61, %v8312_v49  ;;  %v3078_v30 = vadd.f32 %v8425_v63, %v8315_v24 }
 0x1fd   : > { %4649 = vst [vmem:[%s8507_s19 + $0x30] sm:$0xff] %v4617_v36  ;;  %v4615_v17 = vmax.f32 %v4583_v46, 0.0  ;;  %v4586_v60 = vadd.f32 %v8493_v29, %v4547_v19  ;;  %v4545_v13 = vadd.f32 %v4432_v59, %v4123_v47  ;;  %v4128_v26 = vadd.f32 %v5621_v3, %v3450_v12 }
 0x1fe   : > { %v5656_v54 = vpop.f32.mrf.mxu0  ;;  %v4023_v43 = vpop.f32.mrf.mxu1  ;;  %v3452_v59 = vadd.f32 %v8403_v45, %v3074_v48  ;;  %v3453_v25 = vadd.f32 %v8411_v58, %v3075_v41  ;;  %v3458_v47 = vadd.f32 %v8415_v55, %v3080_v42  ;;  %v9097_v48 = vld [vmem:[#allocation26_spill] sm:$0xff] }
 0x1ff   : > { %4647 = vst [vmem:[%s8507_s19 + $0x20] sm:$0xff] %v4615_v17  ;;  %v4618_v39 = vmax.f32 %v4586_v60, 0.0  ;;  %v4584_v2 = vadd.f32 %v8493_v29, %v4545_v13  ;;  %v4550_v15 = vadd.f32 %v5655_v50, %v4128_v26  ;;  %v4126_v27 = vadd.f32 %v4023_v43, %v3448_v4  ;;  %v9092_v4 = vld [vmem:[#allocation20_spill] sm:$0xff]  ;;  %v9093_v13 = vld [vmem:[#allocation30_spill] sm:$0xff] }
 0x200   : > { %v4448_v20 = vpop.f32.mrf.mxu0  ;;  %v5622_v44 = vpop.f32.mrf.mxu1  ;;  %v3456_v26 = vadd.f32 %v9093_v13, %v3078_v30 }
 0x201   : > { %4650 = vst [vmem:[%s8507_s19 + $0x38] sm:$0xff] %v4618_v39  ;;  %v4616_v7 = vmax.f32 %v4584_v2, 0.0  ;;  %v4589_v62 = vadd.f32 %v8493_v29, %v4550_v15  ;;  %v4548_v56 = vadd.f32 %v4445_v14, %v4126_v27  ;;  %v4129_v0 = vadd.f32 %v5622_v44, %v3451_v11  ;;  %v9091_v14 = vld [vmem:[#allocation5_spill] sm:$0xff]  ;;  %v9098_v44 = vld [vmem:[#allocation39_spill] sm:$0xff] }
 0x202   : > { %v4026_v57 = vpop.f32.mrf.mxu1  ;;  %v3081_v16 = vadd.f32 %v9092_v4, %v9091_v14  ;;  %v9095_v11 = vld [vmem:[#allocation45_spill] sm:$0xff] }
 0x203   : > { %v5659_v22 = vpop.f32.mrf.mxu0  ;;  %4648 = vst [vmem:[%s8507_s19 + $0x28] sm:$0xff] %v4616_v7  ;;  %v4621_v53 = vmax.f32 %v4589_v62, 0.0  ;;  %v4587_v6 = vadd.f32 %v8493_v29, %v4548_v56  ;;  %v4551_v38 = vadd.f32 %v5656_v54, %v4129_v0  ;;  %v4127_v40 = vadd.f32 %v4026_v57, %v3449_v31  ;;  %v9094_v54 = vld [vmem:[#allocation15_spill] sm:$0xff] }
 0x204   : > { %v5625_v10 = vpop.f32.mrf.mxu1  ;;  %v3079_v9 = vadd.f32 %v9095_v11, %v9094_v54  ;;  %v3084_v7 = vadd.f32 %v9098_v44, %v9097_v48  ;;  %v9099_v57 = vld [vmem:[#allocation43_spill] sm:$0xff] }
 0x205   : > { %v4461_v1 = vpop.f32.mrf.mxu0  ;;  %4653 = vst [vmem:[%s8507_s19 + $0x50] sm:$0xff] %v4621_v53  ;;  %v4619_v37 = vmax.f32 %v4587_v6, 0.0  ;;  %v4590_v52 = vadd.f32 %v8493_v29, %v4551_v38  ;;  %v4549_v35 = vadd.f32 %v4448_v20, %v4127_v40  ;;  %v4132_v21 = vadd.f32 %v5625_v10, %v3454_v28  ;;  %v9096_v20 = vld [vmem:[#allocation38_spill] sm:$0xff]  ;;  %v9101_v38 = vld [vmem:[#allocation55_spill] sm:$0xff] }
 0x206   : > { %v4039_v5 = vpop.f32.mrf.mxu1  ;;  %v3459_v31 = vadd.f32 %v9096_v20, %v3081_v16  ;;  %v3457_v53 = vadd.f32 %v9099_v57, %v3079_v9  ;;  %v9100_v6 = vld [vmem:[#allocation18_spill] sm:$0xff]  ;;  %v9108_v16 = vld [vmem:[#allocation23_spill] sm:$0xff]  ;;  %v9111_v9 = vld [vmem:[#allocation40_spill] sm:$0xff] }
 0x207   : > { %v5660_v8 = vpop.f32.mrf.mxu0  ;;  %4651 = vst [vmem:[%s8507_s19 + $0x40] sm:$0xff] %v4619_v37  ;;  %v4622_v45 = vmax.f32 %v4590_v52, 0.0  ;;  %v4588_v50 = vadd.f32 %v8493_v29, %v4549_v35  ;;  %v4554_v18 = vadd.f32 %v5659_v22, %v4132_v21  ;;  %v4130_v51 = vadd.f32 %v4039_v5, %v3452_v59  ;;  %v9102_v35 = vld [vmem:[#allocation19_spill] sm:$0xff] }
 0x208   : > { %v5626_v36 = vpop.f32.mrf.mxu1  ;;  %v3082_v40 = vadd.f32 %v9101_v38, %v9100_v6  ;;  %v3462_v21 = vadd.f32 %v9102_v35, %v3084_v7  ;;  %v9114_v7 = vld [vmem:[#allocation14_spill] sm:$0xff] }
 0x209   : > { %v4464_v12 = vpop.f32.mrf.mxu0  ;;  %4654 = vst [vmem:[%s8507_s19 + $0x58] sm:$0xff] %v4622_v45  ;;  %v4620_v34 = vmax.f32 %v4588_v50, 0.0  ;;  %v4593_v46 = vadd.f32 %v8493_v29, %v4554_v18  ;;  %v4552_v49 = vadd.f32 %v4461_v1, %v4130_v51  ;;  %v4133_v61 = vadd.f32 %v5626_v36, %v3455_v33  ;;  %v9104_v33 = vld [vmem:[#allocation41_spill] sm:$0xff] }
 0x20a   : > { %v4042_v3 = vpop.f32.mrf.mxu1  ;;  %v9106_v36 = vld [vmem:[#allocation17_spill] sm:$0xff] }
 0x20b   : > { %v5663_v19 = vpop.f32.mrf.mxu0  ;;  %4652 = vst [vmem:[%s8507_s19 + $0x48] sm:$0xff] %v4620_v34  ;;  %v4625_v58 = vmax.f32 %v4593_v46, 0.0  ;;  %v4591_v17 = vadd.f32 %v8493_v29, %v4552_v49  ;;  %v4555_v24 = vadd.f32 %v5660_v8, %v4133_v61  ;;  %v4131_v63 = vadd.f32 %v4042_v3, %v3453_v25  ;;  %v9103_v8 = vld [vmem:[#allocation16_spill] sm:$0xff]  ;;  %v9105_v25 = vld [vmem:[#allocation51_spill] sm:$0xff] }
 0x20c   : > { %v5629_v43 = vpop.f32.mrf.mxu1  ;;  %v3085_v42 = vadd.f32 %v9104_v33, %v9103_v8  ;;  %v3460_v30 = vadd.f32 %v9105_v25, %v3082_v40  ;;  %v9107_v34 = vld [vmem:[#allocation35_spill] sm:$0xff]  ;;  %v9117_v40 = vld [vmem:[#allocation24_spill] sm:$0xff] }
 0x20d   : > { %v4477_v60 = vpop.f32.mrf.mxu0  ;;  %4657 = vst [vmem:[%s8507_s19 + $0x70] sm:$0xff] %v4625_v58  ;;  %v4623_v55 = vmax.f32 %v4591_v17, 0.0  ;;  %v4594_v39 = vadd.f32 %v8493_v29, %v4555_v24  ;;  %v4553_v2 = vadd.f32 %v4464_v12, %v4131_v63  ;;  %v4136_v15 = vadd.f32 %v5629_v43, %v3458_v47  ;;  %v9109_v58 = vld [vmem:[#allocation27_spill] sm:$0xff]  ;;  %v9110_v17 = vld [vmem:[#allocation46_spill] sm:$0xff] }
 0x20e   : > { %v4055_v62 = vpop.f32.mrf.mxu1  ;;  %v3083_v46 = vadd.f32 %v9107_v34, %v9106_v36  ;;  %v3463_v3 = vadd.f32 %v9108_v16, %v3085_v42  ;;  %v3088_v24 = vadd.f32 %v9110_v17, %v9109_v58  ;;  %v9120_v42 = vld [vmem:[#allocation47_spill] sm:$0xff] }
 0x20f   : > { %v5664_v27 = vpop.f32.mrf.mxu0  ;;  %4655 = vst [vmem:[%s8507_s19 + $0x60] sm:$0xff] %v4623_v55  ;;  %v4626_v56 = vmax.f32 %v4594_v39, 0.0  ;;  %v4592_v0 = vadd.f32 %v8493_v29, %v4553_v2  ;;  %v4558_v22 = vadd.f32 %v5663_v19, %v4136_v15  ;;  %v4134_v28 = vadd.f32 %v4055_v62, %v3456_v26  ;;  %v9112_v55 = vld [vmem:[#allocation28_spill] sm:$0xff] }
 0x210   : > { %v5630_v1 = vpop.f32.mrf.mxu1  ;;  %v3461_v43 = vadd.f32 %v9111_v9, %v3083_v46  ;;  %v9113_v39 = vld [vmem:[#allocation48_spill] sm:$0xff]  ;;  %v3466_v62 = vadd.f32 %v9114_v7, %v3088_v24  ;;  %v9123_v46 = vld [vmem:[#allocation49_spill] sm:$0xff] }
 0x211   : > { %v4480_v23 = vpop.f32.mrf.mxu0  ;;  %4658 = vst [vmem:[%s8507_s19 + $0x78] sm:$0xff] %v4626_v56  ;;  %v4624_v59 = vmax.f32 %v4592_v0, 0.0  ;;  %v4597_v41 = vadd.f32 %v8493_v29, %v4558_v22  ;;  %v4556_v10 = vadd.f32 %v4477_v60, %v4134_v28  ;;  %v4137_v37 = vadd.f32 %v5630_v1, %v3459_v31  ;;  %v9115_v56 = vld [vmem:[#allocation29_spill] sm:$0xff]  ;;  %v9116_v0 = vld [vmem:[#allocation32_spill] sm:$0xff] }
 0x212   : > { %v4058_v5 = vpop.f32.mrf.mxu1  ;;  %v3086_v2 = vadd.f32 %v9113_v39, %v9112_v55  ;;  %v3089_v22 = vadd.f32 %v9116_v0, %v9115_v56  ;;  %v9126_v24 = vld [vmem:[#allocation36_spill] sm:$0xff]  ;;  %v9129_v39 = vld [vmem:[#allocation42_spill] sm:$0xff] }
 0x213   : > { %v5667_v52 = vpop.f32.mrf.mxu0  ;;  %4656 = vst [vmem:[%s8507_s19 + $0x68] sm:$0xff] %v4624_v59  ;;  %v4629_v45 = vmax.f32 %v4597_v41, 0.0  ;;  %v4595_v50 = vadd.f32 %v8493_v29, %v4556_v10  ;;  %v4559_v18 = vadd.f32 %v5664_v27, %v4137_v37  ;;  %v4135_v51 = vadd.f32 %v4058_v5, %v3457_v53  ;;  %v9118_v59 = vld [vmem:[#allocation34_spill] sm:$0xff] }
 0x214   : > { %v5633_v49 = vpop.f32.mrf.mxu1  ;;  %v3464_v1 = vadd.f32 %v9117_v40, %v3086_v2  ;;  %v9119_v41 = vld [vmem:[#allocation22_spill] sm:$0xff]  ;;  %v3467_v5 = vadd.f32 %v9120_v42, %v3089_v22 }
 0x215   : > { %v4493_v12 = vpop.f32.mrf.mxu0  ;;  %4661 = vst [vmem:[%s8507_s19 + $0x90] sm:$0xff] %v4629_v45  ;;  %v4627_v61 = vmax.f32 %v4595_v50, 0.0  ;;  %v4598_v19 = vadd.f32 %v8493_v29, %v4559_v18  ;;  %v4557_v47 = vadd.f32 %v4480_v23, %v4135_v51  ;;  %v4140_v14 = vadd.f32 %v5633_v49, %v3462_v21  ;;  %v9121_v45 = vld [vmem:[#allocation21_spill] sm:$0xff]  ;;  %v9122_v50 = vld [vmem:[#allocation52_spill] sm:$0xff]  ;;  %v9131_v56 = vld [vmem:[#allocation54_spill] sm:$0xff] }
 0x216   : > { %v4071_v63 = vpop.f32.mrf.mxu1  ;;  %v3087_v10 = vadd.f32 %v9119_v41, %v9118_v59  ;;  %v3092_v18 = vadd.f32 %v9122_v50, %v9121_v45 }
 0x217   : > { %v5668_v4 = vpop.f32.mrf.mxu0  ;;  %4659 = vst [vmem:[%s8507_s19 + $0x80] sm:$0xff] %v4627_v61  ;;  %v4630_v60 = vmax.f32 %v4598_v19, 0.0  ;;  %v4596_v13 = vadd.f32 %v8493_v29, %v4557_v47  ;;  %v4562_v26 = vadd.f32 %v5667_v52, %v4140_v14  ;;  %v4138_v54 = vadd.f32 %v4071_v63, %v3460_v30  ;;  %v9124_v61 = vld [vmem:[#allocation33_spill] sm:$0xff]  ;;  %v9125_v19 = vld [vmem:[#allocation56_spill] sm:$0xff] }
 0x218   : > { %v5634_v15 = vpop.f32.mrf.mxu1  ;;  %v3465_v49 = vadd.f32 %v9123_v46, %v3087_v10  ;;  %v3090_v47 = vadd.f32 %v9125_v19, %v9124_v61  ;;  %v3470_v63 = vadd.f32 %v9126_v24, %v3092_v18 }
 0x219   : > { %v4496_v11 = vpop.f32.mrf.mxu0  ;;  %4662 = vst [vmem:[%s8507_s19 + $0x98] sm:$0xff] %v4630_v60  ;;  %v4628_v27 = vmax.f32 %v4596_v13, 0.0  ;;  %v4601_v20 = vadd.f32 %v8493_v29, %v4562_v26  ;;  %v4560_v31 = vadd.f32 %v4493_v12, %v4138_v54  ;;  %v4141_v48 = vadd.f32 %v5634_v15, %v3463_v3  ;;  %v9127_v60 = vld [vmem:[#allocation31_spill] sm:$0xff]  ;;  %v9128_v13 = vld [vmem:[#allocation44_spill] sm:$0xff]  ;;  %v9130_v15 = vld [vmem:[#allocation37_spill] sm:$0xff] }
 0x21a   : > { %v4074_v28 = vpop.f32.mrf.mxu1  ;;  %v3093_v26 = vadd.f32 %v9128_v13, %v9127_v60  ;;  %v3468_v2 = vadd.f32 %v9129_v39, %v3090_v47 }
 0x21b   : > { %v5671_v44 = vpop.f32.mrf.mxu0  ;;  %4660 = vst [vmem:[%s8507_s19 + $0x88] sm:$0xff] %v4628_v27  ;;  %v4633_v23 = vmax.f32 %v4601_v20, 0.0  ;;  %v4599_v57 = vadd.f32 %v8493_v29, %v4560_v31  ;;  %v4563_v53 = vadd.f32 %v5668_v4, %v4141_v48  ;;  %v4139_v6 = vadd.f32 %v4074_v28, %v3461_v43 }
 0x21c   : > { %v5637_v37 = vpop.f32.mrf.mxu1  ;;  %v3091_v27 = vadd.f32 %v8481_v32, %v9130_v15  ;;  %v3471_v0 = vadd.f32 %v9131_v56, %v3093_v26  ;;  %v9132_v32 = vld [vmem:[#allocation58_spill] sm:$0xff] }
 0x21d   : > { %v4509_v38 = vpop.f32.mrf.mxu0  ;;  %4665 = vst [vmem:[%s8507_s19 + $0xb0] sm:$0xff] %v4633_v23  ;;  %v4631_v52 = vmax.f32 %v4599_v57, 0.0  ;;  %v4602_v35 = vadd.f32 %v8493_v29, %v4563_v53  ;;  %v4561_v21 = vadd.f32 %v4496_v11, %v4139_v6  ;;  %v4144_v8 = vadd.f32 %v5637_v37, %v3466_v62 }
 0x21e   : > { %v4087_v51 = vpop.f32.mrf.mxu1  ;;  %v3469_v6 = vadd.f32 %v9132_v32, %v3091_v27 }
 0x21f   : > { %v5672_v33 = vpop.f32.mrf.mxu0  ;;  %4663 = vst [vmem:[%s8507_s19 + $0xa0] sm:$0xff] %v4631_v52  ;;  %v4634_v12 = vmax.f32 %v4602_v35, 0.0  ;;  %v4600_v25 = vadd.f32 %v8493_v29, %v4561_v21  ;;  %v4566_v30 = vadd.f32 %v5671_v44, %v4144_v8  ;;  %v4142_v36 = vadd.f32 %v4087_v51, %v3464_v1 }
 0x220   : > { %v5638_v14 = vpop.f32.mrf.mxu1 }
 0x221   : > { %v4512_v34 = vpop.f32.mrf.mxu0  ;;  %4666 = vst [vmem:[%s8507_s19 + $0xb8] sm:$0xff] %v4634_v12  ;;  %v4632_v4 = vmax.f32 %v4600_v25, 0.0  ;;  %v4605_v16 = vadd.f32 %v8493_v29, %v4566_v30  ;;  %v4564_v3 = vadd.f32 %v4509_v38, %v4142_v36  ;;  %v4145_v58 = vadd.f32 %v5638_v14, %v3467_v5 }
 0x222   : > { %v4090_v54 = vpop.f32.mrf.mxu1 }
 0x223   : > { %v5675_v17 = vpop.f32.mrf.mxu0  ;;  %4664 = vst [vmem:[%s8507_s19 + $0xa8] sm:$0xff] %v4632_v4  ;;  %v4637_v11 = vmax.f32 %v4605_v16, 0.0  ;;  %v4603_v9 = vadd.f32 %v8493_v29, %v4564_v3  ;;  %v4567_v43 = vadd.f32 %v5672_v33, %v4145_v58  ;;  %v4143_v55 = vadd.f32 %v4090_v54, %v3465_v49 }
 0x224   : > { %v5641_v20 = vpop.f32.mrf.mxu1 }
 0x225   : > { %v4525_v31 = vpop.f32.mrf.mxu0  ;;  %4669 = vst [vmem:[%s8507_s19 + $0xd0] sm:$0xff] %v4637_v11  ;;  %v4635_v48 = vmax.f32 %v4603_v9, 0.0  ;;  %v4606_v44 = vadd.f32 %v8493_v29, %v4567_v43  ;;  %v4565_v7 = vadd.f32 %v4512_v34, %v4143_v55  ;;  %v4148_v62 = vadd.f32 %v5641_v20, %v3470_v63 }
 0x226   : > { %v4103_v22 = vpop.f32.mrf.mxu1 }
 0x227   : > { %4667 = vst [vmem:[%s8507_s19 + $0xc0] sm:$0xff] %v4635_v48  ;;  %v4638_v28 = vmax.f32 %v4606_v44, 0.0  ;;  %v4604_v23 = vadd.f32 %v8493_v29, %v4565_v7  ;;  %v4570_v57 = vadd.f32 %v5675_v17, %v4148_v62  ;;  %v4146_v53 = vadd.f32 %v4103_v22, %v3468_v2  ;;  %v5676_v40 = vpop.f32.mrf.mxu0 }
 0x228   : > { %v5642_v38 = vpop.f32.mrf.mxu1 }
 0x229   : > { %4670 = vst [vmem:[%s8507_s19 + $0xd8] sm:$0xff] %v4638_v28  ;;  %v4636_v1 = vmax.f32 %v4604_v23, 0.0  ;;  %v4609_v59 = vadd.f32 %v8493_v29, %v4570_v57  ;;  %v4568_v41 = vadd.f32 %v4525_v31, %v4146_v53  ;;  %v4149_v10 = vadd.f32 %v5642_v38, %v3471_v0  ;;  %v4528_v33 = vpop.f32.mrf.mxu0 }
 0x22a   : > { %v4106_v37 = vpop.f32.mrf.mxu1 }
 0x22b   : > { %4668 = vst [vmem:[%s8507_s19 + $0xc8] sm:$0xff] %v4636_v1  ;;  %v4641_v52 = vmax.f32 %v4609_v59, 0.0  ;;  %v4607_v35 = vadd.f32 %v8493_v29, %v4568_v41  ;;  %v4571_v21 = vadd.f32 %v5676_v40, %v4149_v10  ;;  %v4147_v8 = vadd.f32 %v4106_v37, %v3469_v6 }
 0x22d   : > { %4673 = vst [vmem:[%s8507_s19 + $0xf0] sm:$0xff] %v4641_v52  ;;  %v4639_v42 = vmax.f32 %v4607_v35, 0.0  ;;  %v4610_v5 = vadd.f32 %v8493_v29, %v4571_v21  ;;  %v4569_v45 = vadd.f32 %v4528_v33, %v4147_v8 }
 0x22f   : > { %4671 = vst [vmem:[%s8507_s19 + $0xe0] sm:$0xff] %v4639_v42  ;;  %v4642_v50 = vmax.f32 %v4610_v5, 0.0  ;;  %v4608_v18 = vadd.f32 %v8493_v29, %v4569_v45 }
 0x231   : > { %4674 = vst [vmem:[%s8507_s19 + $0xf8] sm:$0xff] %v4642_v50  ;;  %v4640_v51 = vmax.f32 %v4608_v18, 0.0 }
 0x233   : > { %4672 = vst [vmem:[%s8507_s19 + $0xe8] sm:$0xff] %v4640_v51 }
 0x234 PF: > { %s13_s14 = sadd.s32 1, %s5784_s14   ;;  %s9133_s12 = smov %s5780_s13 }
 0x235   : > { %p10_p5 = scmp.ge.s32.totalorder %s13_s14, 4   ;;  %s9134_s13 = smov %s9136_s15 }
 0x237   :  { %12 = sbr.rel (!%p10_p5) target bundleno = 2 (0x2), region = 73 }

</bundles_post_ra>
